<compile_context>
chip_gen: v5e
topology: v5e:2x2
jax: 0.10.0
libtpu: 0.0.40
codegen_flags: <defaults>
</compile_context>

<pallas_src>
import math

import jax
import jax.numpy as jnp
from jax import lax
from jax.experimental import pallas as pl
from jax.experimental.pallas import tpu as pltpu

HIDDEN = 100            # fc1 out_features (kept unpadded in HBM)
N_OUT = 8               # fc2 out_features (8 emotions)
N_LANDMARK = 136        # 68 dlib points * (x, y)
LM_PAD = 256            # landmark block lane-padded (zero rows are inert)
BASE_FEATS = 32768      # frozen base-model flattened features
FC1_IN = BASE_FEATS + N_LANDMARK   # 32904 == nn.Linear(32904, 100).in_features
TK = 16384              # K-tile over the base features: 2 grid steps
assert BASE_FEATS % TK == 0 and TK % 128 == 0


# ----------------------------------------------------------------------------
# Pallas kernel: out = fc2(fc1([base, points])) with the base-feature K axis
# tiled over the grid; landmark contribution + biases + fc2 in the epilogue.
# ----------------------------------------------------------------------------
def _head_kernel(base_ref, w1_ref, pts_ref, w1lm_ref, b1_ref, w2_ref, b2_ref,
                 o_ref, acc_ref):
    k = pl.program_id(0)

    @pl.when(k == 0)
    def _():
        acc_ref[...] = jnp.zeros_like(acc_ref)

    # partial fc1:  [B, tk](bf16) @ [tk, 100](bf16), accumulated in f32
    acc_ref[...] += jnp.dot(base_ref[...], w1_ref[...],
                            preferred_element_type=jnp.float32)

    @pl.when(k == pl.num_programs(0) - 1)
    def _():
        # landmark slice of fc1 + bias, then fc2 (no nonlinearity in original).
        h = (acc_ref[...]
             + jnp.dot(pts_ref[...], w1lm_ref[...],
                       preferred_element_type=jnp.float32)
             + b1_ref[...])
        out = jnp.dot(h, w2_ref[...],
                      preferred_element_type=jnp.float32) + b2_ref[...]
        o_ref[...] = out.astype(o_ref.dtype)


def landmark_emo_head(base, points_pad, w1_t, w1lm_t, b1, w2_t, b2):
    """base: [B, 32768] bf16, points_pad: [B, 256] bf16 -> [B, 8] f32."""
    B, kb = base.shape
    assert kb == BASE_FEATS and w1_t.shape == (BASE_FEATS, HIDDEN)
    assert points_pad.shape == (B, LM_PAD) and w1lm_t.shape == (LM_PAD, HIDDEN)
    n = w2_t.shape[1]

    return pl.pallas_call(
        _head_kernel,
        out_shape=jax.ShapeDtypeStruct((B, n), jnp.float32),
        grid_spec=pltpu.PrefetchScalarGridSpec(
            num_scalar_prefetch=0,
            grid=(BASE_FEATS // TK,),                          # 2 steps
            in_specs=[
                pl.BlockSpec((B, TK), lambda k: (0, k)),       # base tile (bf16)
                pl.BlockSpec((TK, HIDDEN), lambda k: (k, 0)),  # fc1 weight tile (bf16)
                pl.BlockSpec((B, LM_PAD), lambda k: (0, 0)),   # landmarks (bf16, resident)
                pl.BlockSpec((LM_PAD, HIDDEN), lambda k: (0, 0)),  # fc1 lm weight (bf16)
                pl.BlockSpec((1, HIDDEN), lambda k: (0, 0)),   # fc1 bias (f32)
                pl.BlockSpec((HIDDEN, n), lambda k: (0, 0)),   # fc2 weight (f32)
                pl.BlockSpec((1, n), lambda k: (0, 0)),        # fc2 bias (f32)
            ],
            out_specs=pl.BlockSpec((B, n), lambda k: (0, 0)),
            scratch_shapes=[pltpu.VMEM((B, HIDDEN), jnp.float32)],
        ),
        compiler_params=pltpu.CompilerParams(
            dimension_semantics=("arbitrary",),
            vmem_limit_bytes=32 << 20),
    )(base, w1_t, points_pad, w1lm_t, b1, w2_t, b2)


# ----------------------------------------------------------------------------
# Glue: frozen base model stand-in, placeholder landmarks, parameter setup.
# ----------------------------------------------------------------------------
def fake_landmarks(x):
    # TODO(synk): dlib.shape_predictor (68-point face landmark detection) has
    # no JAX/Pallas equivalent; emit deterministic placeholder landmarks in
    # [-0.5, 0.5] with the same (x0, y0, x1, y1, ...) layout.
    b = x.shape[0]
    p = jnp.arange(68, dtype=jnp.float32)
    px = (p % 17.0) * 16.0 / 255.0 - 0.5
    py = jnp.floor(p / 17.0) * 64.0 / 255.0 - 0.5
    pts = jnp.stack([px, py], axis=-1).reshape(-1)            # [136]
    return jnp.broadcast_to(pts, (b, N_LANDMARK))


def base_model_forward(x, conv_w, conv_b):
    # TODO(synk): the original frozen `base_model` architecture is not defined
    # in the module; stand in a frozen Conv2d(1, 2, k=3, s=2, p=1) so the
    # flattened output is exactly 2*128*128 = 32768 features per sample.
    y = lax.conv_general_dilated(
        x, conv_w, window_strides=(2, 2), padding=((1, 1), (1, 1)),
        dimension_numbers=("NCHW", "OIHW", "NCHW"))
    y = y + conv_b.reshape(1, -1, 1, 1)
    return y.astype(jnp.float32).reshape(x.shape[0], -1)      # [B, 32768]


def init_params(key, weight_scale=0.001):
    k1, k2, k3, k4 = jax.random.split(key, 4)
    conv_w = 0.05 * jax.random.normal(k1, (2, 1, 3, 3), jnp.float32)
    conv_b = jnp.zeros((2,), jnp.float32)

    # fc1 = nn.Linear(32904, 100): default PyTorch-style uniform init
    bound1 = 1.0 / math.sqrt(FC1_IN)
    fc1_w = jax.random.uniform(k2, (HIDDEN, FC1_IN), jnp.float32, -bound1, bound1)
    fc1_b = jax.random.uniform(k3, (HIDDEN,), jnp.float32, -bound1, bound1)

    # fc2 = nn.Linear(300, 8) with normal(std=weight_scale) weight init.
    # TODO(synk): the original forward is inconsistent (fc1 outputs 100 but
    # fc2 expects 300 inputs and would raise at runtime); we use the first
    # 100 input columns of fc2 so the pipeline is executable.
    fc2_w = weight_scale * jax.random.normal(k4, (N_OUT, 300), jnp.float32)
    fc2_b = jnp.zeros((N_OUT,), jnp.float32)

    # Pack for the kernel: split fc1 weight into the 32768-row base part
    # (streamed, bf16, transposed) and the 136-row landmark part (resident,
    # zero-padded to 256 rows => padded rows are inert).
    w1_t = fc1_w[:, :BASE_FEATS].T.astype(jnp.bfloat16)       # [32768, 100] bf16
    w1lm_t = (jnp.zeros((LM_PAD, HIDDEN), jnp.float32)
              .at[:N_LANDMARK, :].set(fc1_w[:, BASE_FEATS:].T)
              .astype(jnp.bfloat16))                          # [256, 100] bf16
    b1 = fc1_b.reshape(1, HIDDEN)                             # f32
    w2_t = fc2_w[:, :HIDDEN].T                                # [100, 8] f32
    b2 = fc2_b.reshape(1, N_OUT)                              # f32
    return dict(conv_w=conv_w, conv_b=conv_b, w1_t=w1_t, w1lm_t=w1lm_t,
                b1=b1, w2_t=w2_t, b2=b2)


@jax.jit
def forward(params, x):
    points = fake_landmarks(x)                                # [B, 136] f32
    points_pad = jnp.pad(
        points, ((0, 0), (0, LM_PAD - N_LANDMARK))).astype(jnp.bfloat16)
    base = base_model_forward(
        x, params["conv_w"], params["conv_b"]).astype(jnp.bfloat16)  # [B, 32768]
    return landmark_emo_head(base, points_pad, params["w1_t"],
                             params["w1lm_t"], params["b1"],
                             params["w2_t"], params["b2"])    # [B, 8]


if __name__ == "__main__":
    key = jax.random.PRNGKey(0)
    kx, kp = jax.random.split(key)
    # images in [-0.5, 0.5] as implied by the `(x + 0.5) * 255` rescale
    x = jax.random.uniform(kx, (2, 1, 256, 256), jnp.float32, -0.5, 0.5)
    params = init_params(kp)
    out = forward(params, x)
    jax.block_until_ready(out)
    assert out.shape == (2, 8) and out.dtype == jnp.float32
    assert bool(jnp.all(jnp.isfinite(out)))
    print("KERNEL_OK")
</pallas_src>

<mosaic_0001>
module attributes {stable_mosaic.version = 11 : i64} {
  func.func @_head_kernel(%arg0: i32, %arg1: memref<2x16384xbf16, #tpu.memory_space<vmem>>, %arg2: memref<16384x100xbf16, #tpu.memory_space<vmem>>, %arg3: memref<2x256xbf16, #tpu.memory_space<vmem>>, %arg4: memref<256x100xbf16, #tpu.memory_space<vmem>>, %arg5: memref<1x100xf32, #tpu.memory_space<vmem>>, %arg6: memref<100x8xf32, #tpu.memory_space<vmem>>, %arg7: memref<1x8xf32, #tpu.memory_space<vmem>>, %arg8: memref<2x8xf32, #tpu.memory_space<vmem>>, %arg9: memref<2x100xf32, #tpu.memory_space<vmem>>) attributes {dimension_semantics = [#tpu.dimension_semantics<arbitrary>], iteration_bounds = array<i64: 2>, scalar_prefetch = 0 : i64, scratch_operands = 1 : i64, tpu.core_type = #tpu.core_type<tc>, window_params = [{transform_indices = @transform_0, window_bounds = array<i64: 2, 16384>}, {transform_indices = @transform_1, window_bounds = array<i64: 16384, 100>}, {pipeline_mode = #tpu.pipeline_mode<synchronous>, transform_indices = @transform_2, window_bounds = array<i64: 2, 256>}, {pipeline_mode = #tpu.pipeline_mode<synchronous>, transform_indices = @transform_3, window_bounds = array<i64: 256, 100>}, {pipeline_mode = #tpu.pipeline_mode<synchronous>, transform_indices = @transform_4, window_bounds = array<i64: 1, 100>}, {pipeline_mode = #tpu.pipeline_mode<synchronous>, transform_indices = @transform_5, window_bounds = array<i64: 100, 8>}, {pipeline_mode = #tpu.pipeline_mode<synchronous>, transform_indices = @transform_6, window_bounds = array<i64: 1, 8>}, {pipeline_mode = #tpu.pipeline_mode<synchronous>, transform_indices = @transform_7, window_bounds = array<i64: 2, 8>}]} {
    %c0_i32 = arith.constant 0 : i32
    %0 = arith.cmpi eq, %arg0, %c0_i32 : i32
    %1 = arith.extui %0 : i1 to i32
    %c0_i32_0 = arith.constant 0 : i32
    %2 = arith.cmpi ne, %1, %c0_i32_0 : i32
    scf.if %2 {
      %cst_9 = arith.constant 0.000000e+00 : f32
      %12 = vector.broadcast %cst_9 : f32 to vector<2x100xf32>
      %c0_10 = arith.constant 0 : index
      %c0_11 = arith.constant 0 : index
      %13 = vector.load %arg9[%c0_10, %c0_11] : memref<2x100xf32, #tpu.memory_space<vmem>>, vector<2x100xf32>
      tpu.vector_store %arg9[%c0_10, %c0_11], %12 {strides = array<i32>} : memref<2x100xf32, #tpu.memory_space<vmem>>, vector<2x100xf32>,
    } else {
    }
    %c0 = arith.constant 0 : index
    %c0_1 = arith.constant 0 : index
    %3 = vector.load %arg9[%c0, %c0_1] : memref<2x100xf32, #tpu.memory_space<vmem>>, vector<2x100xf32>
    %c0_2 = arith.constant 0 : index
    %c0_3 = arith.constant 0 : index
    %4 = vector.load %arg1[%c0_2, %c0_3] : memref<2x16384xbf16, #tpu.memory_space<vmem>>, vector<2x16384xbf16>
    %c0_4 = arith.constant 0 : index
    %c0_5 = arith.constant 0 : index
    %5 = vector.load %arg2[%c0_4, %c0_5] : memref<16384x100xbf16, #tpu.memory_space<vmem>>, vector<16384x100xbf16>
    %cst = arith.constant dense<0.000000e+00> : vector<2x100xf32>
    %6 = tpu.matmul %4, %5, %cst {dimension_numbers = #tpu.dot_dimension_numbers<[1], [0], [0], [1], [0, 0, 1, 1], [], []>} : vector<2x16384xbf16>, vector<16384x100xbf16>, vector<2x100xf32> -> vector<2x100xf32>
    %7 = arith.addf %3, %6 : vector<2x100xf32>
    %c0_6 = arith.constant 0 : index
    %c0_7 = arith.constant 0 : index
    %8 = vector.load %arg9[%c0_6, %c0_7] : memref<2x100xf32, #tpu.memory_space<vmem>>, vector<2x100xf32>
    tpu.vector_store %arg9[%c0_6, %c0_7], %7 {strides = array<i32>} : memref<2x100xf32, #tpu.memory_space<vmem>>, vector<2x100xf32>,
    %c1_i32 = arith.constant 1 : i32
    %9 = arith.cmpi eq, %arg0, %c1_i32 : i32
    %10 = arith.extui %9 : i1 to i32
    %c0_i32_8 = arith.constant 0 : i32
    %11 = arith.cmpi ne, %10, %c0_i32_8 : i32
    scf.if %11 {
      %c0_9 = arith.constant 0 : index
      %c0_10 = arith.constant 0 : index
      %12 = vector.load %arg9[%c0_9, %c0_10] : memref<2x100xf32, #tpu.memory_space<vmem>>, vector<2x100xf32>
      %c0_11 = arith.constant 0 : index
      %c0_12 = arith.constant 0 : index
      %13 = vector.load %arg3[%c0_11, %c0_12] : memref<2x256xbf16, #tpu.memory_space<vmem>>, vector<2x256xbf16>
      %c0_13 = arith.constant 0 : index
      %c0_14 = arith.constant 0 : index
      %14 = vector.load %arg4[%c0_13, %c0_14] : memref<256x100xbf16, #tpu.memory_space<vmem>>, vector<256x100xbf16>
      %cst_15 = arith.constant dense<0.000000e+00> : vector<2x100xf32>
      %15 = tpu.matmul %13, %14, %cst_15 {dimension_numbers = #tpu.dot_dimension_numbers<[1], [0], [0], [1], [0, 0, 1, 1], [], []>} : vector<2x256xbf16>, vector<256x100xbf16>, vector<2x100xf32> -> vector<2x100xf32>
      %16 = arith.addf %12, %15 : vector<2x100xf32>
      %c0_16 = arith.constant 0 : index
      %c0_17 = arith.constant 0 : index
      %17 = vector.load %arg5[%c0_16, %c0_17] : memref<1x100xf32, #tpu.memory_space<vmem>>, vector<1x100xf32>
      %18 = vector.broadcast %17 : vector<1x100xf32> to vector<2x100xf32>
      %19 = arith.addf %16, %18 : vector<2x100xf32>
      %c0_18 = arith.constant 0 : index
      %c0_19 = arith.constant 0 : index
      %20 = vector.load %arg6[%c0_18, %c0_19] : memref<100x8xf32, #tpu.memory_space<vmem>>, vector<100x8xf32>
      %cst_20 = arith.constant dense<0.000000e+00> : vector<2x8xf32>
      %21 = tpu.matmul %19, %20, %cst_20 {dimension_numbers = #tpu.dot_dimension_numbers<[1], [0], [0], [1], [0, 0, 1, 1], [], []>} : vector<2x100xf32>, vector<100x8xf32>, vector<2x8xf32> -> vector<2x8xf32>
      %c0_21 = arith.constant 0 : index
      %c0_22 = arith.constant 0 : index
      %22 = vector.load %arg7[%c0_21, %c0_22] : memref<1x8xf32, #tpu.memory_space<vmem>>, vector<1x8xf32>
      %23 = vector.broadcast %22 : vector<1x8xf32> to vector<2x8xf32>
      %24 = arith.addf %21, %23 : vector<2x8xf32>
      %c0_23 = arith.constant 0 : index
      %c0_24 = arith.constant 0 : index
      %25 = vector.load %arg8[%c0_23, %c0_24] : memref<2x8xf32, #tpu.memory_space<vmem>>, vector<2x8xf32>
      tpu.vector_store %arg8[%c0_23, %c0_24], %24 {strides = array<i32>} : memref<2x8xf32, #tpu.memory_space<vmem>>, vector<2x8xf32>,
    } else {
    }
    return
  }
  func.func @transform_0(%arg0: i32) -> (i32, i32) {
    %c0_i32 = arith.constant 0 : i32
    %c0_i32_0 = arith.constant 0 : i32
    return %c0_i32, %arg0 : i32, i32
  }
  func.func @transform_1(%arg0: i32) -> (i32, i32) {
    %c0_i32 = arith.constant 0 : i32
    %c0_i32_0 = arith.constant 0 : i32
    return %arg0, %c0_i32 : i32, i32
  }
  func.func @transform_2(%arg0: i32) -> (i32, i32) {
    %c0_i32 = arith.constant 0 : i32
    %c0_i32_0 = arith.constant 0 : i32
    %c0_i32_1 = arith.constant 0 : i32
    return %c0_i32, %c0_i32_0 : i32, i32
  }
  func.func @transform_3(%arg0: i32) -> (i32, i32) {
    %c0_i32 = arith.constant 0 : i32
    %c0_i32_0 = arith.constant 0 : i32
    %c0_i32_1 = arith.constant 0 : i32
    return %c0_i32, %c0_i32_0 : i32, i32
  }
  func.func @transform_4(%arg0: i32) -> (i32, i32) {
    %c0_i32 = arith.constant 0 : i32
    %c0_i32_0 = arith.constant 0 : i32
    %c0_i32_1 = arith.constant 0 : i32
    return %c0_i32, %c0_i32_0 : i32, i32
  }
  func.func @transform_5(%arg0: i32) -> (i32, i32) {
    %c0_i32 = arith.constant 0 : i32
    %c0_i32_0 = arith.constant 0 : i32
    %c0_i32_1 = arith.constant 0 : i32
    return %c0_i32, %c0_i32_0 : i32, i32
  }
  func.func @transform_6(%arg0: i32) -> (i32, i32) {
    %c0_i32 = arith.constant 0 : i32
    %c0_i32_0 = arith.constant 0 : i32
    %c0_i32_1 = arith.constant 0 : i32
    return %c0_i32, %c0_i32_0 : i32, i32
  }
  func.func @transform_7(%arg0: i32) -> (i32, i32) {
    %c0_i32 = arith.constant 0 : i32
    %c0_i32_0 = arith.constant 0 : i32
    %c0_i32_1 = arith.constant 0 : i32
    return %c0_i32, %c0_i32_0 : i32, i32
  }
}

</mosaic_0001>

<bundles_post_ra>
// kernel: forward.1
= control target key start
LH: loop header
LB: loop body
LE: loop exit
PB: predicated region body
PF: predicated region fallthrough
CT: control target
= control target key end

     0   :  { %12 = vsyncpa [#allocation4], 0  ;;  %s16047_s24 = smov 0   ;;  %s17253_s0 = inlined_call_operand.vmem [shape: bf16[2,32768], index: 0, kind: input, shape index: {}]   ;;  %s17254_s1 = inlined_call_operand.vmem [shape: bf16[32768,100], index: 1, kind: input, shape index: {}]   ;;  %s17255_s2 = inlined_call_operand.vmem [shape: bf16[2,256], index: 2, kind: input, shape index: {}]   ;;  %s17256_s3 = inlined_call_operand.vmem [shape: bf16[256,100], index: 3, kind: input, shape index: {}]   ;;  %s17257_s4 = inlined_call_operand.vmem [shape: f32[1,100], index: 4, kind: input, shape index: {}]   ;;  %s17258_s5 = inlined_call_operand.vmem [shape: f32[100,8], index: 5, kind: input, shape index: {}]   ;;  %s17259_s6 = inlined_call_operand.vmem [shape: f32[1,8], index: 6, kind: input, shape index: {}]   ;;  %s17260_s7 = inlined_call_operand.hbm [shape: f32[2,8], index: 7, kind: output, shape index: {}]  }
   0x1 LB: > { %s16053_s25 = sadd.s32 4294967295, %s16003_s24   ;;  %p10735_p0 = scmp.ge.s32.totalorder %s16003_s24, 1  ;;  %s16003_s24 = sphi %s16047_s24, %s18_s24  }
   0x2   : > { %p244_p1 = scmp.lt.s32.totalorder %s16003_s24, 3 }
   0x4   : > { %p245_p2 = pnand %p10735_p0, %p244_p1 }
   0x5   : > { %s10736_s26 = sshll.u32 (!%p245_p2), %s16053_s25, 7  ;;  %s10737_s27 = sshll.u32 (!%p245_p2), %s16053_s25, 11 }
   0x6   : > { %248 = sbr.rel (%p245_p2) target bundleno = 1492 (0x5d4), region = 48  ;;  %p276_p3 = scmp.lt.s32.totalorder (!%p245_p2), %s10736_s26, 255 }
   0x7   : > { %p281_p4 = scmp.lt.s32.totalorder (!%p245_p2), %s10737_s27, 4095  ;;  %p10739_p5 = scmp.ne.s32.totalorder (!%p245_p2), %s16053_s25, 0 }
   0xb   : > { %s17262_s26 = smov (!%p276_p3, %s10736_s26), 255  ;;  %s17264_s27 = smov (!%p281_p4, %s10737_s27), 4095 }
   0xc   : > { %s16062_s30 = scalar_lea.vmem %s17253_s0, %s17262_s26  ;;  %s10738_s8 = sshll.u32 %s17264_s27, 2 }
   0xd   : > { %s16067_s11 = scalar_lea.vmem %s17254_s1, %s10738_s8  ;;  %289 = sbr.rel (%p10739_p5) target bundleno = 20 (0x14), region = 52 }
  0x12   : > { %vm290_vm0 = vcmask 812032   ;;  %v16005_v0 = vmov 0.0  }
  0x13   : > { %291 = vst.msk [vmem:[#allocation2] sm:$0x3] %vm290_vm0, %v16005_v0 }
  0x14 PF: > { %v14914_v1 = vld [vmem:[%s16067_s11 + $0x38] sm:$0xff]  ;;  %v14913_v5 = vld [vmem:[%s16067_s11 + $0x30] sm:$0xff]  ;;  %v14912_v9 = vld [vmem:[%s16067_s11 + $0x28] sm:$0xff]  ;;  %vm10454_vm1 = vcmask 812032   ;;  %p14836_p6 = scmp.ne.s32.totalorder %s16053_s25, 1 }
  0x15   : > { %v14922_v2 = vld [vmem:[%s16067_s11 + $0x78] sm:$0xff]  ;;  %8789 = vmatpush.bf16.msra.mxu0 %v14914_v1  ;;  %v14921_v6 = vld [vmem:[%s16067_s11 + $0x70] sm:$0xff]  ;;  %v14920_v10 = vld [vmem:[%s16067_s11 + $0x68] sm:$0xff] }
  0x16   : > { %v14930_v3 = vld [vmem:[%s16067_s11 + $0xb8] sm:$0xff]  ;;  %8802 = vmatpush.bf16.msra.mxu1 %v14922_v2  ;;  %v14929_v7 = vld [vmem:[%s16067_s11 + $0xb0] sm:$0xff]  ;;  %v14928_v11 = vld [vmem:[%s16067_s11 + $0xa8] sm:$0xff] }
  0x17   : > { %v14938_v4 = vld [vmem:[%s16067_s11 + $0xf8] sm:$0xff]  ;;  %8815 = vmatpush.bf16.msra.mxu2 %v14930_v3  ;;  %v14937_v8 = vld [vmem:[%s16067_s11 + $0xf0] sm:$0xff]  ;;  %v14936_v12 = vld [vmem:[%s16067_s11 + $0xe8] sm:$0xff] }
  0x18   : > { %8828 = vmatpush.bf16.msra.mxu3 %v14938_v4  ;;  %v14911_v13 = vld [vmem:[%s16067_s11 + $0x20] sm:$0xff]  ;;  %v14910_v17 = vld [vmem:[%s16067_s11 + $0x18] sm:$0xff]  ;;  %v14909_v22 = vld [vmem:[%s16067_s11 + $0x10] sm:$0xff] }
  0x19   : > { %8790 = vmatpush.bf16.msra.mxu0 %v14913_v5  ;;  %v14919_v14 = vld [vmem:[%s16067_s11 + $0x60] sm:$0xff]  ;;  %v14918_v18 = vld [vmem:[%s16067_s11 + $0x58] sm:$0xff]  ;;  %v14917_v23 = vld [vmem:[%s16067_s11 + $0x50] sm:$0xff] }
  0x1a   : > { %8803 = vmatpush.bf16.msra.mxu1 %v14921_v6  ;;  %v14927_v15 = vld [vmem:[%s16067_s11 + $0xa0] sm:$0xff]  ;;  %v14926_v19 = vld [vmem:[%s16067_s11 + $0x98] sm:$0xff]  ;;  %v14925_v24 = vld [vmem:[%s16067_s11 + $0x90] sm:$0xff] }
  0x1b   : > { %8816 = vmatpush.bf16.msra.mxu2 %v14929_v7  ;;  %v14935_v16 = vld [vmem:[%s16067_s11 + $0xe0] sm:$0xff]  ;;  %v14934_v20 = vld [vmem:[%s16067_s11 + $0xd8] sm:$0xff]  ;;  %v14933_v25 = vld [vmem:[%s16067_s11 + $0xd0] sm:$0xff] }
  0x1c   : > { %8829 = vmatpush.bf16.msra.mxu3 %v14937_v8  ;;  %v293_v21 = vld [vmem:[%s16062_s30] sm:$0xff]  ;;  %v14908_v26 = vld [vmem:[%s16067_s11 + $0x8] sm:$0xff]  ;;  %v14946_v34 = vld [vmem:[%s16067_s11 + $0x138] sm:$0xff] }
  0x1d   : > { %8791 = vmatpush.bf16.msra.mxu0 %v14912_v9  ;;  %2358 = vst [vmem:[#allocation1] ss:$9 sm:$0xff] %v293_v21  ;;  %v14916_v27 = vld [vmem:[%s16067_s11 + $0x48] sm:$0xff]  ;;  %v14907_v30 = vld [vmem:[%s16067_s11] sm:$0xff]  ;;  %v14954_v35 = vld [vmem:[%s16067_s11 + $0x178] sm:$0xff] }
  0x1e   : > { %8804 = vmatpush.bf16.msra.mxu1 %v14920_v10  ;;  %v14924_v28 = vld [vmem:[%s16067_s11 + $0x88] sm:$0xff]  ;;  %v14915_v31 = vld [vmem:[%s16067_s11 + $0x40] sm:$0xff]  ;;  %v14962_v36 = vld [vmem:[%s16067_s11 + $0x1b8] sm:$0xff] }
  0x1f   : > { %8817 = vmatpush.bf16.msra.mxu2 %v14928_v11  ;;  %v14932_v29 = vld [vmem:[%s16067_s11 + $0xc8] sm:$0xff]  ;;  %v14923_v32 = vld [vmem:[%s16067_s11 + $0x80] sm:$0xff]  ;;  %v14970_v37 = vld [vmem:[%s16067_s11 + $0x1f8] sm:$0xff] }
  0x20   : > { %8830 = vmatpush.bf16.msra.mxu3 %v14936_v12  ;;  %v14931_v33 = vld [vmem:[%s16067_s11 + $0xc0] sm:$0xff]  ;;  %v14945_v38 = vld [vmem:[%s16067_s11 + $0x130] sm:$0xff]  ;;  %v14944_v46 = vld [vmem:[%s16067_s11 + $0x128] sm:$0xff] }
  0x21   : > { %8792 = vmatpush.bf16.msra.mxu0 %v14911_v13  ;;  %v14953_v41 = vld [vmem:[%s16067_s11 + $0x170] sm:$0xff]  ;;  %v14952_v47 = vld [vmem:[%s16067_s11 + $0x168] sm:$0xff]  ;;  %v14943_v50 = vld [vmem:[%s16067_s11 + $0x120] sm:$0xff] }
  0x22   : > { %8805 = vmatpush.bf16.msra.mxu1 %v14919_v14  ;;  %v14961_v44 = vld [vmem:[%s16067_s11 + $0x1b0] sm:$0xff]  ;;  %v14960_v48 = vld [vmem:[%s16067_s11 + $0x1a8] sm:$0xff]  ;;  %v14951_v51 = vld [vmem:[%s16067_s11 + $0x160] sm:$0xff] }
  0x23   : > { %8818 = vmatpush.bf16.msra.mxu2 %v14927_v15  ;;  %v14969_v45 = vld [vmem:[%s16067_s11 + $0x1f0] sm:$0xff]  ;;  %v14968_v49 = vld [vmem:[%s16067_s11 + $0x1e8] sm:$0xff]  ;;  %v14959_v52 = vld [vmem:[%s16067_s11 + $0x1a0] sm:$0xff] }
  0x24   : > { %8831 = vmatpush.bf16.msra.mxu3 %v14935_v16  ;;  %v2361_v39 = vld [vmem:[#allocation1 + $0x12] sm:$0xff]  ;;  %v2359_v40 = vld [vmem:[#allocation1] sm:$0xff]  ;;  %v2360_v43 = vld [vmem:[#allocation1 + $0x9] sm:$0xff] }
  0x25   : > { %8793 = vmatpush.bf16.msra.mxu0 %v14910_v17  ;;  %v2362_v42 = vld [vmem:[#allocation1 + $0x1b] sm:$0xff]  ;;  %v14941_v58 = vld [vmem:[%s16067_s11 + $0x110] sm:$0xff]  ;;  %v14940_v62 = vld [vmem:[%s16067_s11 + $0x108] sm:$0xff] }
  0x26   : > { %8806 = vmatpush.bf16.msra.mxu1 %v14918_v18  ;;  %v14967_v53 = vld [vmem:[%s16067_s11 + $0x1e0] sm:$0xff]  ;;  %v14942_v54 = vld [vmem:[%s16067_s11 + $0x118] sm:$0xff]  ;;  %v14949_v59 = vld [vmem:[%s16067_s11 + $0x150] sm:$0xff] }
  0x27   : > { %8819 = vmatpush.bf16.msra.mxu2 %v14926_v19  ;;  %v14950_v55 = vld [vmem:[%s16067_s11 + $0x158] sm:$0xff]  ;;  %v14957_v60 = vld [vmem:[%s16067_s11 + $0x190] sm:$0xff]  ;;  %v14948_v63 = vld [vmem:[%s16067_s11 + $0x148] sm:$0xff] }
  0x28   : > { %8832 = vmatpush.bf16.msra.mxu3 %v14934_v20  ;;  %v14958_v56 = vld [vmem:[%s16067_s11 + $0x198] sm:$0xff]  ;;  %v14965_v61 = vld [vmem:[%s16067_s11 + $0x1d0] sm:$0xff]  ;;  %v14956_v0 = vld [vmem:[%s16067_s11 + $0x188] sm:$0xff] }
  0x29   : > { %8794 = vmatpush.bf16.msra.mxu0 %v14909_v22  ;;  %v14966_v57 = vld [vmem:[%s16067_s11 + $0x1d8] sm:$0xff]  ;;  %v14964_v1 = vld [vmem:[%s16067_s11 + $0x1c8] sm:$0xff]  ;;  %v14939_v7 = vld [vmem:[%s16067_s11 + $0x100] sm:$0xff] }
  0x2a   : > { %8807 = vmatpush.bf16.msra.mxu1 %v14917_v23  ;;  %v2365_v2 = vld [vmem:[#allocation1 + $0x36] sm:$0xff]  ;;  %v2363_v3 = vld [vmem:[#allocation1 + $0x24] sm:$0xff]  ;;  %v2364_v5 = vld [vmem:[#allocation1 + $0x2d] sm:$0xff] }
  0x2b   : > { %8820 = vmatpush.bf16.msra.mxu2 %v14925_v24  ;;  %v2366_v4 = vld [vmem:[#allocation1 + $0x3f] sm:$0xff]  ;;  %v294_v6 = vld [vmem:[%s16062_s30 + $0x8] sm:$0xff]  ;;  %v14977_v15 = vld [vmem:[%s16067_s11 + $0x230] sm:$0xff] }
  0x2c   : > { %8833 = vmatpush.bf16.msra.mxu3 %v14933_v25  ;;  %2368 = vst [vmem:[#allocation1] ss:$9 sm:$0xff] %v294_v6  ;;  %v14947_v8 = vld [vmem:[%s16067_s11 + $0x140] sm:$0xff]  ;;  %v14978_v11 = vld [vmem:[%s16067_s11 + $0x238] sm:$0xff]  ;;  %v14985_v16 = vld [vmem:[%s16067_s11 + $0x270] sm:$0xff] }
  0x2d   : > { %8795 = vmatpush.bf16.msra.mxu0 %v14908_v26  ;;  %v14955_v9 = vld [vmem:[%s16067_s11 + $0x180] sm:$0xff]  ;;  %v14986_v12 = vld [vmem:[%s16067_s11 + $0x278] sm:$0xff]  ;;  %v14993_v17 = vld [vmem:[%s16067_s11 + $0x2b0] sm:$0xff] }
  0x2e   : > { %8808 = vmatpush.bf16.msra.mxu1 %v14916_v27  ;;  %v14963_v10 = vld [vmem:[%s16067_s11 + $0x1c0] sm:$0xff]  ;;  %v14994_v13 = vld [vmem:[%s16067_s11 + $0x2b8] sm:$0xff]  ;;  %v15001_v18 = vld [vmem:[%s16067_s11 + $0x2f0] sm:$0xff] }
  0x2f   : > { %8821 = vmatpush.bf16.msra.mxu2 %v14924_v28  ;;  %v15002_v14 = vld [vmem:[%s16067_s11 + $0x2f8] sm:$0xff]  ;;  %v14976_v19 = vld [vmem:[%s16067_s11 + $0x228] sm:$0xff]  ;;  %v14975_v23 = vld [vmem:[%s16067_s11 + $0x220] sm:$0xff] }
  0x30   : > { %8834 = vmatpush.bf16.msra.mxu3 %v14932_v29  ;;  %v14984_v20 = vld [vmem:[%s16067_s11 + $0x268] sm:$0xff]  ;;  %v14983_v24 = vld [vmem:[%s16067_s11 + $0x260] sm:$0xff]  ;;  %v14974_v27 = vld [vmem:[%s16067_s11 + $0x218] sm:$0xff] }
  0x31   : > { %8796 = vmatpush.bf16.msra.mxu0 %v14907_v30  ;;  %v14992_v21 = vld [vmem:[%s16067_s11 + $0x2a8] sm:$0xff]  ;;  %v14991_v25 = vld [vmem:[%s16067_s11 + $0x2a0] sm:$0xff]  ;;  %v14982_v28 = vld [vmem:[%s16067_s11 + $0x258] sm:$0xff] }
  0x32   : > { %8809 = vmatpush.bf16.msra.mxu1 %v14915_v31  ;;  %v15000_v22 = vld [vmem:[%s16067_s11 + $0x2e8] sm:$0xff]  ;;  %v14999_v26 = vld [vmem:[%s16067_s11 + $0x2e0] sm:$0xff]  ;;  %v14990_v29 = vld [vmem:[%s16067_s11 + $0x298] sm:$0xff] }
  0x33   : > { %8822 = vmatpush.bf16.msra.mxu2 %v14923_v32  ;;  %v14998_v30 = vld [vmem:[%s16067_s11 + $0x2d8] sm:$0xff]  ;;  %v14973_v31 = vld [vmem:[%s16067_s11 + $0x210] sm:$0xff] }
  0x34   : > { %8835 = vmatpush.bf16.msra.mxu3 %v14931_v33  ;;  %8797 = vmatmul.bf16.vlgmr.msra.gmra.mxu0 %v2359_v40  ;;  %v14981_v32 = vld [vmem:[%s16067_s11 + $0x250] sm:$0xff]  ;;  %v14979_v40 = vld [vmem:[%s16067_s11 + $0x240] sm:$0xff] }
  0x35   : > { %8841 = vmatpush.bf16.msrb.mxu0 %v14946_v34  ;;  %8810 = vmatmul.bf16.vlgmr.msra.gmra.mxu1 %v2360_v43  ;;  %v14989_v33 = vld [vmem:[%s16067_s11 + $0x290] sm:$0xff]  ;;  %v15010_v43 = vld [vmem:[%s16067_s11 + $0x338] sm:$0xff] }
  0x36   : > { %8854 = vmatpush.bf16.msrb.mxu1 %v14954_v35  ;;  %8823 = vmatmul.bf16.vlgmr.msra.gmra.mxu2 %v2361_v39  ;;  %v14997_v34 = vld [vmem:[%s16067_s11 + $0x2d0] sm:$0xff]  ;;  %v14972_v35 = vld [vmem:[%s16067_s11 + $0x208] sm:$0xff]  ;;  %v14971_v39 = vld [vmem:[%s16067_s11 + $0x200] sm:$0xff] }
  0x37   : > { %8867 = vmatpush.bf16.msrb.mxu2 %v14962_v36  ;;  %8836 = vmatmul.bf16.vlgmr.msra.gmra.mxu3 %v2362_v42  ;;  %v14980_v36 = vld [vmem:[%s16067_s11 + $0x248] sm:$0xff]  ;;  %v14995_v42 = vld [vmem:[%s16067_s11 + $0x2c0] sm:$0xff]  ;;  %v15029_v6 = vld [vmem:[%s16067_s11 + $0x3d0] sm:$0xff] }
  0x38   : > { %8880 = vmatpush.bf16.msrb.mxu3 %v14970_v37  ;;  %v14988_v37 = vld [vmem:[%s16067_s11 + $0x288] sm:$0xff] }
  0x39   : > { %8842 = vmatpush.bf16.msrb.mxu0 %v14945_v38  ;;  %v14996_v38 = vld [vmem:[%s16067_s11 + $0x2c8] sm:$0xff] }
  0x3a   : > { %8855 = vmatpush.bf16.msrb.mxu1 %v14953_v41  ;;  %v14987_v41 = vld [vmem:[%s16067_s11 + $0x280] sm:$0xff] }
  0x3b   : > { %8868 = vmatpush.bf16.msrb.mxu2 %v14961_v44  ;;  %v15018_v44 = vld [vmem:[%s16067_s11 + $0x378] sm:$0xff] }
  0x3c   : > { %8881 = vmatpush.bf16.msrb.mxu3 %v14969_v45  ;;  %v15026_v45 = vld [vmem:[%s16067_s11 + $0x3b8] sm:$0xff] }
  0x3d   : > { %8843 = vmatpush.bf16.msrb.mxu0 %v14944_v46  ;;  %v15034_v46 = vld [vmem:[%s16067_s11 + $0x3f8] sm:$0xff] }
  0x3e   : > { %8856 = vmatpush.bf16.msrb.mxu1 %v14952_v47  ;;  %v2369_v47 = vld [vmem:[#allocation1] sm:$0xff] }
  0x3f   : > { %8869 = vmatpush.bf16.msrb.mxu2 %v14960_v48  ;;  %v2371_v48 = vld [vmem:[#allocation1 + $0x12] sm:$0xff] }
  0x40   : > { %8882 = vmatpush.bf16.msrb.mxu3 %v14968_v49  ;;  %v2370_v49 = vld [vmem:[#allocation1 + $0x9] sm:$0xff] }
  0x41   : > { %8844 = vmatpush.bf16.msrb.mxu0 %v14943_v50  ;;  %v2372_v50 = vld [vmem:[#allocation1 + $0x1b] sm:$0xff] }
  0x42   : > { %8857 = vmatpush.bf16.msrb.mxu1 %v14951_v51  ;;  %v15009_v51 = vld [vmem:[%s16067_s11 + $0x330] sm:$0xff] }
  0x43   : > { %8870 = vmatpush.bf16.msrb.mxu2 %v14959_v52  ;;  %v15017_v52 = vld [vmem:[%s16067_s11 + $0x370] sm:$0xff] }
  0x44   : > { %8883 = vmatpush.bf16.msrb.mxu3 %v14967_v53  ;;  %v15025_v53 = vld [vmem:[%s16067_s11 + $0x3b0] sm:$0xff] }
  0x45   : > { %8845 = vmatpush.bf16.msrb.mxu0 %v14942_v54  ;;  %v15033_v54 = vld [vmem:[%s16067_s11 + $0x3f0] sm:$0xff] }
  0x46   : > { %8858 = vmatpush.bf16.msrb.mxu1 %v14950_v55  ;;  %v15008_v55 = vld [vmem:[%s16067_s11 + $0x328] sm:$0xff] }
  0x47   : > { %8871 = vmatpush.bf16.msrb.mxu2 %v14958_v56  ;;  %v15016_v56 = vld [vmem:[%s16067_s11 + $0x368] sm:$0xff] }
  0x48   : > { %8884 = vmatpush.bf16.msrb.mxu3 %v14966_v57  ;;  %v15024_v57 = vld [vmem:[%s16067_s11 + $0x3a8] sm:$0xff] }
  0x49   : > { %8846 = vmatpush.bf16.msrb.mxu0 %v14941_v58  ;;  %v15032_v58 = vld [vmem:[%s16067_s11 + $0x3e8] sm:$0xff] }
  0x4a   : > { %8859 = vmatpush.bf16.msrb.mxu1 %v14949_v59  ;;  %v15007_v59 = vld [vmem:[%s16067_s11 + $0x320] sm:$0xff] }
  0x4b   : > { %8872 = vmatpush.bf16.msrb.mxu2 %v14957_v60  ;;  %v15015_v60 = vld [vmem:[%s16067_s11 + $0x360] sm:$0xff] }
  0x4c   : > { %8885 = vmatpush.bf16.msrb.mxu3 %v14965_v61  ;;  %v15023_v61 = vld [vmem:[%s16067_s11 + $0x3a0] sm:$0xff] }
  0x4d   : > { %8847 = vmatpush.bf16.msrb.mxu0 %v14940_v62  ;;  %v15031_v62 = vld [vmem:[%s16067_s11 + $0x3e0] sm:$0xff] }
  0x4e   : > { %8860 = vmatpush.bf16.msrb.mxu1 %v14948_v63  ;;  %v15006_v63 = vld [vmem:[%s16067_s11 + $0x318] sm:$0xff] }
  0x4f   : > { %8873 = vmatpush.bf16.msrb.mxu2 %v14956_v0  ;;  %v15014_v0 = vld [vmem:[%s16067_s11 + $0x358] sm:$0xff] }
  0x50   : > { %8886 = vmatpush.bf16.msrb.mxu3 %v14964_v1  ;;  %v15022_v1 = vld [vmem:[%s16067_s11 + $0x398] sm:$0xff] }
  0x51   : > { %8848 = vmatpush.bf16.msrb.mxu0 %v14939_v7  ;;  %v15004_v7 = vld [vmem:[%s16067_s11 + $0x308] sm:$0xff] }
  0x52   : > { %8861 = vmatpush.bf16.msrb.mxu1 %v14947_v8  ;;  %v15012_v8 = vld [vmem:[%s16067_s11 + $0x348] sm:$0xff] }
  0x53   : > { %8874 = vmatpush.bf16.msrb.mxu2 %v14955_v9  ;;  %v15020_v9 = vld [vmem:[%s16067_s11 + $0x388] sm:$0xff] }
  0x54   : > { %8887 = vmatpush.bf16.msrb.mxu3 %v14963_v10  ;;  %8849 = vmatmul.bf16.vlgmr.msrb.gmra.mxu0 %v2363_v3  ;;  %v15005_v3 = vld [vmem:[%s16067_s11 + $0x310] sm:$0xff]  ;;  %v15028_v10 = vld [vmem:[%s16067_s11 + $0x3c8] sm:$0xff] }
  0x55   : > { %8893 = vmatpush.bf16.msra.mxu0 %v14978_v11  ;;  %8862 = vmatmul.bf16.vlgmr.msrb.gmra.mxu1 %v2364_v5  ;;  %v15021_v5 = vld [vmem:[%s16067_s11 + $0x390] sm:$0xff]  ;;  %v2373_v11 = vld [vmem:[#allocation1 + $0x24] sm:$0xff] }
  0x56   : > { %8906 = vmatpush.bf16.msra.mxu1 %v14986_v12  ;;  %8875 = vmatmul.bf16.vlgmr.msrb.gmra.mxu2 %v2365_v2  ;;  %v15030_v2 = vld [vmem:[%s16067_s11 + $0x3d8] sm:$0xff] }
  0x57   : > { %8919 = vmatpush.bf16.msra.mxu2 %v14994_v13  ;;  %8888 = vmatmul.bf16.vlgmr.msrb.gmra.mxu3 %v2366_v4  ;;  %v15013_v4 = vld [vmem:[%s16067_s11 + $0x350] sm:$0xff] }
  0x58   : > { %8932 = vmatpush.bf16.msra.mxu3 %v15002_v14  ;;  %v2375_v12 = vld [vmem:[#allocation1 + $0x36] sm:$0xff]  ;;  %v2374_v13 = vld [vmem:[#allocation1 + $0x2d] sm:$0xff]  ;;  %v2376_v14 = vld [vmem:[#allocation1 + $0x3f] sm:$0xff] }
  0x59   : > { %8894 = vmatpush.bf16.msra.mxu0 %v14977_v15  ;;  %v295_v15 = vld [vmem:[%s16062_s30 + $0x10] sm:$0xff] }
  0x5a   : > { %8907 = vmatpush.bf16.msra.mxu1 %v14985_v16  ;;  %2378 = vst [vmem:[#allocation1] ss:$9 sm:$0xff] %v295_v15  ;;  %v15003_v16 = vld [vmem:[%s16067_s11 + $0x300] sm:$0xff] }
  0x5b   : > { %8920 = vmatpush.bf16.msra.mxu2 %v14993_v17  ;;  %v15011_v17 = vld [vmem:[%s16067_s11 + $0x340] sm:$0xff] }
  0x5c   : > { %8933 = vmatpush.bf16.msra.mxu3 %v15001_v18  ;;  %v15019_v18 = vld [vmem:[%s16067_s11 + $0x380] sm:$0xff] }
  0x5d   : > { %8895 = vmatpush.bf16.msra.mxu0 %v14976_v19  ;;  %v15027_v19 = vld [vmem:[%s16067_s11 + $0x3c0] sm:$0xff] }
  0x5e   : > { %8908 = vmatpush.bf16.msra.mxu1 %v14984_v20  ;;  %v15042_v20 = vld [vmem:[%s16067_s11 + $0x438] sm:$0xff] }
  0x5f   : > { %8921 = vmatpush.bf16.msra.mxu2 %v14992_v21  ;;  %v15050_v21 = vld [vmem:[%s16067_s11 + $0x478] sm:$0xff] }
  0x60   : > { %8934 = vmatpush.bf16.msra.mxu3 %v15000_v22  ;;  %v15058_v22 = vld [vmem:[%s16067_s11 + $0x4b8] sm:$0xff] }
  0x61   : > { %8896 = vmatpush.bf16.msra.mxu0 %v14975_v23  ;;  %v15066_v23 = vld [vmem:[%s16067_s11 + $0x4f8] sm:$0xff] }
  0x62   : > { %8909 = vmatpush.bf16.msra.mxu1 %v14983_v24  ;;  %v15041_v24 = vld [vmem:[%s16067_s11 + $0x430] sm:$0xff] }
  0x63   : > { %8922 = vmatpush.bf16.msra.mxu2 %v14991_v25  ;;  %v15049_v25 = vld [vmem:[%s16067_s11 + $0x470] sm:$0xff] }
  0x64   : > { %8935 = vmatpush.bf16.msra.mxu3 %v14999_v26  ;;  %v15057_v26 = vld [vmem:[%s16067_s11 + $0x4b0] sm:$0xff] }
  0x65   : > { %8897 = vmatpush.bf16.msra.mxu0 %v14974_v27  ;;  %v15065_v27 = vld [vmem:[%s16067_s11 + $0x4f0] sm:$0xff] }
  0x66   : > { %8910 = vmatpush.bf16.msra.mxu1 %v14982_v28  ;;  %v15040_v28 = vld [vmem:[%s16067_s11 + $0x428] sm:$0xff] }
  0x67   : > { %8923 = vmatpush.bf16.msra.mxu2 %v14990_v29  ;;  %v15048_v29 = vld [vmem:[%s16067_s11 + $0x468] sm:$0xff] }
  0x68   : > { %8936 = vmatpush.bf16.msra.mxu3 %v14998_v30  ;;  %v15056_v30 = vld [vmem:[%s16067_s11 + $0x4a8] sm:$0xff] }
  0x69   : > { %8898 = vmatpush.bf16.msra.mxu0 %v14973_v31  ;;  %v15064_v31 = vld [vmem:[%s16067_s11 + $0x4e8] sm:$0xff] }
  0x6a   : > { %8911 = vmatpush.bf16.msra.mxu1 %v14981_v32  ;;  %v15039_v32 = vld [vmem:[%s16067_s11 + $0x420] sm:$0xff] }
  0x6b   : > { %8924 = vmatpush.bf16.msra.mxu2 %v14989_v33  ;;  %v15047_v33 = vld [vmem:[%s16067_s11 + $0x460] sm:$0xff] }
  0x6c   : > { %8937 = vmatpush.bf16.msra.mxu3 %v14997_v34  ;;  %v15055_v34 = vld [vmem:[%s16067_s11 + $0x4a0] sm:$0xff] }
  0x6d   : > { %8899 = vmatpush.bf16.msra.mxu0 %v14972_v35  ;;  %v15063_v35 = vld [vmem:[%s16067_s11 + $0x4e0] sm:$0xff] }
  0x6e   : > { %8912 = vmatpush.bf16.msra.mxu1 %v14980_v36  ;;  %v15038_v36 = vld [vmem:[%s16067_s11 + $0x418] sm:$0xff] }
  0x6f   : > { %8925 = vmatpush.bf16.msra.mxu2 %v14988_v37  ;;  %v15046_v37 = vld [vmem:[%s16067_s11 + $0x458] sm:$0xff] }
  0x70   : > { %8938 = vmatpush.bf16.msra.mxu3 %v14996_v38  ;;  %v15054_v38 = vld [vmem:[%s16067_s11 + $0x498] sm:$0xff] }
  0x71   : > { %8900 = vmatpush.bf16.msra.mxu0 %v14971_v39  ;;  %v15062_v39 = vld [vmem:[%s16067_s11 + $0x4d8] sm:$0xff] }
  0x72   : > { %8913 = vmatpush.bf16.msra.mxu1 %v14979_v40  ;;  %v15037_v40 = vld [vmem:[%s16067_s11 + $0x410] sm:$0xff] }
  0x73   : > { %8926 = vmatpush.bf16.msra.mxu2 %v14987_v41  ;;  %v15045_v41 = vld [vmem:[%s16067_s11 + $0x450] sm:$0xff] }
  0x74   : > { %8939 = vmatpush.bf16.msra.mxu3 %v14995_v42  ;;  %8901 = vmatmul.bf16.vlgmr.msra.gmra.mxu0 %v2369_v47  ;;  %v15053_v42 = vld [vmem:[%s16067_s11 + $0x490] sm:$0xff]  ;;  %v15060_v47 = vld [vmem:[%s16067_s11 + $0x4c8] sm:$0xff] }
  0x75   : > { %8945 = vmatpush.bf16.msrb.mxu0 %v15010_v43  ;;  %8914 = vmatmul.bf16.vlgmr.msra.gmra.mxu1 %v2370_v49  ;;  %v15061_v43 = vld [vmem:[%s16067_s11 + $0x4d0] sm:$0xff]  ;;  %v15043_v49 = vld [vmem:[%s16067_s11 + $0x440] sm:$0xff] }
  0x76   : > { %8958 = vmatpush.bf16.msrb.mxu1 %v15018_v44  ;;  %8927 = vmatmul.bf16.vlgmr.msra.gmra.mxu2 %v2371_v48  ;;  %v15036_v44 = vld [vmem:[%s16067_s11 + $0x408] sm:$0xff]  ;;  %v15035_v48 = vld [vmem:[%s16067_s11 + $0x400] sm:$0xff] }
  0x77   : > { %8971 = vmatpush.bf16.msrb.mxu2 %v15026_v45  ;;  %8940 = vmatmul.bf16.vlgmr.msra.gmra.mxu3 %v2372_v50  ;;  %v15044_v45 = vld [vmem:[%s16067_s11 + $0x448] sm:$0xff]  ;;  %v15051_v50 = vld [vmem:[%s16067_s11 + $0x480] sm:$0xff] }
  0x78   : > { %8984 = vmatpush.bf16.msrb.mxu3 %v15034_v46  ;;  %v15052_v46 = vld [vmem:[%s16067_s11 + $0x488] sm:$0xff] }
  0x79   : > { %8946 = vmatpush.bf16.msrb.mxu0 %v15009_v51  ;;  %v15059_v51 = vld [vmem:[%s16067_s11 + $0x4c0] sm:$0xff] }
  0x7a   : > { %8959 = vmatpush.bf16.msrb.mxu1 %v15017_v52  ;;  %v15074_v52 = vld [vmem:[%s16067_s11 + $0x538] sm:$0xff] }
  0x7b   : > { %8972 = vmatpush.bf16.msrb.mxu2 %v15025_v53  ;;  %v15082_v53 = vld [vmem:[%s16067_s11 + $0x578] sm:$0xff] }
  0x7c   : > { %8985 = vmatpush.bf16.msrb.mxu3 %v15033_v54  ;;  %v15090_v54 = vld [vmem:[%s16067_s11 + $0x5b8] sm:$0xff] }
  0x7d   : > { %8947 = vmatpush.bf16.msrb.mxu0 %v15008_v55  ;;  %v15098_v55 = vld [vmem:[%s16067_s11 + $0x5f8] sm:$0xff] }
  0x7e   : > { %8960 = vmatpush.bf16.msrb.mxu1 %v15016_v56  ;;  %v2379_v56 = vld [vmem:[#allocation1] sm:$0xff] }
  0x7f   : > { %8973 = vmatpush.bf16.msrb.mxu2 %v15024_v57  ;;  %v2381_v57 = vld [vmem:[#allocation1 + $0x12] sm:$0xff] }
  0x80   : > { %8986 = vmatpush.bf16.msrb.mxu3 %v15032_v58  ;;  %v2380_v58 = vld [vmem:[#allocation1 + $0x9] sm:$0xff] }
  0x81   : > { %8948 = vmatpush.bf16.msrb.mxu0 %v15007_v59  ;;  %v2382_v59 = vld [vmem:[#allocation1 + $0x1b] sm:$0xff] }
  0x82   : > { %8961 = vmatpush.bf16.msrb.mxu1 %v15015_v60  ;;  %v15073_v60 = vld [vmem:[%s16067_s11 + $0x530] sm:$0xff] }
  0x83   : > { %8974 = vmatpush.bf16.msrb.mxu2 %v15023_v61  ;;  %v15081_v61 = vld [vmem:[%s16067_s11 + $0x570] sm:$0xff] }
  0x84   : > { %8987 = vmatpush.bf16.msrb.mxu3 %v15031_v62  ;;  %v15089_v62 = vld [vmem:[%s16067_s11 + $0x5b0] sm:$0xff] }
  0x85   : > { %8949 = vmatpush.bf16.msrb.mxu0 %v15006_v63  ;;  %v15097_v63 = vld [vmem:[%s16067_s11 + $0x5f0] sm:$0xff] }
  0x86   : > { %8962 = vmatpush.bf16.msrb.mxu1 %v15014_v0  ;;  %v15072_v0 = vld [vmem:[%s16067_s11 + $0x528] sm:$0xff] }
  0x87   : > { %8975 = vmatpush.bf16.msrb.mxu2 %v15022_v1  ;;  %v15080_v1 = vld [vmem:[%s16067_s11 + $0x568] sm:$0xff] }
  0x88   : > { %8988 = vmatpush.bf16.msrb.mxu3 %v15030_v2  ;;  %v15088_v2 = vld [vmem:[%s16067_s11 + $0x5a8] sm:$0xff] }
  0x89   : > { %8950 = vmatpush.bf16.msrb.mxu0 %v15005_v3  ;;  %v15096_v3 = vld [vmem:[%s16067_s11 + $0x5e8] sm:$0xff] }
  0x8a   : > { %8963 = vmatpush.bf16.msrb.mxu1 %v15013_v4 }
  0x8b   : > { %8976 = vmatpush.bf16.msrb.mxu2 %v15021_v5  ;;  %v15071_v5 = vld [vmem:[%s16067_s11 + $0x520] sm:$0xff] }
  0x8c   : > { %8989 = vmatpush.bf16.msrb.mxu3 %v15029_v6  ;;  %v15079_v6 = vld [vmem:[%s16067_s11 + $0x560] sm:$0xff] }
  0x8d   : > { %8951 = vmatpush.bf16.msrb.mxu0 %v15004_v7 }
  0x8e   : > { %8964 = vmatpush.bf16.msrb.mxu1 %v15012_v8  ;;  %v15087_v8 = vld [vmem:[%s16067_s11 + $0x5a0] sm:$0xff] }
  0x8f   : > { %8977 = vmatpush.bf16.msrb.mxu2 %v15020_v9  ;;  %v15095_v9 = vld [vmem:[%s16067_s11 + $0x5e0] sm:$0xff] }
  0x90   : > { %8990 = vmatpush.bf16.msrb.mxu3 %v15028_v10 }
  0x91   : > { %8952 = vmatpush.bf16.msrb.mxu0 %v15003_v16 }
  0x92   : > { %8965 = vmatpush.bf16.msrb.mxu1 %v15011_v17 }
  0x93   : > { %8978 = vmatpush.bf16.msrb.mxu2 %v15019_v18 }
  0x94   : > { %8991 = vmatpush.bf16.msrb.mxu3 %v15027_v19  ;;  %8953 = vmatmul.bf16.vlgmr.msrb.gmra.mxu0 %v2373_v11  ;;  %v15070_v11 = vld [vmem:[%s16067_s11 + $0x518] sm:$0xff]  ;;  %v15069_v19 = vld [vmem:[%s16067_s11 + $0x510] sm:$0xff] }
  0x95   : > { %8997 = vmatpush.bf16.msra.mxu0 %v15042_v20  ;;  %8966 = vmatmul.bf16.vlgmr.msrb.gmra.mxu1 %v2374_v13  ;;  %v15086_v13 = vld [vmem:[%s16067_s11 + $0x598] sm:$0xff]  ;;  %v15077_v20 = vld [vmem:[%s16067_s11 + $0x550] sm:$0xff] }
  0x96   : > { %9010 = vmatpush.bf16.msra.mxu1 %v15050_v21  ;;  %8979 = vmatmul.bf16.vlgmr.msrb.gmra.mxu2 %v2375_v12  ;;  %v15078_v12 = vld [vmem:[%s16067_s11 + $0x558] sm:$0xff] }
  0x97   : > { %9023 = vmatpush.bf16.msra.mxu2 %v15058_v22  ;;  %8992 = vmatmul.bf16.vlgmr.msrb.gmra.mxu3 %v2376_v14  ;;  %v15094_v14 = vld [vmem:[%s16067_s11 + $0x5d8] sm:$0xff] }
  0x98   : > { %9036 = vmatpush.bf16.msra.mxu3 %v15066_v23  ;;  %v15085_v23 = vld [vmem:[%s16067_s11 + $0x590] sm:$0xff] }
  0x99   : > { %8998 = vmatpush.bf16.msra.mxu0 %v15041_v24  ;;  %v15093_v24 = vld [vmem:[%s16067_s11 + $0x5d0] sm:$0xff] }
  0x9a   : > { %9011 = vmatpush.bf16.msra.mxu1 %v15049_v25  ;;  %v15068_v25 = vld [vmem:[%s16067_s11 + $0x508] sm:$0xff] }
  0x9b   : > { %9024 = vmatpush.bf16.msra.mxu2 %v15057_v26  ;;  %v15076_v26 = vld [vmem:[%s16067_s11 + $0x548] sm:$0xff] }
  0x9c   : > { %9037 = vmatpush.bf16.msra.mxu3 %v15065_v27  ;;  %v15084_v27 = vld [vmem:[%s16067_s11 + $0x588] sm:$0xff] }
  0x9d   : > { %8999 = vmatpush.bf16.msra.mxu0 %v15040_v28  ;;  %v15092_v28 = vld [vmem:[%s16067_s11 + $0x5c8] sm:$0xff] }
  0x9e   : > { %9012 = vmatpush.bf16.msra.mxu1 %v15048_v29  ;;  %v2383_v29 = vld [vmem:[#allocation1 + $0x24] sm:$0xff] }
  0x9f   : > { %9025 = vmatpush.bf16.msra.mxu2 %v15056_v30  ;;  %v2385_v30 = vld [vmem:[#allocation1 + $0x36] sm:$0xff] }
  0xa0   : > { %9038 = vmatpush.bf16.msra.mxu3 %v15064_v31 }
  0xa1   : > { %9000 = vmatpush.bf16.msra.mxu0 %v15039_v32  ;;  %v2384_v32 = vld [vmem:[#allocation1 + $0x2d] sm:$0xff] }
  0xa2   : > { %9013 = vmatpush.bf16.msra.mxu1 %v15047_v33  ;;  %v2386_v33 = vld [vmem:[#allocation1 + $0x3f] sm:$0xff] }
  0xa3   : > { %9026 = vmatpush.bf16.msra.mxu2 %v15055_v34 }
  0xa4   : > { %9039 = vmatpush.bf16.msra.mxu3 %v15063_v35  ;;  %v296_v35 = vld [vmem:[%s16062_s30 + $0x18] sm:$0xff] }
  0xa5   : > { %9001 = vmatpush.bf16.msra.mxu0 %v15038_v36  ;;  %2388 = vst [vmem:[#allocation1] ss:$9 sm:$0xff] %v296_v35  ;;  %v15067_v36 = vld [vmem:[%s16067_s11 + $0x500] sm:$0xff]  ;;  %v15160_v35 = vld [vmem:[%s16067_s11 + $0x7e8] sm:$0xff] }
  0xa6   : > { %9014 = vmatpush.bf16.msra.mxu1 %v15046_v37  ;;  %v15075_v37 = vld [vmem:[%s16067_s11 + $0x540] sm:$0xff] }
  0xa7   : > { %9027 = vmatpush.bf16.msra.mxu2 %v15054_v38  ;;  %v15083_v38 = vld [vmem:[%s16067_s11 + $0x580] sm:$0xff] }
  0xa8   : > { %9040 = vmatpush.bf16.msra.mxu3 %v15062_v39  ;;  %v15091_v39 = vld [vmem:[%s16067_s11 + $0x5c0] sm:$0xff] }
  0xa9   : > { %9002 = vmatpush.bf16.msra.mxu0 %v15037_v40  ;;  %v15106_v40 = vld [vmem:[%s16067_s11 + $0x638] sm:$0xff] }
  0xaa   : > { %9015 = vmatpush.bf16.msra.mxu1 %v15045_v41  ;;  %v15114_v41 = vld [vmem:[%s16067_s11 + $0x678] sm:$0xff] }
  0xab   : > { %9028 = vmatpush.bf16.msra.mxu2 %v15053_v42  ;;  %v15122_v42 = vld [vmem:[%s16067_s11 + $0x6b8] sm:$0xff] }
  0xac   : > { %9041 = vmatpush.bf16.msra.mxu3 %v15061_v43  ;;  %v15130_v43 = vld [vmem:[%s16067_s11 + $0x6f8] sm:$0xff] }
  0xad   : > { %9003 = vmatpush.bf16.msra.mxu0 %v15036_v44  ;;  %v15105_v44 = vld [vmem:[%s16067_s11 + $0x630] sm:$0xff] }
  0xae   : > { %9016 = vmatpush.bf16.msra.mxu1 %v15044_v45  ;;  %v15113_v45 = vld [vmem:[%s16067_s11 + $0x670] sm:$0xff] }
  0xaf   : > { %9029 = vmatpush.bf16.msra.mxu2 %v15052_v46  ;;  %v15121_v46 = vld [vmem:[%s16067_s11 + $0x6b0] sm:$0xff] }
  0xb0   : > { %9042 = vmatpush.bf16.msra.mxu3 %v15060_v47  ;;  %v15129_v47 = vld [vmem:[%s16067_s11 + $0x6f0] sm:$0xff] }
  0xb1   : > { %9004 = vmatpush.bf16.msra.mxu0 %v15035_v48  ;;  %v8798_v4 = vpop.f32.mrf.mxu0  ;;  %v15104_v48 = vld [vmem:[%s16067_s11 + $0x628] sm:$0xff] }
  0xb2   : > { %9017 = vmatpush.bf16.msra.mxu1 %v15043_v49  ;;  %v8811_v7 = vpop.f32.mrf.mxu1  ;;  %v15112_v49 = vld [vmem:[%s16067_s11 + $0x668] sm:$0xff] }
  0xb3   : > { %9030 = vmatpush.bf16.msra.mxu2 %v15051_v50  ;;  %v8812_v10 = vadd.f32 %v8811_v7, %v8798_v4  ;;  %v15120_v50 = vld [vmem:[%s16067_s11 + $0x6a8] sm:$0xff]  ;;  %v15101_v4 = vld [vmem:[%s16067_s11 + $0x610] sm:$0xff] }
  0xb4   : > { %9043 = vmatpush.bf16.msra.mxu3 %v15059_v51  ;;  %9005 = vmatmul.bf16.vlgmr.msra.gmra.mxu0 %v2379_v56  ;;  %v15128_v51 = vld [vmem:[%s16067_s11 + $0x6e8] sm:$0xff] }
  0xb5   : > { %9049 = vmatpush.bf16.msrb.mxu0 %v15074_v52  ;;  %9018 = vmatmul.bf16.vlgmr.msra.gmra.mxu1 %v2380_v58  ;;  %v15127_v58 = vld [vmem:[%s16067_s11 + $0x6e0] sm:$0xff] }
  0xb6   : > { %9062 = vmatpush.bf16.msrb.mxu1 %v15082_v53  ;;  %9031 = vmatmul.bf16.vlgmr.msra.gmra.mxu2 %v2381_v57  ;;  %v15103_v53 = vld [vmem:[%s16067_s11 + $0x620] sm:$0xff] }
  0xb7   : > { %9075 = vmatpush.bf16.msrb.mxu2 %v15090_v54  ;;  %9044 = vmatmul.bf16.vlgmr.msra.gmra.mxu3 %v2382_v59  ;;  %v15111_v54 = vld [vmem:[%s16067_s11 + $0x660] sm:$0xff] }
  0xb8   : > { %9088 = vmatpush.bf16.msrb.mxu3 %v15098_v55  ;;  %v15119_v57 = vld [vmem:[%s16067_s11 + $0x6a0] sm:$0xff] }
  0xb9   : > { %9050 = vmatpush.bf16.msrb.mxu0 %v15073_v60  ;;  %v8824_v15 = vpop.f32.mrf.mxu2  ;;  %v8800_v18 = vpop.f32.mrf.mxu0  ;;  %v15102_v60 = vld [vmem:[%s16067_s11 + $0x618] sm:$0xff] }
  0xba   : > { %9063 = vmatpush.bf16.msrb.mxu1 %v15081_v61  ;;  %v8825_v16 = vadd.f32 %v8824_v15, %v8812_v10  ;;  %v8837_v17 = vpop.f32.mrf.mxu3  ;;  %v8813_v22 = vpop.f32.mrf.mxu1  ;;  %v15110_v61 = vld [vmem:[%s16067_s11 + $0x658] sm:$0xff]  ;;  %v15100_v10 = vld [vmem:[%s16067_s11 + $0x608] sm:$0xff]  ;;  %v15115_v18 = vld [vmem:[%s16067_s11 + $0x680] sm:$0xff] }
  0xbb   : > { %9076 = vmatpush.bf16.msrb.mxu2 %v15089_v62  ;;  %v15118_v62 = vld [vmem:[%s16067_s11 + $0x698] sm:$0xff] }
  0xbc   : > { %9089 = vmatpush.bf16.msrb.mxu3 %v15097_v63  ;;  %v16255_v21 = vadd.f32 %v8837_v17, %v8825_v16  ;;  %v15126_v63 = vld [vmem:[%s16067_s11 + $0x6d8] sm:$0xff]  ;;  %v15099_v16 = vld [vmem:[%s16067_s11 + $0x600] sm:$0xff] }
  0xbd   : > { %9051 = vmatpush.bf16.msrb.mxu0 %v15072_v0  ;;  %v15107_v17 = vld [vmem:[%s16067_s11 + $0x640] sm:$0xff]  ;;  %v15154_v22 = vld [vmem:[%s16067_s11 + $0x7b8] sm:$0xff] }
  0xbe   : > { %9064 = vmatpush.bf16.msrb.mxu1 %v15080_v1 }
  0xbf   : > { %9077 = vmatpush.bf16.msrb.mxu2 %v15088_v2 }
  0xc0   : > { %9090 = vmatpush.bf16.msrb.mxu3 %v15096_v3 }
  0xc1   : > { %9052 = vmatpush.bf16.msrb.mxu0 %v15071_v5  ;;  %v8826_v31 = vpop.f32.mrf.mxu2  ;;  %v15109_v5 = vld [vmem:[%s16067_s11 + $0x650] sm:$0xff] }
  0xc2   : > { %9065 = vmatpush.bf16.msrb.mxu1 %v15079_v6  ;;  %v8839_v34 = vpop.f32.mrf.mxu3  ;;  %v15161_v31 = vld [vmem:[%s16067_s11 + $0x7f0] sm:$0xff] }
  0xc3   : > { %9078 = vmatpush.bf16.msrb.mxu2 %v15087_v8  ;;  %v15117_v8 = vld [vmem:[%s16067_s11 + $0x690] sm:$0xff]  ;;  %v15152_v34 = vld [vmem:[%s16067_s11 + $0x7a8] sm:$0xff] }
  0xc4   : > { %9091 = vmatpush.bf16.msrb.mxu3 %v15095_v9  ;;  %v15125_v9 = vld [vmem:[%s16067_s11 + $0x6d0] sm:$0xff] }
  0xc5   : > { %9053 = vmatpush.bf16.msrb.mxu0 %v15070_v11  ;;  %v15108_v11 = vld [vmem:[%s16067_s11 + $0x648] sm:$0xff] }
  0xc6   : > { %9066 = vmatpush.bf16.msrb.mxu1 %v15078_v12  ;;  %v15116_v12 = vld [vmem:[%s16067_s11 + $0x688] sm:$0xff] }
  0xc7   : > { %9079 = vmatpush.bf16.msrb.mxu2 %v15086_v13  ;;  %v15124_v13 = vld [vmem:[%s16067_s11 + $0x6c8] sm:$0xff] }
  0xc8   : > { %9092 = vmatpush.bf16.msrb.mxu3 %v15094_v14 }
  0xc9   : > { %9054 = vmatpush.bf16.msrb.mxu0 %v15069_v19  ;;  %v15123_v19 = vld [vmem:[%s16067_s11 + $0x6c0] sm:$0xff] }
  0xca   : > { %9067 = vmatpush.bf16.msrb.mxu1 %v15077_v20  ;;  %v15138_v20 = vld [vmem:[%s16067_s11 + $0x738] sm:$0xff] }
  0xcb   : > { %9080 = vmatpush.bf16.msrb.mxu2 %v15085_v23  ;;  %v15162_v23 = vld [vmem:[%s16067_s11 + $0x7f8] sm:$0xff] }
  0xcc   : > { %9093 = vmatpush.bf16.msrb.mxu3 %v15093_v24  ;;  %v2389_v24 = vld [vmem:[#allocation1] sm:$0xff] }
  0xcd   : > { %9055 = vmatpush.bf16.msrb.mxu0 %v15068_v25  ;;  %v2391_v25 = vld [vmem:[#allocation1 + $0x12] sm:$0xff] }
  0xce   : > { %9068 = vmatpush.bf16.msrb.mxu1 %v15076_v26  ;;  %v2390_v26 = vld [vmem:[#allocation1 + $0x9] sm:$0xff] }
  0xcf   : > { %9081 = vmatpush.bf16.msrb.mxu2 %v15084_v27  ;;  %v2392_v27 = vld [vmem:[#allocation1 + $0x1b] sm:$0xff] }
  0xd0   : > { %9094 = vmatpush.bf16.msrb.mxu3 %v15092_v28  ;;  %v15137_v28 = vld [vmem:[%s16067_s11 + $0x730] sm:$0xff] }
  0xd1   : > { %9056 = vmatpush.bf16.msrb.mxu0 %v15067_v36  ;;  %v8850_v52 = vpop.f32.mrf.mxu0 }
  0xd2   : > { %9069 = vmatpush.bf16.msrb.mxu1 %v15075_v37  ;;  %v8851_v55 = vadd.f32 %v8850_v52, %v16255_v21  ;;  %v8863_v56 = vpop.f32.mrf.mxu1  ;;  %v15146_v21 = vld [vmem:[%s16067_s11 + $0x778] sm:$0xff] }
  0xd3   : > { %9082 = vmatpush.bf16.msrb.mxu2 %v15083_v38  ;;  %v15135_v38 = vld [vmem:[%s16067_s11 + $0x720] sm:$0xff] }
  0xd4   : > { %9095 = vmatpush.bf16.msrb.mxu3 %v15091_v39  ;;  %9057 = vmatmul.bf16.vlgmr.msrb.gmra.mxu0 %v2383_v29  ;;  %v8864_v59 = vadd.f32 %v8863_v56, %v8851_v55  ;;  %v15145_v29 = vld [vmem:[%s16067_s11 + $0x770] sm:$0xff]  ;;  %v15143_v39 = vld [vmem:[%s16067_s11 + $0x760] sm:$0xff] }
  0xd5   : > { %9101 = vmatpush.bf16.msra.mxu0 %v15106_v40  ;;  %9070 = vmatmul.bf16.vlgmr.msrb.gmra.mxu1 %v2384_v32  ;;  %v15136_v32 = vld [vmem:[%s16067_s11 + $0x728] sm:$0xff]  ;;  %v15149_v56 = vld [vmem:[%s16067_s11 + $0x790] sm:$0xff] }
  0xd6   : > { %9114 = vmatpush.bf16.msra.mxu1 %v15114_v41  ;;  %9083 = vmatmul.bf16.vlgmr.msrb.gmra.mxu2 %v2385_v30  ;;  %v15153_v30 = vld [vmem:[%s16067_s11 + $0x7b0] sm:$0xff]  ;;  %v15151_v41 = vld [vmem:[%s16067_s11 + $0x7a0] sm:$0xff] }
  0xd7   : > { %9127 = vmatpush.bf16.msra.mxu2 %v15122_v42  ;;  %9096 = vmatmul.bf16.vlgmr.msrb.gmra.mxu3 %v2386_v33  ;;  %v15144_v33 = vld [vmem:[%s16067_s11 + $0x768] sm:$0xff]  ;;  %v15159_v42 = vld [vmem:[%s16067_s11 + $0x7e0] sm:$0xff] }
  0xd8   : > { %9140 = vmatpush.bf16.msra.mxu3 %v15130_v43 }
  0xd9   : > { %9102 = vmatpush.bf16.msra.mxu0 %v15105_v44  ;;  %v8876_v0 = vpop.f32.mrf.mxu2  ;;  %v8852_v3 = vpop.f32.mrf.mxu0  ;;  %v15134_v44 = vld [vmem:[%s16067_s11 + $0x718] sm:$0xff] }
  0xda   : > { %9115 = vmatpush.bf16.msra.mxu1 %v15113_v45  ;;  %v8877_v1 = vadd.f32 %v8876_v0, %v8864_v59  ;;  %v8889_v2 = vpop.f32.mrf.mxu3  ;;  %v8865_v7 = vpop.f32.mrf.mxu1  ;;  %v15142_v45 = vld [vmem:[%s16067_s11 + $0x758] sm:$0xff]  ;;  %v15140_v59 = vld [vmem:[%s16067_s11 + $0x748] sm:$0xff] }
  0xdb   : > { %9128 = vmatpush.bf16.msra.mxu2 %v15121_v46  ;;  %v15150_v46 = vld [vmem:[%s16067_s11 + $0x798] sm:$0xff]  ;;  %v15147_v7 = vld [vmem:[%s16067_s11 + $0x780] sm:$0xff] }
  0xdc   : > { %9141 = vmatpush.bf16.msra.mxu3 %v15129_v47  ;;  %v8890_v6 = vadd.f32 %v8889_v2, %v8877_v1  ;;  %v15158_v47 = vld [vmem:[%s16067_s11 + $0x7d8] sm:$0xff]  ;;  %v2394_v1 = vld [vmem:[#allocation1 + $0x2d] sm:$0xff] }
  0xdd   : > { %9103 = vmatpush.bf16.msra.mxu0 %v15104_v48  ;;  %v2396_v2 = vld [vmem:[#allocation1 + $0x3f] sm:$0xff] }
  0xde   : > { %9116 = vmatpush.bf16.msra.mxu1 %v15112_v49 }
  0xdf   : > { %9129 = vmatpush.bf16.msra.mxu2 %v15120_v50 }
  0xe0   : > { %9142 = vmatpush.bf16.msra.mxu3 %v15128_v51 }
  0xe1   : > { %9104 = vmatpush.bf16.msra.mxu0 %v15103_v53  ;;  %v8878_v14 = vpop.f32.mrf.mxu2  ;;  %v15133_v53 = vld [vmem:[%s16067_s11 + $0x710] sm:$0xff] }
  0xe2   : > { %9117 = vmatpush.bf16.msra.mxu1 %v15111_v54  ;;  %v8891_v15 = vpop.f32.mrf.mxu3  ;;  %v15141_v54 = vld [vmem:[%s16067_s11 + $0x750] sm:$0xff] }
  0xe3   : > { %9130 = vmatpush.bf16.msra.mxu2 %v15119_v57  ;;  %v15157_v57 = vld [vmem:[%s16067_s11 + $0x7d0] sm:$0xff] }
  0xe4   : > { %9143 = vmatpush.bf16.msra.mxu3 %v15127_v58  ;;  %v15132_v58 = vld [vmem:[%s16067_s11 + $0x708] sm:$0xff]  ;;  %v15177_v14 = vld [vmem:[%s16067_s11 + $0x870] sm:$0xff] }
  0xe5   : > { %9105 = vmatpush.bf16.msra.mxu0 %v15102_v60  ;;  %v15148_v60 = vld [vmem:[%s16067_s11 + $0x788] sm:$0xff]  ;;  %v15185_v15 = vld [vmem:[%s16067_s11 + $0x8b0] sm:$0xff] }
  0xe6   : > { %9118 = vmatpush.bf16.msra.mxu1 %v15110_v61  ;;  %v15156_v61 = vld [vmem:[%s16067_s11 + $0x7c8] sm:$0xff] }
  0xe7   : > { %9131 = vmatpush.bf16.msra.mxu2 %v15118_v62  ;;  %v2393_v62 = vld [vmem:[#allocation1 + $0x24] sm:$0xff] }
  0xe8   : > { %9144 = vmatpush.bf16.msra.mxu3 %v15126_v63  ;;  %v2395_v63 = vld [vmem:[#allocation1 + $0x36] sm:$0xff] }
  0xe9   : > { %9106 = vmatpush.bf16.msra.mxu0 %v15101_v4  ;;  %v297_v4 = vld [vmem:[%s16062_s30 + $0x20] sm:$0xff] }
  0xea   : > { %9119 = vmatpush.bf16.msra.mxu1 %v15109_v5  ;;  %2398 = vst [vmem:[#allocation1] ss:$9 sm:$0xff] %v297_v4  ;;  %v15131_v5 = vld [vmem:[%s16067_s11 + $0x700] sm:$0xff]  ;;  %v15224_v4 = vld [vmem:[%s16067_s11 + $0x9e8] sm:$0xff] }
  0xeb   : > { %9132 = vmatpush.bf16.msra.mxu2 %v15117_v8  ;;  %v15155_v8 = vld [vmem:[%s16067_s11 + $0x7c0] sm:$0xff] }
  0xec   : > { %9145 = vmatpush.bf16.msra.mxu3 %v15125_v9  ;;  %v15170_v9 = vld [vmem:[%s16067_s11 + $0x838] sm:$0xff] }
  0xed   : > { %9107 = vmatpush.bf16.msra.mxu0 %v15100_v10  ;;  %v15178_v10 = vld [vmem:[%s16067_s11 + $0x878] sm:$0xff] }
  0xee   : > { %9120 = vmatpush.bf16.msra.mxu1 %v15108_v11  ;;  %v15186_v11 = vld [vmem:[%s16067_s11 + $0x8b8] sm:$0xff] }
  0xef   : > { %9133 = vmatpush.bf16.msra.mxu2 %v15116_v12  ;;  %v15194_v12 = vld [vmem:[%s16067_s11 + $0x8f8] sm:$0xff] }
  0xf0   : > { %9146 = vmatpush.bf16.msra.mxu3 %v15124_v13  ;;  %v15169_v13 = vld [vmem:[%s16067_s11 + $0x830] sm:$0xff] }
  0xf1   : > { %9108 = vmatpush.bf16.msra.mxu0 %v15099_v16  ;;  %v8902_v36 = vpop.f32.mrf.mxu0  ;;  %v15193_v16 = vld [vmem:[%s16067_s11 + $0x8f0] sm:$0xff] }
  0xf2   : > { %9121 = vmatpush.bf16.msra.mxu1 %v15107_v17  ;;  %v8903_v37 = vadd.f32 %v8902_v36, %v8890_v6  ;;  %v8915_v40 = vpop.f32.mrf.mxu1  ;;  %v15139_v6 = vld [vmem:[%s16067_s11 + $0x740] sm:$0xff]  ;;  %v15168_v17 = vld [vmem:[%s16067_s11 + $0x828] sm:$0xff] }
  0xf3   : > { %9134 = vmatpush.bf16.msra.mxu2 %v15115_v18  ;;  %v15176_v18 = vld [vmem:[%s16067_s11 + $0x868] sm:$0xff] }
  0xf4   : > { %9147 = vmatpush.bf16.msra.mxu3 %v15123_v19  ;;  %9109 = vmatmul.bf16.vlgmr.msra.gmra.mxu0 %v2389_v24  ;;  %v8916_v43 = vadd.f32 %v8915_v40, %v8903_v37  ;;  %v15184_v19 = vld [vmem:[%s16067_s11 + $0x8a8] sm:$0xff]  ;;  %v15175_v24 = vld [vmem:[%s16067_s11 + $0x860] sm:$0xff] }
  0xf5   : > { %9153 = vmatpush.bf16.msrb.mxu0 %v15138_v20  ;;  %9122 = vmatmul.bf16.vlgmr.msra.gmra.mxu1 %v2390_v26  ;;  %v15192_v20 = vld [vmem:[%s16067_s11 + $0x8e8] sm:$0xff]  ;;  %v15183_v26 = vld [vmem:[%s16067_s11 + $0x8a0] sm:$0xff] }
  0xf6   : > { %9166 = vmatpush.bf16.msrb.mxu1 %v15146_v21  ;;  %9135 = vmatmul.bf16.vlgmr.msra.gmra.mxu2 %v2391_v25 }
  0xf7   : > { %9179 = vmatpush.bf16.msrb.mxu2 %v15154_v22  ;;  %9148 = vmatmul.bf16.vlgmr.msra.gmra.mxu3 %v2392_v27  ;;  %v15191_v27 = vld [vmem:[%s16067_s11 + $0x8e0] sm:$0xff] }
  0xf8   : > { %9192 = vmatpush.bf16.msrb.mxu3 %v15162_v23  ;;  %v15167_v23 = vld [vmem:[%s16067_s11 + $0x820] sm:$0xff] }
  0xf9   : > { %9154 = vmatpush.bf16.msrb.mxu0 %v15137_v28  ;;  %v8928_v48 = vpop.f32.mrf.mxu2  ;;  %v8904_v51 = vpop.f32.mrf.mxu0 }
  0xfa   : > { %9167 = vmatpush.bf16.msrb.mxu1 %v15145_v29  ;;  %v8929_v49 = vadd.f32 %v8928_v48, %v8916_v43  ;;  %v8941_v50 = vpop.f32.mrf.mxu3  ;;  %v8917_v55 = vpop.f32.mrf.mxu1  ;;  %v15166_v29 = vld [vmem:[%s16067_s11 + $0x818] sm:$0xff]  ;;  %v15164_v43 = vld [vmem:[%s16067_s11 + $0x808] sm:$0xff]  ;;  %v15179_v51 = vld [vmem:[%s16067_s11 + $0x880] sm:$0xff] }
  0xfb   : > { %9180 = vmatpush.bf16.msrb.mxu2 %v15153_v30  ;;  %v15174_v30 = vld [vmem:[%s16067_s11 + $0x858] sm:$0xff] }
  0xfc   : > { %9193 = vmatpush.bf16.msrb.mxu3 %v15161_v31  ;;  %v16321_v52 = vadd.f32 %v8941_v50, %v8929_v49  ;;  %v15182_v31 = vld [vmem:[%s16067_s11 + $0x898] sm:$0xff]  ;;  %v15163_v49 = vld [vmem:[%s16067_s11 + $0x800] sm:$0xff] }
  0xfd   : > { %9155 = vmatpush.bf16.msrb.mxu0 %v15136_v32  ;;  %v15190_v32 = vld [vmem:[%s16067_s11 + $0x8d8] sm:$0xff]  ;;  %v15171_v50 = vld [vmem:[%s16067_s11 + $0x840] sm:$0xff] }
  0xfe   : > { %9168 = vmatpush.bf16.msrb.mxu1 %v15144_v33  ;;  %v15218_v55 = vld [vmem:[%s16067_s11 + $0x9b8] sm:$0xff] }
  0xff   : > { %9181 = vmatpush.bf16.msrb.mxu2 %v15152_v34 }
 0x100   : > { %9194 = vmatpush.bf16.msrb.mxu3 %v15160_v35 }
 0x101   : > { %9156 = vmatpush.bf16.msrb.mxu0 %v15135_v38  ;;  %v8930_v0 = vpop.f32.mrf.mxu2  ;;  %v15165_v38 = vld [vmem:[%s16067_s11 + $0x810] sm:$0xff] }
 0x102   : > { %9169 = vmatpush.bf16.msrb.mxu1 %v15143_v39  ;;  %v8943_v3 = vpop.f32.mrf.mxu3  ;;  %v15173_v39 = vld [vmem:[%s16067_s11 + $0x850] sm:$0xff] }
 0x103   : > { %9182 = vmatpush.bf16.msrb.mxu2 %v15151_v41  ;;  %v15181_v41 = vld [vmem:[%s16067_s11 + $0x890] sm:$0xff]  ;;  %v15216_v3 = vld [vmem:[%s16067_s11 + $0x9a8] sm:$0xff] }
 0x104   : > { %9195 = vmatpush.bf16.msrb.mxu3 %v15159_v42  ;;  %v15189_v42 = vld [vmem:[%s16067_s11 + $0x8d0] sm:$0xff] }
 0x105   : > { %9157 = vmatpush.bf16.msrb.mxu0 %v15134_v44  ;;  %v15172_v44 = vld [vmem:[%s16067_s11 + $0x848] sm:$0xff]  ;;  %v15225_v0 = vld [vmem:[%s16067_s11 + $0x9f0] sm:$0xff] }
 0x106   : > { %9170 = vmatpush.bf16.msrb.mxu1 %v15142_v45  ;;  %v15180_v45 = vld [vmem:[%s16067_s11 + $0x888] sm:$0xff] }
 0x107   : > { %9183 = vmatpush.bf16.msrb.mxu2 %v15150_v46  ;;  %v15188_v46 = vld [vmem:[%s16067_s11 + $0x8c8] sm:$0xff] }
 0x108   : > { %9196 = vmatpush.bf16.msrb.mxu3 %v15158_v47 }
 0x109   : > { %9158 = vmatpush.bf16.msrb.mxu0 %v15133_v53  ;;  %v15202_v53 = vld [vmem:[%s16067_s11 + $0x938] sm:$0xff] }
 0x10a   : > { %9171 = vmatpush.bf16.msrb.mxu1 %v15141_v54  ;;  %v15210_v54 = vld [vmem:[%s16067_s11 + $0x978] sm:$0xff] }
 0x10b   : > { %9184 = vmatpush.bf16.msrb.mxu2 %v15149_v56  ;;  %v15226_v56 = vld [vmem:[%s16067_s11 + $0x9f8] sm:$0xff] }
 0x10c   : > { %9197 = vmatpush.bf16.msrb.mxu3 %v15157_v57  ;;  %v2399_v57 = vld [vmem:[#allocation1] sm:$0xff] }
 0x10d   : > { %9159 = vmatpush.bf16.msrb.mxu0 %v15132_v58  ;;  %v2401_v58 = vld [vmem:[#allocation1 + $0x12] sm:$0xff] }
 0x10e   : > { %9172 = vmatpush.bf16.msrb.mxu1 %v15140_v59  ;;  %v2400_v59 = vld [vmem:[#allocation1 + $0x9] sm:$0xff] }
 0x10f   : > { %9185 = vmatpush.bf16.msrb.mxu2 %v15148_v60  ;;  %v2402_v60 = vld [vmem:[#allocation1 + $0x1b] sm:$0xff] }
 0x110   : > { %9198 = vmatpush.bf16.msrb.mxu3 %v15156_v61  ;;  %v15201_v61 = vld [vmem:[%s16067_s11 + $0x930] sm:$0xff] }
 0x111   : > { %9160 = vmatpush.bf16.msrb.mxu0 %v15131_v5  ;;  %v8954_v21 = vpop.f32.mrf.mxu0 }
 0x112   : > { %9173 = vmatpush.bf16.msrb.mxu1 %v15139_v6  ;;  %v8955_v22 = vadd.f32 %v8954_v21, %v16321_v52  ;;  %v8967_v25 = vpop.f32.mrf.mxu1  ;;  %v15187_v52 = vld [vmem:[%s16067_s11 + $0x8c0] sm:$0xff] }
 0x113   : > { %9186 = vmatpush.bf16.msrb.mxu2 %v15147_v7  ;;  %v15199_v7 = vld [vmem:[%s16067_s11 + $0x920] sm:$0xff] }
 0x114   : > { %9199 = vmatpush.bf16.msrb.mxu3 %v15155_v8  ;;  %9161 = vmatmul.bf16.vlgmr.msrb.gmra.mxu0 %v2393_v62  ;;  %v8968_v28 = vadd.f32 %v8967_v25, %v8955_v22  ;;  %v15209_v62 = vld [vmem:[%s16067_s11 + $0x970] sm:$0xff]  ;;  %v15207_v8 = vld [vmem:[%s16067_s11 + $0x960] sm:$0xff] }
 0x115   : > { %9205 = vmatpush.bf16.msra.mxu0 %v15170_v9  ;;  %9174 = vmatmul.bf16.vlgmr.msrb.gmra.mxu1 %v2394_v1  ;;  %v15200_v1 = vld [vmem:[%s16067_s11 + $0x928] sm:$0xff]  ;;  %v15197_v22 = vld [vmem:[%s16067_s11 + $0x910] sm:$0xff] }
 0x116   : > { %9218 = vmatpush.bf16.msra.mxu1 %v15178_v10  ;;  %9187 = vmatmul.bf16.vlgmr.msrb.gmra.mxu2 %v2395_v63  ;;  %v15217_v63 = vld [vmem:[%s16067_s11 + $0x9b0] sm:$0xff]  ;;  %v15215_v10 = vld [vmem:[%s16067_s11 + $0x9a0] sm:$0xff] }
 0x117   : > { %9231 = vmatpush.bf16.msra.mxu2 %v15186_v11  ;;  %9200 = vmatmul.bf16.vlgmr.msrb.gmra.mxu3 %v2396_v2  ;;  %v15208_v2 = vld [vmem:[%s16067_s11 + $0x968] sm:$0xff]  ;;  %v15223_v11 = vld [vmem:[%s16067_s11 + $0x9e0] sm:$0xff]  ;;  %v15213_v25 = vld [vmem:[%s16067_s11 + $0x990] sm:$0xff] }
 0x118   : > { %9244 = vmatpush.bf16.msra.mxu3 %v15194_v12 }
 0x119   : > { %9206 = vmatpush.bf16.msra.mxu0 %v15169_v13  ;;  %v8980_v33 = vpop.f32.mrf.mxu2  ;;  %v8956_v36 = vpop.f32.mrf.mxu0  ;;  %v15198_v13 = vld [vmem:[%s16067_s11 + $0x918] sm:$0xff] }
 0x11a   : > { %9219 = vmatpush.bf16.msra.mxu1 %v15177_v14  ;;  %v8981_v34 = vadd.f32 %v8980_v33, %v8968_v28  ;;  %v8993_v35 = vpop.f32.mrf.mxu3  ;;  %v8969_v40 = vpop.f32.mrf.mxu1  ;;  %v15206_v14 = vld [vmem:[%s16067_s11 + $0x958] sm:$0xff]  ;;  %v15204_v28 = vld [vmem:[%s16067_s11 + $0x948] sm:$0xff] }
 0x11b   : > { %9232 = vmatpush.bf16.msra.mxu2 %v15185_v15  ;;  %v15214_v15 = vld [vmem:[%s16067_s11 + $0x998] sm:$0xff]  ;;  %v15211_v40 = vld [vmem:[%s16067_s11 + $0x980] sm:$0xff] }
 0x11c   : > { %9245 = vmatpush.bf16.msra.mxu3 %v15193_v16  ;;  %v8994_v37 = vadd.f32 %v8993_v35, %v8981_v34  ;;  %v15222_v16 = vld [vmem:[%s16067_s11 + $0x9d8] sm:$0xff]  ;;  %v2404_v34 = vld [vmem:[#allocation1 + $0x2d] sm:$0xff] }
 0x11d   : > { %9207 = vmatpush.bf16.msra.mxu0 %v15168_v17  ;;  %v2406_v35 = vld [vmem:[#allocation1 + $0x3f] sm:$0xff] }
 0x11e   : > { %9220 = vmatpush.bf16.msra.mxu1 %v15176_v18 }
 0x11f   : > { %9233 = vmatpush.bf16.msra.mxu2 %v15184_v19 }
 0x120   : > { %9246 = vmatpush.bf16.msra.mxu3 %v15192_v20 }
 0x121   : > { %9208 = vmatpush.bf16.msra.mxu0 %v15167_v23  ;;  %v8982_v47 = vpop.f32.mrf.mxu2  ;;  %v15205_v23 = vld [vmem:[%s16067_s11 + $0x950] sm:$0xff] }
 0x122   : > { %9221 = vmatpush.bf16.msra.mxu1 %v15175_v24  ;;  %v8995_v48 = vpop.f32.mrf.mxu3  ;;  %v15241_v47 = vld [vmem:[%s16067_s11 + $0xa70] sm:$0xff] }
 0x123   : > { %9234 = vmatpush.bf16.msra.mxu2 %v15183_v26  ;;  %v15221_v26 = vld [vmem:[%s16067_s11 + $0x9d0] sm:$0xff] }
 0x124   : > { %9247 = vmatpush.bf16.msra.mxu3 %v15191_v27  ;;  %v15196_v27 = vld [vmem:[%s16067_s11 + $0x908] sm:$0xff]  ;;  %v15249_v48 = vld [vmem:[%s16067_s11 + $0xab0] sm:$0xff] }
 0x125   : > { %9209 = vmatpush.bf16.msra.mxu0 %v15166_v29  ;;  %v15212_v29 = vld [vmem:[%s16067_s11 + $0x988] sm:$0xff] }
 0x126   : > { %9222 = vmatpush.bf16.msra.mxu1 %v15174_v30  ;;  %v15220_v30 = vld [vmem:[%s16067_s11 + $0x9c8] sm:$0xff] }
 0x127   : > { %9235 = vmatpush.bf16.msra.mxu2 %v15182_v31  ;;  %v2403_v31 = vld [vmem:[#allocation1 + $0x24] sm:$0xff] }
 0x128   : > { %9248 = vmatpush.bf16.msra.mxu3 %v15190_v32  ;;  %v2405_v32 = vld [vmem:[#allocation1 + $0x36] sm:$0xff] }
 0x129   : > { %9210 = vmatpush.bf16.msra.mxu0 %v15165_v38  ;;  %v15195_v38 = vld [vmem:[%s16067_s11 + $0x900] sm:$0xff] }
 0x12a   : > { %9223 = vmatpush.bf16.msra.mxu1 %v15173_v39  ;;  %v15203_v39 = vld [vmem:[%s16067_s11 + $0x940] sm:$0xff] }
 0x12b   : > { %9236 = vmatpush.bf16.msra.mxu2 %v15181_v41  ;;  %v15219_v41 = vld [vmem:[%s16067_s11 + $0x9c0] sm:$0xff] }
 0x12c   : > { %9249 = vmatpush.bf16.msra.mxu3 %v15189_v42  ;;  %v15234_v42 = vld [vmem:[%s16067_s11 + $0xa38] sm:$0xff] }
 0x12d   : > { %9211 = vmatpush.bf16.msra.mxu0 %v15164_v43  ;;  %v15242_v43 = vld [vmem:[%s16067_s11 + $0xa78] sm:$0xff] }
 0x12e   : > { %9224 = vmatpush.bf16.msra.mxu1 %v15172_v44  ;;  %v15250_v44 = vld [vmem:[%s16067_s11 + $0xab8] sm:$0xff] }
 0x12f   : > { %9237 = vmatpush.bf16.msra.mxu2 %v15180_v45  ;;  %v15258_v45 = vld [vmem:[%s16067_s11 + $0xaf8] sm:$0xff] }
 0x130   : > { %9250 = vmatpush.bf16.msra.mxu3 %v15188_v46  ;;  %v15233_v46 = vld [vmem:[%s16067_s11 + $0xa30] sm:$0xff] }
 0x131   : > { %9212 = vmatpush.bf16.msra.mxu0 %v15163_v49  ;;  %v9006_v5 = vpop.f32.mrf.mxu0  ;;  %v15257_v49 = vld [vmem:[%s16067_s11 + $0xaf0] sm:$0xff] }
 0x132   : > { %9225 = vmatpush.bf16.msra.mxu1 %v15171_v50  ;;  %v9007_v6 = vadd.f32 %v9006_v5, %v8994_v37  ;;  %v9019_v9 = vpop.f32.mrf.mxu1  ;;  %v298_v37 = vld [vmem:[%s16062_s30 + $0x28] sm:$0xff] }
 0x133   : > { %9238 = vmatpush.bf16.msra.mxu2 %v15179_v51  ;;  %2408 = vst [vmem:[#allocation1] ss:$9 sm:$0xff] %v298_v37  ;;  %v15232_v50 = vld [vmem:[%s16067_s11 + $0xa28] sm:$0xff] }
 0x134   : > { %9251 = vmatpush.bf16.msra.mxu3 %v15187_v52  ;;  %9213 = vmatmul.bf16.vlgmr.msra.gmra.mxu0 %v2399_v57  ;;  %v9020_v12 = vadd.f32 %v9019_v9, %v9007_v6  ;;  %v15240_v51 = vld [vmem:[%s16067_s11 + $0xa68] sm:$0xff]  ;;  %v15239_v57 = vld [vmem:[%s16067_s11 + $0xa60] sm:$0xff] }
 0x135   : > { %9257 = vmatpush.bf16.msrb.mxu0 %v15202_v53  ;;  %9226 = vmatmul.bf16.vlgmr.msra.gmra.mxu1 %v2400_v59  ;;  %v15248_v52 = vld [vmem:[%s16067_s11 + $0xaa8] sm:$0xff]  ;;  %v15247_v59 = vld [vmem:[%s16067_s11 + $0xaa0] sm:$0xff] }
 0x136   : > { %9270 = vmatpush.bf16.msrb.mxu1 %v15210_v54  ;;  %9239 = vmatmul.bf16.vlgmr.msra.gmra.mxu2 %v2401_v58  ;;  %v15256_v53 = vld [vmem:[%s16067_s11 + $0xae8] sm:$0xff] }
 0x137   : > { %9283 = vmatpush.bf16.msrb.mxu2 %v15218_v55  ;;  %9252 = vmatmul.bf16.vlgmr.msra.gmra.mxu3 %v2402_v60  ;;  %v15255_v60 = vld [vmem:[%s16067_s11 + $0xae0] sm:$0xff]  ;;  %v15288_v37 = vld [vmem:[%s16067_s11 + $0xbe8] sm:$0xff] }
 0x138   : > { %9296 = vmatpush.bf16.msrb.mxu3 %v15226_v56  ;;  %v15231_v56 = vld [vmem:[%s16067_s11 + $0xa20] sm:$0xff] }
 0x139   : > { %9258 = vmatpush.bf16.msrb.mxu0 %v15201_v61  ;;  %v9032_v17 = vpop.f32.mrf.mxu2  ;;  %v9008_v20 = vpop.f32.mrf.mxu0 }
 0x13a   : > { %9271 = vmatpush.bf16.msrb.mxu1 %v15209_v62  ;;  %v9033_v18 = vadd.f32 %v9032_v17, %v9020_v12  ;;  %v9045_v19 = vpop.f32.mrf.mxu3  ;;  %v9021_v24 = vpop.f32.mrf.mxu1  ;;  %v15230_v62 = vld [vmem:[%s16067_s11 + $0xa18] sm:$0xff]  ;;  %v15228_v12 = vld [vmem:[%s16067_s11 + $0xa08] sm:$0xff]  ;;  %v15243_v20 = vld [vmem:[%s16067_s11 + $0xa80] sm:$0xff] }
 0x13b   : > { %9284 = vmatpush.bf16.msrb.mxu2 %v15217_v63  ;;  %v15238_v63 = vld [vmem:[%s16067_s11 + $0xa58] sm:$0xff] }
 0x13c   : > { %9297 = vmatpush.bf16.msrb.mxu3 %v15225_v0  ;;  %v16389_v21 = vadd.f32 %v9045_v19, %v9033_v18  ;;  %v15246_v0 = vld [vmem:[%s16067_s11 + $0xa98] sm:$0xff]  ;;  %v15227_v18 = vld [vmem:[%s16067_s11 + $0xa00] sm:$0xff] }
 0x13d   : > { %9259 = vmatpush.bf16.msrb.mxu0 %v15200_v1  ;;  %v15254_v1 = vld [vmem:[%s16067_s11 + $0xad8] sm:$0xff]  ;;  %v15235_v19 = vld [vmem:[%s16067_s11 + $0xa40] sm:$0xff] }
 0x13e   : > { %9272 = vmatpush.bf16.msrb.mxu1 %v15208_v2  ;;  %v15282_v24 = vld [vmem:[%s16067_s11 + $0xbb8] sm:$0xff] }
 0x13f   : > { %9285 = vmatpush.bf16.msrb.mxu2 %v15216_v3 }
 0x140   : > { %9298 = vmatpush.bf16.msrb.mxu3 %v15224_v4 }
 0x141   : > { %9260 = vmatpush.bf16.msrb.mxu0 %v15199_v7  ;;  %v9034_v33 = vpop.f32.mrf.mxu2  ;;  %v15229_v7 = vld [vmem:[%s16067_s11 + $0xa10] sm:$0xff] }
 0x142   : > { %9273 = vmatpush.bf16.msrb.mxu1 %v15207_v8  ;;  %v9047_v36 = vpop.f32.mrf.mxu3  ;;  %v15237_v8 = vld [vmem:[%s16067_s11 + $0xa50] sm:$0xff] }
 0x143   : > { %9286 = vmatpush.bf16.msrb.mxu2 %v15215_v10  ;;  %v15245_v10 = vld [vmem:[%s16067_s11 + $0xa90] sm:$0xff]  ;;  %v15280_v36 = vld [vmem:[%s16067_s11 + $0xba8] sm:$0xff] }
 0x144   : > { %9299 = vmatpush.bf16.msrb.mxu3 %v15223_v11  ;;  %v15253_v11 = vld [vmem:[%s16067_s11 + $0xad0] sm:$0xff] }
 0x145   : > { %9261 = vmatpush.bf16.msrb.mxu0 %v15198_v13  ;;  %v15236_v13 = vld [vmem:[%s16067_s11 + $0xa48] sm:$0xff]  ;;  %v15289_v33 = vld [vmem:[%s16067_s11 + $0xbf0] sm:$0xff] }
 0x146   : > { %9274 = vmatpush.bf16.msrb.mxu1 %v15206_v14  ;;  %v15244_v14 = vld [vmem:[%s16067_s11 + $0xa88] sm:$0xff] }
 0x147   : > { %9287 = vmatpush.bf16.msrb.mxu2 %v15214_v15  ;;  %v15252_v15 = vld [vmem:[%s16067_s11 + $0xac8] sm:$0xff] }
 0x148   : > { %9300 = vmatpush.bf16.msrb.mxu3 %v15222_v16 }
 0x149   : > { %9262 = vmatpush.bf16.msrb.mxu0 %v15197_v22  ;;  %v15266_v22 = vld [vmem:[%s16067_s11 + $0xb38] sm:$0xff] }
 0x14a   : > { %9275 = vmatpush.bf16.msrb.mxu1 %v15205_v23  ;;  %v15274_v23 = vld [vmem:[%s16067_s11 + $0xb78] sm:$0xff] }
 0x14b   : > { %9288 = vmatpush.bf16.msrb.mxu2 %v15213_v25  ;;  %v15290_v25 = vld [vmem:[%s16067_s11 + $0xbf8] sm:$0xff] }
 0x14c   : > { %9301 = vmatpush.bf16.msrb.mxu3 %v15221_v26  ;;  %v2409_v26 = vld [vmem:[#allocation1] sm:$0xff] }
 0x14d   : > { %9263 = vmatpush.bf16.msrb.mxu0 %v15196_v27  ;;  %v2411_v27 = vld [vmem:[#allocation1 + $0x12] sm:$0xff] }
 0x14e   : > { %9276 = vmatpush.bf16.msrb.mxu1 %v15204_v28  ;;  %v2410_v28 = vld [vmem:[#allocation1 + $0x9] sm:$0xff] }
 0x14f   : > { %9289 = vmatpush.bf16.msrb.mxu2 %v15212_v29  ;;  %v2412_v29 = vld [vmem:[#allocation1 + $0x1b] sm:$0xff] }
 0x150   : > { %9302 = vmatpush.bf16.msrb.mxu3 %v15220_v30  ;;  %v15265_v30 = vld [vmem:[%s16067_s11 + $0xb30] sm:$0xff] }
 0x151   : > { %9264 = vmatpush.bf16.msrb.mxu0 %v15195_v38  ;;  %v9058_v54 = vpop.f32.mrf.mxu0 }
 0x152   : > { %9277 = vmatpush.bf16.msrb.mxu1 %v15203_v39  ;;  %v9059_v55 = vadd.f32 %v9058_v54, %v16389_v21  ;;  %v9071_v58 = vpop.f32.mrf.mxu1  ;;  %v15251_v21 = vld [vmem:[%s16067_s11 + $0xac0] sm:$0xff] }
 0x153   : > { %9290 = vmatpush.bf16.msrb.mxu2 %v15211_v40  ;;  %v15263_v40 = vld [vmem:[%s16067_s11 + $0xb20] sm:$0xff] }
 0x154   : > { %9303 = vmatpush.bf16.msrb.mxu3 %v15219_v41  ;;  %9265 = vmatmul.bf16.vlgmr.msrb.gmra.mxu0 %v2403_v31  ;;  %v9072_v61 = vadd.f32 %v9071_v58, %v9059_v55  ;;  %v15273_v31 = vld [vmem:[%s16067_s11 + $0xb70] sm:$0xff]  ;;  %v15271_v41 = vld [vmem:[%s16067_s11 + $0xb60] sm:$0xff] }
 0x155   : > { %9309 = vmatpush.bf16.msra.mxu0 %v15234_v42  ;;  %9278 = vmatmul.bf16.vlgmr.msrb.gmra.mxu1 %v2404_v34  ;;  %v15264_v34 = vld [vmem:[%s16067_s11 + $0xb28] sm:$0xff]  ;;  %v15261_v55 = vld [vmem:[%s16067_s11 + $0xb10] sm:$0xff] }
 0x156   : > { %9322 = vmatpush.bf16.msra.mxu1 %v15242_v43  ;;  %9291 = vmatmul.bf16.vlgmr.msrb.gmra.mxu2 %v2405_v32  ;;  %v15281_v32 = vld [vmem:[%s16067_s11 + $0xbb0] sm:$0xff]  ;;  %v15279_v43 = vld [vmem:[%s16067_s11 + $0xba0] sm:$0xff] }
 0x157   : > { %9335 = vmatpush.bf16.msra.mxu2 %v15250_v44  ;;  %9304 = vmatmul.bf16.vlgmr.msrb.gmra.mxu3 %v2406_v35  ;;  %v15272_v35 = vld [vmem:[%s16067_s11 + $0xb68] sm:$0xff]  ;;  %v15287_v44 = vld [vmem:[%s16067_s11 + $0xbe0] sm:$0xff]  ;;  %v15277_v58 = vld [vmem:[%s16067_s11 + $0xb90] sm:$0xff] }
 0x158   : > { %9348 = vmatpush.bf16.msra.mxu3 %v15258_v45 }
 0x159   : > { %9310 = vmatpush.bf16.msra.mxu0 %v15233_v46  ;;  %v9084_v2 = vpop.f32.mrf.mxu2  ;;  %v9060_v5 = vpop.f32.mrf.mxu0  ;;  %v15262_v46 = vld [vmem:[%s16067_s11 + $0xb18] sm:$0xff] }
 0x15a   : > { %9323 = vmatpush.bf16.msra.mxu1 %v15241_v47  ;;  %v9085_v3 = vadd.f32 %v9084_v2, %v9072_v61  ;;  %v9097_v4 = vpop.f32.mrf.mxu3  ;;  %v9073_v9 = vpop.f32.mrf.mxu1  ;;  %v15270_v47 = vld [vmem:[%s16067_s11 + $0xb58] sm:$0xff]  ;;  %v15268_v61 = vld [vmem:[%s16067_s11 + $0xb48] sm:$0xff] }
 0x15b   : > { %9336 = vmatpush.bf16.msra.mxu2 %v15249_v48  ;;  %v15278_v48 = vld [vmem:[%s16067_s11 + $0xb98] sm:$0xff]  ;;  %v15275_v9 = vld [vmem:[%s16067_s11 + $0xb80] sm:$0xff] }
 0x15c   : > { %9349 = vmatpush.bf16.msra.mxu3 %v15257_v49  ;;  %v9098_v6 = vadd.f32 %v9097_v4, %v9085_v3  ;;  %v15286_v49 = vld [vmem:[%s16067_s11 + $0xbd8] sm:$0xff]  ;;  %v2414_v3 = vld [vmem:[#allocation1 + $0x2d] sm:$0xff] }
 0x15d   : > { %9311 = vmatpush.bf16.msra.mxu0 %v15232_v50  ;;  %v2416_v4 = vld [vmem:[#allocation1 + $0x3f] sm:$0xff] }
 0x15e   : > { %9324 = vmatpush.bf16.msra.mxu1 %v15240_v51 }
 0x15f   : > { %9337 = vmatpush.bf16.msra.mxu2 %v15248_v52 }
 0x160   : > { %9350 = vmatpush.bf16.msra.mxu3 %v15256_v53 }
 0x161   : > { %9312 = vmatpush.bf16.msra.mxu0 %v15231_v56  ;;  %v9086_v16 = vpop.f32.mrf.mxu2  ;;  %v15269_v56 = vld [vmem:[%s16067_s11 + $0xb50] sm:$0xff] }
 0x162   : > { %9325 = vmatpush.bf16.msra.mxu1 %v15239_v57  ;;  %v9099_v17 = vpop.f32.mrf.mxu3  ;;  %v15305_v16 = vld [vmem:[%s16067_s11 + $0xc70] sm:$0xff] }
 0x163   : > { %9338 = vmatpush.bf16.msra.mxu2 %v15247_v59  ;;  %v15285_v59 = vld [vmem:[%s16067_s11 + $0xbd0] sm:$0xff] }
 0x164   : > { %9351 = vmatpush.bf16.msra.mxu3 %v15255_v60  ;;  %v15260_v60 = vld [vmem:[%s16067_s11 + $0xb08] sm:$0xff]  ;;  %v15313_v17 = vld [vmem:[%s16067_s11 + $0xcb0] sm:$0xff] }
 0x165   : > { %9313 = vmatpush.bf16.msra.mxu0 %v15230_v62  ;;  %v15276_v62 = vld [vmem:[%s16067_s11 + $0xb88] sm:$0xff] }
 0x166   : > { %9326 = vmatpush.bf16.msra.mxu1 %v15238_v63  ;;  %v15284_v63 = vld [vmem:[%s16067_s11 + $0xbc8] sm:$0xff] }
 0x167   : > { %9339 = vmatpush.bf16.msra.mxu2 %v15246_v0  ;;  %v2413_v0 = vld [vmem:[#allocation1 + $0x24] sm:$0xff] }
 0x168   : > { %9352 = vmatpush.bf16.msra.mxu3 %v15254_v1  ;;  %v2415_v1 = vld [vmem:[#allocation1 + $0x36] sm:$0xff] }
 0x169   : > { %9314 = vmatpush.bf16.msra.mxu0 %v15229_v7  ;;  %v15259_v7 = vld [vmem:[%s16067_s11 + $0xb00] sm:$0xff] }
 0x16a   : > { %9327 = vmatpush.bf16.msra.mxu1 %v15237_v8  ;;  %v15267_v8 = vld [vmem:[%s16067_s11 + $0xb40] sm:$0xff] }
 0x16b   : > { %9340 = vmatpush.bf16.msra.mxu2 %v15245_v10  ;;  %v15283_v10 = vld [vmem:[%s16067_s11 + $0xbc0] sm:$0xff] }
 0x16c   : > { %9353 = vmatpush.bf16.msra.mxu3 %v15253_v11  ;;  %v15298_v11 = vld [vmem:[%s16067_s11 + $0xc38] sm:$0xff] }
 0x16d   : > { %9315 = vmatpush.bf16.msra.mxu0 %v15228_v12  ;;  %v15306_v12 = vld [vmem:[%s16067_s11 + $0xc78] sm:$0xff] }
 0x16e   : > { %9328 = vmatpush.bf16.msra.mxu1 %v15236_v13  ;;  %v15314_v13 = vld [vmem:[%s16067_s11 + $0xcb8] sm:$0xff] }
 0x16f   : > { %9341 = vmatpush.bf16.msra.mxu2 %v15244_v14  ;;  %v15322_v14 = vld [vmem:[%s16067_s11 + $0xcf8] sm:$0xff] }
 0x170   : > { %9354 = vmatpush.bf16.msra.mxu3 %v15252_v15  ;;  %v15297_v15 = vld [vmem:[%s16067_s11 + $0xc30] sm:$0xff] }
 0x171   : > { %9316 = vmatpush.bf16.msra.mxu0 %v15227_v18  ;;  %v9110_v38 = vpop.f32.mrf.mxu0  ;;  %v15321_v18 = vld [vmem:[%s16067_s11 + $0xcf0] sm:$0xff] }
 0x172   : > { %9329 = vmatpush.bf16.msra.mxu1 %v15235_v19  ;;  %v9111_v39 = vadd.f32 %v9110_v38, %v9098_v6  ;;  %v9123_v42 = vpop.f32.mrf.mxu1  ;;  %v299_v6 = vld [vmem:[%s16062_s30 + $0x30] sm:$0xff]  ;;  %v15296_v19 = vld [vmem:[%s16067_s11 + $0xc28] sm:$0xff] }
 0x173   : > { %9342 = vmatpush.bf16.msra.mxu2 %v15243_v20  ;;  %2418 = vst [vmem:[#allocation1] ss:$9 sm:$0xff] %v299_v6  ;;  %v15304_v20 = vld [vmem:[%s16067_s11 + $0xc68] sm:$0xff] }
 0x174   : > { %9355 = vmatpush.bf16.msra.mxu3 %v15251_v21  ;;  %9317 = vmatmul.bf16.vlgmr.msra.gmra.mxu0 %v2409_v26  ;;  %v9124_v45 = vadd.f32 %v9123_v42, %v9111_v39  ;;  %v15312_v21 = vld [vmem:[%s16067_s11 + $0xca8] sm:$0xff]  ;;  %v15303_v26 = vld [vmem:[%s16067_s11 + $0xc60] sm:$0xff] }
 0x175   : > { %9361 = vmatpush.bf16.msrb.mxu0 %v15266_v22  ;;  %9330 = vmatmul.bf16.vlgmr.msra.gmra.mxu1 %v2410_v28  ;;  %v15320_v22 = vld [vmem:[%s16067_s11 + $0xce8] sm:$0xff]  ;;  %v15311_v28 = vld [vmem:[%s16067_s11 + $0xca0] sm:$0xff] }
 0x176   : > { %9374 = vmatpush.bf16.msrb.mxu1 %v15274_v23  ;;  %9343 = vmatmul.bf16.vlgmr.msra.gmra.mxu2 %v2411_v27  ;;  %v15352_v6 = vld [vmem:[%s16067_s11 + $0xde8] sm:$0xff] }
 0x177   : > { %9387 = vmatpush.bf16.msrb.mxu2 %v15282_v24  ;;  %9356 = vmatmul.bf16.vlgmr.msra.gmra.mxu3 %v2412_v29  ;;  %v15319_v29 = vld [vmem:[%s16067_s11 + $0xce0] sm:$0xff] }
 0x178   : > { %9400 = vmatpush.bf16.msrb.mxu3 %v15290_v25  ;;  %v15295_v25 = vld [vmem:[%s16067_s11 + $0xc20] sm:$0xff] }
 0x179   : > { %9362 = vmatpush.bf16.msrb.mxu0 %v15265_v30  ;;  %v9136_v50 = vpop.f32.mrf.mxu2  ;;  %v9112_v53 = vpop.f32.mrf.mxu0 }
 0x17a   : > { %9375 = vmatpush.bf16.msrb.mxu1 %v15273_v31  ;;  %v9137_v51 = vadd.f32 %v9136_v50, %v9124_v45  ;;  %v9149_v52 = vpop.f32.mrf.mxu3  ;;  %v9125_v57 = vpop.f32.mrf.mxu1  ;;  %v15294_v31 = vld [vmem:[%s16067_s11 + $0xc18] sm:$0xff]  ;;  %v15292_v45 = vld [vmem:[%s16067_s11 + $0xc08] sm:$0xff]  ;;  %v15307_v53 = vld [vmem:[%s16067_s11 + $0xc80] sm:$0xff] }
 0x17b   : > { %9388 = vmatpush.bf16.msrb.mxu2 %v15281_v32  ;;  %v15302_v32 = vld [vmem:[%s16067_s11 + $0xc58] sm:$0xff] }
 0x17c   : > { %9401 = vmatpush.bf16.msrb.mxu3 %v15289_v33  ;;  %v16457_v54 = vadd.f32 %v9149_v52, %v9137_v51  ;;  %v15310_v33 = vld [vmem:[%s16067_s11 + $0xc98] sm:$0xff]  ;;  %v15291_v51 = vld [vmem:[%s16067_s11 + $0xc00] sm:$0xff] }
 0x17d   : > { %9363 = vmatpush.bf16.msrb.mxu0 %v15264_v34  ;;  %v15318_v34 = vld [vmem:[%s16067_s11 + $0xcd8] sm:$0xff]  ;;  %v15299_v52 = vld [vmem:[%s16067_s11 + $0xc40] sm:$0xff] }
 0x17e   : > { %9376 = vmatpush.bf16.msrb.mxu1 %v15272_v35  ;;  %v15346_v57 = vld [vmem:[%s16067_s11 + $0xdb8] sm:$0xff] }
 0x17f   : > { %9389 = vmatpush.bf16.msrb.mxu2 %v15280_v36 }
 0x180   : > { %9402 = vmatpush.bf16.msrb.mxu3 %v15288_v37 }
 0x181   : > { %9364 = vmatpush.bf16.msrb.mxu0 %v15263_v40  ;;  %v9138_v2 = vpop.f32.mrf.mxu2  ;;  %v15293_v40 = vld [vmem:[%s16067_s11 + $0xc10] sm:$0xff] }
 0x182   : > { %9377 = vmatpush.bf16.msrb.mxu1 %v15271_v41  ;;  %v9151_v5 = vpop.f32.mrf.mxu3  ;;  %v15301_v41 = vld [vmem:[%s16067_s11 + $0xc50] sm:$0xff] }
 0x183   : > { %9390 = vmatpush.bf16.msrb.mxu2 %v15279_v43  ;;  %v15309_v43 = vld [vmem:[%s16067_s11 + $0xc90] sm:$0xff]  ;;  %v15344_v5 = vld [vmem:[%s16067_s11 + $0xda8] sm:$0xff] }
 0x184   : > { %9403 = vmatpush.bf16.msrb.mxu3 %v15287_v44  ;;  %v15317_v44 = vld [vmem:[%s16067_s11 + $0xcd0] sm:$0xff] }
 0x185   : > { %9365 = vmatpush.bf16.msrb.mxu0 %v15262_v46  ;;  %v15300_v46 = vld [vmem:[%s16067_s11 + $0xc48] sm:$0xff]  ;;  %v15353_v2 = vld [vmem:[%s16067_s11 + $0xdf0] sm:$0xff] }
 0x186   : > { %9378 = vmatpush.bf16.msrb.mxu1 %v15270_v47  ;;  %v15308_v47 = vld [vmem:[%s16067_s11 + $0xc88] sm:$0xff] }
 0x187   : > { %9391 = vmatpush.bf16.msrb.mxu2 %v15278_v48  ;;  %v15316_v48 = vld [vmem:[%s16067_s11 + $0xcc8] sm:$0xff] }
 0x188   : > { %9404 = vmatpush.bf16.msrb.mxu3 %v15286_v49 }
 0x189   : > { %9366 = vmatpush.bf16.msrb.mxu0 %v15261_v55  ;;  %v15330_v55 = vld [vmem:[%s16067_s11 + $0xd38] sm:$0xff] }
 0x18a   : > { %9379 = vmatpush.bf16.msrb.mxu1 %v15269_v56  ;;  %v15338_v56 = vld [vmem:[%s16067_s11 + $0xd78] sm:$0xff] }
 0x18b   : > { %9392 = vmatpush.bf16.msrb.mxu2 %v15277_v58  ;;  %v15354_v58 = vld [vmem:[%s16067_s11 + $0xdf8] sm:$0xff] }
 0x18c   : > { %9405 = vmatpush.bf16.msrb.mxu3 %v15285_v59  ;;  %v2419_v59 = vld [vmem:[#allocation1] sm:$0xff] }
 0x18d   : > { %9367 = vmatpush.bf16.msrb.mxu0 %v15260_v60  ;;  %v2421_v60 = vld [vmem:[#allocation1 + $0x12] sm:$0xff] }
 0x18e   : > { %9380 = vmatpush.bf16.msrb.mxu1 %v15268_v61  ;;  %v2420_v61 = vld [vmem:[#allocation1 + $0x9] sm:$0xff] }
 0x18f   : > { %9393 = vmatpush.bf16.msrb.mxu2 %v15276_v62  ;;  %v2422_v62 = vld [vmem:[#allocation1 + $0x1b] sm:$0xff] }
 0x190   : > { %9406 = vmatpush.bf16.msrb.mxu3 %v15284_v63  ;;  %v15329_v63 = vld [vmem:[%s16067_s11 + $0xd30] sm:$0xff] }
 0x191   : > { %9368 = vmatpush.bf16.msrb.mxu0 %v15259_v7  ;;  %v9162_v23 = vpop.f32.mrf.mxu0 }
 0x192   : > { %9381 = vmatpush.bf16.msrb.mxu1 %v15267_v8  ;;  %v9163_v24 = vadd.f32 %v9162_v23, %v16457_v54  ;;  %v9175_v27 = vpop.f32.mrf.mxu1  ;;  %v15315_v54 = vld [vmem:[%s16067_s11 + $0xcc0] sm:$0xff] }
 0x193   : > { %9394 = vmatpush.bf16.msrb.mxu2 %v15275_v9  ;;  %v15327_v9 = vld [vmem:[%s16067_s11 + $0xd20] sm:$0xff] }
 0x194   : > { %9407 = vmatpush.bf16.msrb.mxu3 %v15283_v10  ;;  %9369 = vmatmul.bf16.vlgmr.msrb.gmra.mxu0 %v2413_v0  ;;  %v9176_v30 = vadd.f32 %v9175_v27, %v9163_v24  ;;  %v15337_v0 = vld [vmem:[%s16067_s11 + $0xd70] sm:$0xff]  ;;  %v15335_v10 = vld [vmem:[%s16067_s11 + $0xd60] sm:$0xff] }
 0x195   : > { %9413 = vmatpush.bf16.msra.mxu0 %v15298_v11  ;;  %9382 = vmatmul.bf16.vlgmr.msrb.gmra.mxu1 %v2414_v3  ;;  %v15328_v3 = vld [vmem:[%s16067_s11 + $0xd28] sm:$0xff]  ;;  %v15325_v24 = vld [vmem:[%s16067_s11 + $0xd10] sm:$0xff] }
 0x196   : > { %9426 = vmatpush.bf16.msra.mxu1 %v15306_v12  ;;  %9395 = vmatmul.bf16.vlgmr.msrb.gmra.mxu2 %v2415_v1  ;;  %v15345_v1 = vld [vmem:[%s16067_s11 + $0xdb0] sm:$0xff]  ;;  %v15343_v12 = vld [vmem:[%s16067_s11 + $0xda0] sm:$0xff] }
 0x197   : > { %9439 = vmatpush.bf16.msra.mxu2 %v15314_v13  ;;  %9408 = vmatmul.bf16.vlgmr.msrb.gmra.mxu3 %v2416_v4  ;;  %v15336_v4 = vld [vmem:[%s16067_s11 + $0xd68] sm:$0xff]  ;;  %v15351_v13 = vld [vmem:[%s16067_s11 + $0xde0] sm:$0xff]  ;;  %v15341_v27 = vld [vmem:[%s16067_s11 + $0xd90] sm:$0xff] }
 0x198   : > { %9452 = vmatpush.bf16.msra.mxu3 %v15322_v14 }
 0x199   : > { %9414 = vmatpush.bf16.msra.mxu0 %v15297_v15  ;;  %v9188_v35 = vpop.f32.mrf.mxu2  ;;  %v9164_v38 = vpop.f32.mrf.mxu0  ;;  %v15326_v15 = vld [vmem:[%s16067_s11 + $0xd18] sm:$0xff] }
 0x19a   : > { %9427 = vmatpush.bf16.msra.mxu1 %v15305_v16  ;;  %v9189_v36 = vadd.f32 %v9188_v35, %v9176_v30  ;;  %v9201_v37 = vpop.f32.mrf.mxu3  ;;  %v9177_v42 = vpop.f32.mrf.mxu1  ;;  %v15334_v16 = vld [vmem:[%s16067_s11 + $0xd58] sm:$0xff]  ;;  %v15332_v30 = vld [vmem:[%s16067_s11 + $0xd48] sm:$0xff] }
 0x19b   : > { %9440 = vmatpush.bf16.msra.mxu2 %v15313_v17  ;;  %v15342_v17 = vld [vmem:[%s16067_s11 + $0xd98] sm:$0xff]  ;;  %v15339_v42 = vld [vmem:[%s16067_s11 + $0xd80] sm:$0xff] }
 0x19c   : > { %9453 = vmatpush.bf16.msra.mxu3 %v15321_v18  ;;  %v9202_v39 = vadd.f32 %v9201_v37, %v9189_v36  ;;  %v15350_v18 = vld [vmem:[%s16067_s11 + $0xdd8] sm:$0xff]  ;;  %v2424_v36 = vld [vmem:[#allocation1 + $0x2d] sm:$0xff] }
 0x19d   : > { %9415 = vmatpush.bf16.msra.mxu0 %v15296_v19  ;;  %v2426_v37 = vld [vmem:[#allocation1 + $0x3f] sm:$0xff] }
 0x19e   : > { %9428 = vmatpush.bf16.msra.mxu1 %v15304_v20 }
 0x19f   : > { %9441 = vmatpush.bf16.msra.mxu2 %v15312_v21 }
 0x1a0   : > { %9454 = vmatpush.bf16.msra.mxu3 %v15320_v22 }
 0x1a1   : > { %9416 = vmatpush.bf16.msra.mxu0 %v15295_v25  ;;  %v9190_v49 = vpop.f32.mrf.mxu2  ;;  %v15333_v25 = vld [vmem:[%s16067_s11 + $0xd50] sm:$0xff] }
 0x1a2   : > { %9429 = vmatpush.bf16.msra.mxu1 %v15303_v26  ;;  %v9203_v50 = vpop.f32.mrf.mxu3  ;;  %v15369_v49 = vld [vmem:[%s16067_s11 + $0xe70] sm:$0xff] }
 0x1a3   : > { %9442 = vmatpush.bf16.msra.mxu2 %v15311_v28  ;;  %v15349_v28 = vld [vmem:[%s16067_s11 + $0xdd0] sm:$0xff] }
 0x1a4   : > { %9455 = vmatpush.bf16.msra.mxu3 %v15319_v29  ;;  %v15324_v29 = vld [vmem:[%s16067_s11 + $0xd08] sm:$0xff]  ;;  %v15377_v50 = vld [vmem:[%s16067_s11 + $0xeb0] sm:$0xff] }
 0x1a5   : > { %9417 = vmatpush.bf16.msra.mxu0 %v15294_v31  ;;  %v15340_v31 = vld [vmem:[%s16067_s11 + $0xd88] sm:$0xff] }
 0x1a6   : > { %9430 = vmatpush.bf16.msra.mxu1 %v15302_v32  ;;  %v15348_v32 = vld [vmem:[%s16067_s11 + $0xdc8] sm:$0xff] }
 0x1a7   : > { %9443 = vmatpush.bf16.msra.mxu2 %v15310_v33  ;;  %v2423_v33 = vld [vmem:[#allocation1 + $0x24] sm:$0xff] }
 0x1a8   : > { %9456 = vmatpush.bf16.msra.mxu3 %v15318_v34  ;;  %v2425_v34 = vld [vmem:[#allocation1 + $0x36] sm:$0xff] }
 0x1a9   : > { %9418 = vmatpush.bf16.msra.mxu0 %v15293_v40  ;;  %v15323_v40 = vld [vmem:[%s16067_s11 + $0xd00] sm:$0xff] }
 0x1aa   : > { %9431 = vmatpush.bf16.msra.mxu1 %v15301_v41  ;;  %v15331_v41 = vld [vmem:[%s16067_s11 + $0xd40] sm:$0xff] }
 0x1ab   : > { %9444 = vmatpush.bf16.msra.mxu2 %v15309_v43  ;;  %v15347_v43 = vld [vmem:[%s16067_s11 + $0xdc0] sm:$0xff] }
 0x1ac   : > { %9457 = vmatpush.bf16.msra.mxu3 %v15317_v44  ;;  %v15362_v44 = vld [vmem:[%s16067_s11 + $0xe38] sm:$0xff] }
 0x1ad   : > { %9419 = vmatpush.bf16.msra.mxu0 %v15292_v45  ;;  %v15370_v45 = vld [vmem:[%s16067_s11 + $0xe78] sm:$0xff] }
 0x1ae   : > { %9432 = vmatpush.bf16.msra.mxu1 %v15300_v46  ;;  %v15378_v46 = vld [vmem:[%s16067_s11 + $0xeb8] sm:$0xff] }
 0x1af   : > { %9445 = vmatpush.bf16.msra.mxu2 %v15308_v47  ;;  %v15386_v47 = vld [vmem:[%s16067_s11 + $0xef8] sm:$0xff] }
 0x1b0   : > { %9458 = vmatpush.bf16.msra.mxu3 %v15316_v48  ;;  %v15361_v48 = vld [vmem:[%s16067_s11 + $0xe30] sm:$0xff] }
 0x1b1   : > { %9420 = vmatpush.bf16.msra.mxu0 %v15291_v51  ;;  %v9214_v7 = vpop.f32.mrf.mxu0  ;;  %v15385_v51 = vld [vmem:[%s16067_s11 + $0xef0] sm:$0xff] }
 0x1b2   : > { %9433 = vmatpush.bf16.msra.mxu1 %v15299_v52  ;;  %v9215_v8 = vadd.f32 %v9214_v7, %v9202_v39  ;;  %v9227_v11 = vpop.f32.mrf.mxu1  ;;  %v300_v39 = vld [vmem:[%s16062_s30 + $0x38] sm:$0xff]  ;;  %v15360_v52 = vld [vmem:[%s16067_s11 + $0xe28] sm:$0xff] }
 0x1b3   : > { %9446 = vmatpush.bf16.msra.mxu2 %v15307_v53  ;;  %2428 = vst [vmem:[#allocation1] ss:$9 sm:$0xff] %v300_v39  ;;  %v15368_v53 = vld [vmem:[%s16067_s11 + $0xe68] sm:$0xff] }
 0x1b4   : > { %9459 = vmatpush.bf16.msra.mxu3 %v15315_v54  ;;  %9421 = vmatmul.bf16.vlgmr.msra.gmra.mxu0 %v2419_v59  ;;  %v9228_v14 = vadd.f32 %v9227_v11, %v9215_v8  ;;  %v15376_v54 = vld [vmem:[%s16067_s11 + $0xea8] sm:$0xff]  ;;  %v15367_v59 = vld [vmem:[%s16067_s11 + $0xe60] sm:$0xff] }
 0x1b5   : > { %9465 = vmatpush.bf16.msrb.mxu0 %v15330_v55  ;;  %9434 = vmatmul.bf16.vlgmr.msra.gmra.mxu1 %v2420_v61  ;;  %v15384_v55 = vld [vmem:[%s16067_s11 + $0xee8] sm:$0xff]  ;;  %v15375_v61 = vld [vmem:[%s16067_s11 + $0xea0] sm:$0xff] }
 0x1b6   : > { %9478 = vmatpush.bf16.msrb.mxu1 %v15338_v56  ;;  %9447 = vmatmul.bf16.vlgmr.msra.gmra.mxu2 %v2421_v60  ;;  %v15416_v39 = vld [vmem:[%s16067_s11 + $0xfe8] sm:$0xff] }
 0x1b7   : > { %9491 = vmatpush.bf16.msrb.mxu2 %v15346_v57  ;;  %9460 = vmatmul.bf16.vlgmr.msra.gmra.mxu3 %v2422_v62  ;;  %v15383_v62 = vld [vmem:[%s16067_s11 + $0xee0] sm:$0xff] }
 0x1b8   : > { %9504 = vmatpush.bf16.msrb.mxu3 %v15354_v58  ;;  %v15359_v58 = vld [vmem:[%s16067_s11 + $0xe20] sm:$0xff] }
 0x1b9   : > { %9466 = vmatpush.bf16.msrb.mxu0 %v15329_v63  ;;  %v9240_v19 = vpop.f32.mrf.mxu2  ;;  %v9216_v22 = vpop.f32.mrf.mxu0 }
 0x1ba   : > { %9479 = vmatpush.bf16.msrb.mxu1 %v15337_v0  ;;  %v9241_v20 = vadd.f32 %v9240_v19, %v9228_v14  ;;  %v9253_v21 = vpop.f32.mrf.mxu3  ;;  %v9229_v26 = vpop.f32.mrf.mxu1  ;;  %v15358_v0 = vld [vmem:[%s16067_s11 + $0xe18] sm:$0xff]  ;;  %v15356_v14 = vld [vmem:[%s16067_s11 + $0xe08] sm:$0xff]  ;;  %v15371_v22 = vld [vmem:[%s16067_s11 + $0xe80] sm:$0xff] }
 0x1bb   : > { %9492 = vmatpush.bf16.msrb.mxu2 %v15345_v1  ;;  %v15366_v1 = vld [vmem:[%s16067_s11 + $0xe58] sm:$0xff] }
 0x1bc   : > { %9505 = vmatpush.bf16.msrb.mxu3 %v15353_v2  ;;  %v16525_v23 = vadd.f32 %v9253_v21, %v9241_v20  ;;  %v15374_v2 = vld [vmem:[%s16067_s11 + $0xe98] sm:$0xff]  ;;  %v15355_v20 = vld [vmem:[%s16067_s11 + $0xe00] sm:$0xff] }
 0x1bd   : > { %9467 = vmatpush.bf16.msrb.mxu0 %v15328_v3  ;;  %v15382_v3 = vld [vmem:[%s16067_s11 + $0xed8] sm:$0xff]  ;;  %v15363_v21 = vld [vmem:[%s16067_s11 + $0xe40] sm:$0xff] }
 0x1be   : > { %9480 = vmatpush.bf16.msrb.mxu1 %v15336_v4  ;;  %v15410_v26 = vld [vmem:[%s16067_s11 + $0xfb8] sm:$0xff] }
 0x1bf   : > { %9493 = vmatpush.bf16.msrb.mxu2 %v15344_v5 }
 0x1c0   : > { %9506 = vmatpush.bf16.msrb.mxu3 %v15352_v6 }
 0x1c1   : > { %9468 = vmatpush.bf16.msrb.mxu0 %v15327_v9  ;;  %v9242_v35 = vpop.f32.mrf.mxu2  ;;  %v15357_v9 = vld [vmem:[%s16067_s11 + $0xe10] sm:$0xff] }
 0x1c2   : > { %9481 = vmatpush.bf16.msrb.mxu1 %v15335_v10  ;;  %v9255_v38 = vpop.f32.mrf.mxu3  ;;  %v15365_v10 = vld [vmem:[%s16067_s11 + $0xe50] sm:$0xff] }
 0x1c3   : > { %9494 = vmatpush.bf16.msrb.mxu2 %v15343_v12  ;;  %v15373_v12 = vld [vmem:[%s16067_s11 + $0xe90] sm:$0xff]  ;;  %v15408_v38 = vld [vmem:[%s16067_s11 + $0xfa8] sm:$0xff] }
 0x1c4   : > { %9507 = vmatpush.bf16.msrb.mxu3 %v15351_v13  ;;  %v15381_v13 = vld [vmem:[%s16067_s11 + $0xed0] sm:$0xff] }
 0x1c5   : > { %9469 = vmatpush.bf16.msrb.mxu0 %v15326_v15  ;;  %v15364_v15 = vld [vmem:[%s16067_s11 + $0xe48] sm:$0xff]  ;;  %v15417_v35 = vld [vmem:[%s16067_s11 + $0xff0] sm:$0xff] }
 0x1c6   : > { %9482 = vmatpush.bf16.msrb.mxu1 %v15334_v16  ;;  %v15372_v16 = vld [vmem:[%s16067_s11 + $0xe88] sm:$0xff] }
 0x1c7   : > { %9495 = vmatpush.bf16.msrb.mxu2 %v15342_v17  ;;  %v15380_v17 = vld [vmem:[%s16067_s11 + $0xec8] sm:$0xff] }
 0x1c8   : > { %9508 = vmatpush.bf16.msrb.mxu3 %v15350_v18 }
 0x1c9   : > { %9470 = vmatpush.bf16.msrb.mxu0 %v15325_v24  ;;  %v15394_v24 = vld [vmem:[%s16067_s11 + $0xf38] sm:$0xff] }
 0x1ca   : > { %9483 = vmatpush.bf16.msrb.mxu1 %v15333_v25  ;;  %v15402_v25 = vld [vmem:[%s16067_s11 + $0xf78] sm:$0xff] }
 0x1cb   : > { %9496 = vmatpush.bf16.msrb.mxu2 %v15341_v27  ;;  %v15418_v27 = vld [vmem:[%s16067_s11 + $0xff8] sm:$0xff] }
 0x1cc   : > { %9509 = vmatpush.bf16.msrb.mxu3 %v15349_v28  ;;  %v2429_v28 = vld [vmem:[#allocation1] sm:$0xff] }
 0x1cd   : > { %9471 = vmatpush.bf16.msrb.mxu0 %v15324_v29  ;;  %v2431_v29 = vld [vmem:[#allocation1 + $0x12] sm:$0xff] }
 0x1ce   : > { %9484 = vmatpush.bf16.msrb.mxu1 %v15332_v30  ;;  %v2430_v30 = vld [vmem:[#allocation1 + $0x9] sm:$0xff] }
 0x1cf   : > { %9497 = vmatpush.bf16.msrb.mxu2 %v15340_v31  ;;  %v2432_v31 = vld [vmem:[#allocation1 + $0x1b] sm:$0xff] }
 0x1d0   : > { %9510 = vmatpush.bf16.msrb.mxu3 %v15348_v32  ;;  %v15393_v32 = vld [vmem:[%s16067_s11 + $0xf30] sm:$0xff] }
 0x1d1   : > { %9472 = vmatpush.bf16.msrb.mxu0 %v15323_v40  ;;  %v9266_v56 = vpop.f32.mrf.mxu0 }
 0x1d2   : > { %9485 = vmatpush.bf16.msrb.mxu1 %v15331_v41  ;;  %v9267_v57 = vadd.f32 %v9266_v56, %v16525_v23  ;;  %v9279_v60 = vpop.f32.mrf.mxu1  ;;  %v15379_v23 = vld [vmem:[%s16067_s11 + $0xec0] sm:$0xff] }
 0x1d3   : > { %9498 = vmatpush.bf16.msrb.mxu2 %v15339_v42  ;;  %v15391_v42 = vld [vmem:[%s16067_s11 + $0xf20] sm:$0xff] }
 0x1d4   : > { %9511 = vmatpush.bf16.msrb.mxu3 %v15347_v43  ;;  %9473 = vmatmul.bf16.vlgmr.msrb.gmra.mxu0 %v2423_v33  ;;  %v9280_v63 = vadd.f32 %v9279_v60, %v9267_v57  ;;  %v15401_v33 = vld [vmem:[%s16067_s11 + $0xf70] sm:$0xff]  ;;  %v15399_v43 = vld [vmem:[%s16067_s11 + $0xf60] sm:$0xff] }
 0x1d5   : > { %9517 = vmatpush.bf16.msra.mxu0 %v15362_v44  ;;  %9486 = vmatmul.bf16.vlgmr.msrb.gmra.mxu1 %v2424_v36  ;;  %v15392_v36 = vld [vmem:[%s16067_s11 + $0xf28] sm:$0xff]  ;;  %v15389_v57 = vld [vmem:[%s16067_s11 + $0xf10] sm:$0xff] }
 0x1d6   : > { %9530 = vmatpush.bf16.msra.mxu1 %v15370_v45  ;;  %9499 = vmatmul.bf16.vlgmr.msrb.gmra.mxu2 %v2425_v34  ;;  %v15409_v34 = vld [vmem:[%s16067_s11 + $0xfb0] sm:$0xff]  ;;  %v15407_v45 = vld [vmem:[%s16067_s11 + $0xfa0] sm:$0xff] }
 0x1d7   : > { %9543 = vmatpush.bf16.msra.mxu2 %v15378_v46  ;;  %9512 = vmatmul.bf16.vlgmr.msrb.gmra.mxu3 %v2426_v37  ;;  %v15400_v37 = vld [vmem:[%s16067_s11 + $0xf68] sm:$0xff]  ;;  %v15415_v46 = vld [vmem:[%s16067_s11 + $0xfe0] sm:$0xff]  ;;  %v15405_v60 = vld [vmem:[%s16067_s11 + $0xf90] sm:$0xff] }
 0x1d8   : > { %9556 = vmatpush.bf16.msra.mxu3 %v15386_v47 }
 0x1d9   : > { %9518 = vmatpush.bf16.msra.mxu0 %v15361_v48  ;;  %v9292_v4 = vpop.f32.mrf.mxu2  ;;  %v9268_v7 = vpop.f32.mrf.mxu0  ;;  %v15390_v48 = vld [vmem:[%s16067_s11 + $0xf18] sm:$0xff] }
 0x1da   : > { %9531 = vmatpush.bf16.msra.mxu1 %v15369_v49  ;;  %v9293_v5 = vadd.f32 %v9292_v4, %v9280_v63  ;;  %v9305_v6 = vpop.f32.mrf.mxu3  ;;  %v9281_v11 = vpop.f32.mrf.mxu1  ;;  %v15398_v49 = vld [vmem:[%s16067_s11 + $0xf58] sm:$0xff]  ;;  %v15396_v63 = vld [vmem:[%s16067_s11 + $0xf48] sm:$0xff] }
 0x1db   : > { %9544 = vmatpush.bf16.msra.mxu2 %v15377_v50  ;;  %v15406_v50 = vld [vmem:[%s16067_s11 + $0xf98] sm:$0xff]  ;;  %v15403_v11 = vld [vmem:[%s16067_s11 + $0xf80] sm:$0xff] }
 0x1dc   : > { %9557 = vmatpush.bf16.msra.mxu3 %v15385_v51  ;;  %v9306_v8 = vadd.f32 %v9305_v6, %v9293_v5  ;;  %v15414_v51 = vld [vmem:[%s16067_s11 + $0xfd8] sm:$0xff]  ;;  %v2434_v5 = vld [vmem:[#allocation1 + $0x2d] sm:$0xff] }
 0x1dd   : > { %9519 = vmatpush.bf16.msra.mxu0 %v15360_v52  ;;  %v2436_v6 = vld [vmem:[#allocation1 + $0x3f] sm:$0xff] }
 0x1de   : > { %9532 = vmatpush.bf16.msra.mxu1 %v15368_v53 }
 0x1df   : > { %9545 = vmatpush.bf16.msra.mxu2 %v15376_v54 }
 0x1e0   : > { %9558 = vmatpush.bf16.msra.mxu3 %v15384_v55 }
 0x1e1   : > { %9520 = vmatpush.bf16.msra.mxu0 %v15359_v58  ;;  %v9294_v18 = vpop.f32.mrf.mxu2  ;;  %v15397_v58 = vld [vmem:[%s16067_s11 + $0xf50] sm:$0xff] }
 0x1e2   : > { %9533 = vmatpush.bf16.msra.mxu1 %v15367_v59  ;;  %v9307_v19 = vpop.f32.mrf.mxu3  ;;  %v15433_v18 = vld [vmem:[%s16067_s11 + $0x1070] sm:$0xff] }
 0x1e3   : > { %9546 = vmatpush.bf16.msra.mxu2 %v15375_v61  ;;  %v15413_v61 = vld [vmem:[%s16067_s11 + $0xfd0] sm:$0xff] }
 0x1e4   : > { %9559 = vmatpush.bf16.msra.mxu3 %v15383_v62  ;;  %v15388_v62 = vld [vmem:[%s16067_s11 + $0xf08] sm:$0xff]  ;;  %v15441_v19 = vld [vmem:[%s16067_s11 + $0x10b0] sm:$0xff] }
 0x1e5   : > { %9521 = vmatpush.bf16.msra.mxu0 %v15358_v0  ;;  %v15404_v0 = vld [vmem:[%s16067_s11 + $0xf88] sm:$0xff] }
 0x1e6   : > { %9534 = vmatpush.bf16.msra.mxu1 %v15366_v1  ;;  %v15412_v1 = vld [vmem:[%s16067_s11 + $0xfc8] sm:$0xff] }
 0x1e7   : > { %9547 = vmatpush.bf16.msra.mxu2 %v15374_v2  ;;  %v2433_v2 = vld [vmem:[#allocation1 + $0x24] sm:$0xff] }
 0x1e8   : > { %9560 = vmatpush.bf16.msra.mxu3 %v15382_v3  ;;  %v2435_v3 = vld [vmem:[#allocation1 + $0x36] sm:$0xff] }
 0x1e9   : > { %9522 = vmatpush.bf16.msra.mxu0 %v15357_v9  ;;  %v15387_v9 = vld [vmem:[%s16067_s11 + $0xf00] sm:$0xff] }
 0x1ea   : > { %9535 = vmatpush.bf16.msra.mxu1 %v15365_v10  ;;  %v15395_v10 = vld [vmem:[%s16067_s11 + $0xf40] sm:$0xff] }
 0x1eb   : > { %9548 = vmatpush.bf16.msra.mxu2 %v15373_v12  ;;  %v15411_v12 = vld [vmem:[%s16067_s11 + $0xfc0] sm:$0xff] }
 0x1ec   : > { %9561 = vmatpush.bf16.msra.mxu3 %v15381_v13  ;;  %v15426_v13 = vld [vmem:[%s16067_s11 + $0x1038] sm:$0xff] }
 0x1ed   : > { %9523 = vmatpush.bf16.msra.mxu0 %v15356_v14  ;;  %v15434_v14 = vld [vmem:[%s16067_s11 + $0x1078] sm:$0xff] }
 0x1ee   : > { %9536 = vmatpush.bf16.msra.mxu1 %v15364_v15  ;;  %v15442_v15 = vld [vmem:[%s16067_s11 + $0x10b8] sm:$0xff] }
 0x1ef   : > { %9549 = vmatpush.bf16.msra.mxu2 %v15372_v16  ;;  %v15450_v16 = vld [vmem:[%s16067_s11 + $0x10f8] sm:$0xff] }
 0x1f0   : > { %9562 = vmatpush.bf16.msra.mxu3 %v15380_v17  ;;  %v15425_v17 = vld [vmem:[%s16067_s11 + $0x1030] sm:$0xff] }
 0x1f1   : > { %9524 = vmatpush.bf16.msra.mxu0 %v15355_v20  ;;  %v9318_v40 = vpop.f32.mrf.mxu0  ;;  %v15449_v20 = vld [vmem:[%s16067_s11 + $0x10f0] sm:$0xff] }
 0x1f2   : > { %9537 = vmatpush.bf16.msra.mxu1 %v15363_v21  ;;  %v9319_v41 = vadd.f32 %v9318_v40, %v9306_v8  ;;  %v9331_v44 = vpop.f32.mrf.mxu1  ;;  %v301_v8 = vld [vmem:[%s16062_s30 + $0x40] sm:$0xff]  ;;  %v15424_v21 = vld [vmem:[%s16067_s11 + $0x1028] sm:$0xff] }
 0x1f3   : > { %9550 = vmatpush.bf16.msra.mxu2 %v15371_v22  ;;  %2438 = vst [vmem:[#allocation1] ss:$9 sm:$0xff] %v301_v8  ;;  %v15432_v22 = vld [vmem:[%s16067_s11 + $0x1068] sm:$0xff] }
 0x1f4   : > { %9563 = vmatpush.bf16.msra.mxu3 %v15379_v23  ;;  %9525 = vmatmul.bf16.vlgmr.msra.gmra.mxu0 %v2429_v28  ;;  %v9332_v47 = vadd.f32 %v9331_v44, %v9319_v41  ;;  %v15440_v23 = vld [vmem:[%s16067_s11 + $0x10a8] sm:$0xff]  ;;  %v15431_v28 = vld [vmem:[%s16067_s11 + $0x1060] sm:$0xff] }
 0x1f5   : > { %9569 = vmatpush.bf16.msrb.mxu0 %v15394_v24  ;;  %9538 = vmatmul.bf16.vlgmr.msra.gmra.mxu1 %v2430_v30  ;;  %v15448_v24 = vld [vmem:[%s16067_s11 + $0x10e8] sm:$0xff]  ;;  %v15439_v30 = vld [vmem:[%s16067_s11 + $0x10a0] sm:$0xff] }
 0x1f6   : > { %9582 = vmatpush.bf16.msrb.mxu1 %v15402_v25  ;;  %9551 = vmatmul.bf16.vlgmr.msra.gmra.mxu2 %v2431_v29  ;;  %v15480_v8 = vld [vmem:[%s16067_s11 + $0x11e8] sm:$0xff] }
 0x1f7   : > { %9595 = vmatpush.bf16.msrb.mxu2 %v15410_v26  ;;  %9564 = vmatmul.bf16.vlgmr.msra.gmra.mxu3 %v2432_v31  ;;  %v15447_v31 = vld [vmem:[%s16067_s11 + $0x10e0] sm:$0xff] }
 0x1f8   : > { %9608 = vmatpush.bf16.msrb.mxu3 %v15418_v27  ;;  %v15423_v27 = vld [vmem:[%s16067_s11 + $0x1020] sm:$0xff] }
 0x1f9   : > { %9570 = vmatpush.bf16.msrb.mxu0 %v15393_v32  ;;  %v9344_v52 = vpop.f32.mrf.mxu2  ;;  %v9320_v55 = vpop.f32.mrf.mxu0 }
 0x1fa   : > { %9583 = vmatpush.bf16.msrb.mxu1 %v15401_v33  ;;  %v9345_v53 = vadd.f32 %v9344_v52, %v9332_v47  ;;  %v9357_v54 = vpop.f32.mrf.mxu3  ;;  %v9333_v59 = vpop.f32.mrf.mxu1  ;;  %v15422_v33 = vld [vmem:[%s16067_s11 + $0x1018] sm:$0xff]  ;;  %v15420_v47 = vld [vmem:[%s16067_s11 + $0x1008] sm:$0xff]  ;;  %v15435_v55 = vld [vmem:[%s16067_s11 + $0x1080] sm:$0xff] }
 0x1fb   : > { %9596 = vmatpush.bf16.msrb.mxu2 %v15409_v34  ;;  %v15430_v34 = vld [vmem:[%s16067_s11 + $0x1058] sm:$0xff] }
 0x1fc   : > { %9609 = vmatpush.bf16.msrb.mxu3 %v15417_v35  ;;  %v16593_v56 = vadd.f32 %v9357_v54, %v9345_v53  ;;  %v15438_v35 = vld [vmem:[%s16067_s11 + $0x1098] sm:$0xff]  ;;  %v15419_v53 = vld [vmem:[%s16067_s11 + $0x1000] sm:$0xff] }
 0x1fd   : > { %9571 = vmatpush.bf16.msrb.mxu0 %v15392_v36  ;;  %v15446_v36 = vld [vmem:[%s16067_s11 + $0x10d8] sm:$0xff]  ;;  %v15427_v54 = vld [vmem:[%s16067_s11 + $0x1040] sm:$0xff] }
 0x1fe   : > { %9584 = vmatpush.bf16.msrb.mxu1 %v15400_v37  ;;  %v15474_v59 = vld [vmem:[%s16067_s11 + $0x11b8] sm:$0xff] }
 0x1ff   : > { %9597 = vmatpush.bf16.msrb.mxu2 %v15408_v38 }
 0x200   : > { %9610 = vmatpush.bf16.msrb.mxu3 %v15416_v39 }
 0x201   : > { %9572 = vmatpush.bf16.msrb.mxu0 %v15391_v42  ;;  %v9346_v4 = vpop.f32.mrf.mxu2  ;;  %v15421_v42 = vld [vmem:[%s16067_s11 + $0x1010] sm:$0xff] }
 0x202   : > { %9585 = vmatpush.bf16.msrb.mxu1 %v15399_v43  ;;  %v9359_v7 = vpop.f32.mrf.mxu3  ;;  %v15429_v43 = vld [vmem:[%s16067_s11 + $0x1050] sm:$0xff] }
 0x203   : > { %9598 = vmatpush.bf16.msrb.mxu2 %v15407_v45  ;;  %v15437_v45 = vld [vmem:[%s16067_s11 + $0x1090] sm:$0xff]  ;;  %v15472_v7 = vld [vmem:[%s16067_s11 + $0x11a8] sm:$0xff] }
 0x204   : > { %9611 = vmatpush.bf16.msrb.mxu3 %v15415_v46  ;;  %v15445_v46 = vld [vmem:[%s16067_s11 + $0x10d0] sm:$0xff] }
 0x205   : > { %9573 = vmatpush.bf16.msrb.mxu0 %v15390_v48  ;;  %v15428_v48 = vld [vmem:[%s16067_s11 + $0x1048] sm:$0xff]  ;;  %v15481_v4 = vld [vmem:[%s16067_s11 + $0x11f0] sm:$0xff] }
 0x206   : > { %9586 = vmatpush.bf16.msrb.mxu1 %v15398_v49  ;;  %v15436_v49 = vld [vmem:[%s16067_s11 + $0x1088] sm:$0xff] }
 0x207   : > { %9599 = vmatpush.bf16.msrb.mxu2 %v15406_v50  ;;  %v15444_v50 = vld [vmem:[%s16067_s11 + $0x10c8] sm:$0xff] }
 0x208   : > { %9612 = vmatpush.bf16.msrb.mxu3 %v15414_v51 }
 0x209   : > { %9574 = vmatpush.bf16.msrb.mxu0 %v15389_v57  ;;  %v15458_v57 = vld [vmem:[%s16067_s11 + $0x1138] sm:$0xff] }
 0x20a   : > { %9587 = vmatpush.bf16.msrb.mxu1 %v15397_v58  ;;  %v15466_v58 = vld [vmem:[%s16067_s11 + $0x1178] sm:$0xff] }
 0x20b   : > { %9600 = vmatpush.bf16.msrb.mxu2 %v15405_v60  ;;  %v15482_v60 = vld [vmem:[%s16067_s11 + $0x11f8] sm:$0xff] }
 0x20c   : > { %9613 = vmatpush.bf16.msrb.mxu3 %v15413_v61  ;;  %v2439_v61 = vld [vmem:[#allocation1] sm:$0xff] }
 0x20d   : > { %9575 = vmatpush.bf16.msrb.mxu0 %v15388_v62  ;;  %v2441_v62 = vld [vmem:[#allocation1 + $0x12] sm:$0xff] }
 0x20e   : > { %9588 = vmatpush.bf16.msrb.mxu1 %v15396_v63  ;;  %v2440_v63 = vld [vmem:[#allocation1 + $0x9] sm:$0xff] }
 0x20f   : > { %9601 = vmatpush.bf16.msrb.mxu2 %v15404_v0  ;;  %v2442_v0 = vld [vmem:[#allocation1 + $0x1b] sm:$0xff] }
 0x210   : > { %9614 = vmatpush.bf16.msrb.mxu3 %v15412_v1  ;;  %v15457_v1 = vld [vmem:[%s16067_s11 + $0x1130] sm:$0xff] }
 0x211   : > { %9576 = vmatpush.bf16.msrb.mxu0 %v15387_v9  ;;  %v9370_v25 = vpop.f32.mrf.mxu0 }
 0x212   : > { %9589 = vmatpush.bf16.msrb.mxu1 %v15395_v10  ;;  %v9371_v26 = vadd.f32 %v9370_v25, %v16593_v56  ;;  %v9383_v29 = vpop.f32.mrf.mxu1  ;;  %v15443_v56 = vld [vmem:[%s16067_s11 + $0x10c0] sm:$0xff] }
 0x213   : > { %9602 = vmatpush.bf16.msrb.mxu2 %v15403_v11  ;;  %v15455_v11 = vld [vmem:[%s16067_s11 + $0x1120] sm:$0xff] }
 0x214   : > { %9615 = vmatpush.bf16.msrb.mxu3 %v15411_v12  ;;  %9577 = vmatmul.bf16.vlgmr.msrb.gmra.mxu0 %v2433_v2  ;;  %v9384_v32 = vadd.f32 %v9383_v29, %v9371_v26  ;;  %v15465_v2 = vld [vmem:[%s16067_s11 + $0x1170] sm:$0xff]  ;;  %v15463_v12 = vld [vmem:[%s16067_s11 + $0x1160] sm:$0xff] }
 0x215   : > { %9621 = vmatpush.bf16.msra.mxu0 %v15426_v13  ;;  %9590 = vmatmul.bf16.vlgmr.msrb.gmra.mxu1 %v2434_v5  ;;  %v15456_v5 = vld [vmem:[%s16067_s11 + $0x1128] sm:$0xff]  ;;  %v15453_v26 = vld [vmem:[%s16067_s11 + $0x1110] sm:$0xff] }
 0x216   : > { %9634 = vmatpush.bf16.msra.mxu1 %v15434_v14  ;;  %9603 = vmatmul.bf16.vlgmr.msrb.gmra.mxu2 %v2435_v3  ;;  %v15473_v3 = vld [vmem:[%s16067_s11 + $0x11b0] sm:$0xff]  ;;  %v15471_v14 = vld [vmem:[%s16067_s11 + $0x11a0] sm:$0xff] }
 0x217   : > { %9647 = vmatpush.bf16.msra.mxu2 %v15442_v15  ;;  %9616 = vmatmul.bf16.vlgmr.msrb.gmra.mxu3 %v2436_v6  ;;  %v15464_v6 = vld [vmem:[%s16067_s11 + $0x1168] sm:$0xff]  ;;  %v15479_v15 = vld [vmem:[%s16067_s11 + $0x11e0] sm:$0xff]  ;;  %v15469_v29 = vld [vmem:[%s16067_s11 + $0x1190] sm:$0xff] }
 0x218   : > { %9660 = vmatpush.bf16.msra.mxu3 %v15450_v16 }
 0x219   : > { %9622 = vmatpush.bf16.msra.mxu0 %v15425_v17  ;;  %v9396_v37 = vpop.f32.mrf.mxu2  ;;  %v9372_v40 = vpop.f32.mrf.mxu0  ;;  %v15454_v17 = vld [vmem:[%s16067_s11 + $0x1118] sm:$0xff] }
 0x21a   : > { %9635 = vmatpush.bf16.msra.mxu1 %v15433_v18  ;;  %v9397_v38 = vadd.f32 %v9396_v37, %v9384_v32  ;;  %v9409_v39 = vpop.f32.mrf.mxu3  ;;  %v9385_v44 = vpop.f32.mrf.mxu1  ;;  %v15462_v18 = vld [vmem:[%s16067_s11 + $0x1158] sm:$0xff]  ;;  %v15460_v32 = vld [vmem:[%s16067_s11 + $0x1148] sm:$0xff] }
 0x21b   : > { %9648 = vmatpush.bf16.msra.mxu2 %v15441_v19  ;;  %v15470_v19 = vld [vmem:[%s16067_s11 + $0x1198] sm:$0xff]  ;;  %v15467_v44 = vld [vmem:[%s16067_s11 + $0x1180] sm:$0xff] }
 0x21c   : > { %9661 = vmatpush.bf16.msra.mxu3 %v15449_v20  ;;  %v9410_v41 = vadd.f32 %v9409_v39, %v9397_v38  ;;  %v15478_v20 = vld [vmem:[%s16067_s11 + $0x11d8] sm:$0xff]  ;;  %v2444_v38 = vld [vmem:[#allocation1 + $0x2d] sm:$0xff] }
 0x21d   : > { %9623 = vmatpush.bf16.msra.mxu0 %v15424_v21  ;;  %v2446_v39 = vld [vmem:[#allocation1 + $0x3f] sm:$0xff] }
 0x21e   : > { %9636 = vmatpush.bf16.msra.mxu1 %v15432_v22 }
 0x21f   : > { %9649 = vmatpush.bf16.msra.mxu2 %v15440_v23 }
 0x220   : > { %9662 = vmatpush.bf16.msra.mxu3 %v15448_v24 }
 0x221   : > { %9624 = vmatpush.bf16.msra.mxu0 %v15423_v27  ;;  %v9398_v51 = vpop.f32.mrf.mxu2  ;;  %v15461_v27 = vld [vmem:[%s16067_s11 + $0x1150] sm:$0xff] }
 0x222   : > { %9637 = vmatpush.bf16.msra.mxu1 %v15431_v28  ;;  %v9411_v52 = vpop.f32.mrf.mxu3  ;;  %v15497_v51 = vld [vmem:[%s16067_s11 + $0x1270] sm:$0xff] }
 0x223   : > { %9650 = vmatpush.bf16.msra.mxu2 %v15439_v30  ;;  %v15477_v30 = vld [vmem:[%s16067_s11 + $0x11d0] sm:$0xff] }
 0x224   : > { %9663 = vmatpush.bf16.msra.mxu3 %v15447_v31  ;;  %v15452_v31 = vld [vmem:[%s16067_s11 + $0x1108] sm:$0xff]  ;;  %v15505_v52 = vld [vmem:[%s16067_s11 + $0x12b0] sm:$0xff] }
 0x225   : > { %9625 = vmatpush.bf16.msra.mxu0 %v15422_v33  ;;  %v15468_v33 = vld [vmem:[%s16067_s11 + $0x1188] sm:$0xff] }
 0x226   : > { %9638 = vmatpush.bf16.msra.mxu1 %v15430_v34  ;;  %v15476_v34 = vld [vmem:[%s16067_s11 + $0x11c8] sm:$0xff] }
 0x227   : > { %9651 = vmatpush.bf16.msra.mxu2 %v15438_v35  ;;  %v2443_v35 = vld [vmem:[#allocation1 + $0x24] sm:$0xff] }
 0x228   : > { %9664 = vmatpush.bf16.msra.mxu3 %v15446_v36  ;;  %v2445_v36 = vld [vmem:[#allocation1 + $0x36] sm:$0xff] }
 0x229   : > { %9626 = vmatpush.bf16.msra.mxu0 %v15421_v42  ;;  %v15451_v42 = vld [vmem:[%s16067_s11 + $0x1100] sm:$0xff] }
 0x22a   : > { %9639 = vmatpush.bf16.msra.mxu1 %v15429_v43  ;;  %v15459_v43 = vld [vmem:[%s16067_s11 + $0x1140] sm:$0xff] }
 0x22b   : > { %9652 = vmatpush.bf16.msra.mxu2 %v15437_v45  ;;  %v15475_v45 = vld [vmem:[%s16067_s11 + $0x11c0] sm:$0xff] }
 0x22c   : > { %9665 = vmatpush.bf16.msra.mxu3 %v15445_v46  ;;  %v15490_v46 = vld [vmem:[%s16067_s11 + $0x1238] sm:$0xff] }
 0x22d   : > { %9627 = vmatpush.bf16.msra.mxu0 %v15420_v47  ;;  %v15498_v47 = vld [vmem:[%s16067_s11 + $0x1278] sm:$0xff] }
 0x22e   : > { %9640 = vmatpush.bf16.msra.mxu1 %v15428_v48  ;;  %v15506_v48 = vld [vmem:[%s16067_s11 + $0x12b8] sm:$0xff] }
 0x22f   : > { %9653 = vmatpush.bf16.msra.mxu2 %v15436_v49  ;;  %v15514_v49 = vld [vmem:[%s16067_s11 + $0x12f8] sm:$0xff] }
 0x230   : > { %9666 = vmatpush.bf16.msra.mxu3 %v15444_v50  ;;  %v15489_v50 = vld [vmem:[%s16067_s11 + $0x1230] sm:$0xff] }
 0x231   : > { %9628 = vmatpush.bf16.msra.mxu0 %v15419_v53  ;;  %v9422_v9 = vpop.f32.mrf.mxu0  ;;  %v15513_v53 = vld [vmem:[%s16067_s11 + $0x12f0] sm:$0xff] }
 0x232   : > { %9641 = vmatpush.bf16.msra.mxu1 %v15427_v54  ;;  %v9423_v10 = vadd.f32 %v9422_v9, %v9410_v41  ;;  %v9435_v13 = vpop.f32.mrf.mxu1  ;;  %v302_v41 = vld [vmem:[%s16062_s30 + $0x48] sm:$0xff] }
 0x233   : > { %9654 = vmatpush.bf16.msra.mxu2 %v15435_v55  ;;  %2448 = vst [vmem:[#allocation1] ss:$9 sm:$0xff] %v302_v41  ;;  %v15488_v54 = vld [vmem:[%s16067_s11 + $0x1228] sm:$0xff] }
 0x234   : > { %9667 = vmatpush.bf16.msra.mxu3 %v15443_v56  ;;  %9629 = vmatmul.bf16.vlgmr.msra.gmra.mxu0 %v2439_v61  ;;  %v9436_v16 = vadd.f32 %v9435_v13, %v9423_v10  ;;  %v15496_v55 = vld [vmem:[%s16067_s11 + $0x1268] sm:$0xff]  ;;  %v15495_v61 = vld [vmem:[%s16067_s11 + $0x1260] sm:$0xff] }
 0x235   : > { %9673 = vmatpush.bf16.msrb.mxu0 %v15458_v57  ;;  %9642 = vmatmul.bf16.vlgmr.msra.gmra.mxu1 %v2440_v63  ;;  %v15504_v56 = vld [vmem:[%s16067_s11 + $0x12a8] sm:$0xff]  ;;  %v15503_v63 = vld [vmem:[%s16067_s11 + $0x12a0] sm:$0xff] }
 0x236   : > { %9686 = vmatpush.bf16.msrb.mxu1 %v15466_v58  ;;  %9655 = vmatmul.bf16.vlgmr.msra.gmra.mxu2 %v2441_v62  ;;  %v15512_v57 = vld [vmem:[%s16067_s11 + $0x12e8] sm:$0xff] }
 0x237   : > { %9699 = vmatpush.bf16.msrb.mxu2 %v15474_v59  ;;  %9668 = vmatmul.bf16.vlgmr.msra.gmra.mxu3 %v2442_v0  ;;  %v15511_v0 = vld [vmem:[%s16067_s11 + $0x12e0] sm:$0xff]  ;;  %v15544_v41 = vld [vmem:[%s16067_s11 + $0x13e8] sm:$0xff] }
 0x238   : > { %9712 = vmatpush.bf16.msrb.mxu3 %v15482_v60  ;;  %v15487_v60 = vld [vmem:[%s16067_s11 + $0x1220] sm:$0xff] }
 0x239   : > { %9674 = vmatpush.bf16.msrb.mxu0 %v15457_v1  ;;  %v9448_v21 = vpop.f32.mrf.mxu2  ;;  %v9424_v24 = vpop.f32.mrf.mxu0 }
 0x23a   : > { %9687 = vmatpush.bf16.msrb.mxu1 %v15465_v2  ;;  %v9449_v22 = vadd.f32 %v9448_v21, %v9436_v16  ;;  %v9461_v23 = vpop.f32.mrf.mxu3  ;;  %v9437_v28 = vpop.f32.mrf.mxu1  ;;  %v15486_v2 = vld [vmem:[%s16067_s11 + $0x1218] sm:$0xff]  ;;  %v15484_v16 = vld [vmem:[%s16067_s11 + $0x1208] sm:$0xff]  ;;  %v15499_v24 = vld [vmem:[%s16067_s11 + $0x1280] sm:$0xff] }
 0x23b   : > { %9700 = vmatpush.bf16.msrb.mxu2 %v15473_v3  ;;  %v15494_v3 = vld [vmem:[%s16067_s11 + $0x1258] sm:$0xff] }
 0x23c   : > { %9713 = vmatpush.bf16.msrb.mxu3 %v15481_v4  ;;  %v16661_v25 = vadd.f32 %v9461_v23, %v9449_v22  ;;  %v15502_v4 = vld [vmem:[%s16067_s11 + $0x1298] sm:$0xff]  ;;  %v15483_v22 = vld [vmem:[%s16067_s11 + $0x1200] sm:$0xff] }
 0x23d   : > { %9675 = vmatpush.bf16.msrb.mxu0 %v15456_v5  ;;  %v15510_v5 = vld [vmem:[%s16067_s11 + $0x12d8] sm:$0xff]  ;;  %v15491_v23 = vld [vmem:[%s16067_s11 + $0x1240] sm:$0xff] }
 0x23e   : > { %9688 = vmatpush.bf16.msrb.mxu1 %v15464_v6  ;;  %v15538_v28 = vld [vmem:[%s16067_s11 + $0x13b8] sm:$0xff] }
 0x23f   : > { %9701 = vmatpush.bf16.msrb.mxu2 %v15472_v7 }
 0x240   : > { %9714 = vmatpush.bf16.msrb.mxu3 %v15480_v8 }
 0x241   : > { %9676 = vmatpush.bf16.msrb.mxu0 %v15455_v11  ;;  %v9450_v37 = vpop.f32.mrf.mxu2  ;;  %v15485_v11 = vld [vmem:[%s16067_s11 + $0x1210] sm:$0xff] }
 0x242   : > { %9689 = vmatpush.bf16.msrb.mxu1 %v15463_v12  ;;  %v9463_v40 = vpop.f32.mrf.mxu3  ;;  %v15493_v12 = vld [vmem:[%s16067_s11 + $0x1250] sm:$0xff] }
 0x243   : > { %9702 = vmatpush.bf16.msrb.mxu2 %v15471_v14  ;;  %v15501_v14 = vld [vmem:[%s16067_s11 + $0x1290] sm:$0xff]  ;;  %v15536_v40 = vld [vmem:[%s16067_s11 + $0x13a8] sm:$0xff] }
 0x244   : > { %9715 = vmatpush.bf16.msrb.mxu3 %v15479_v15  ;;  %v15509_v15 = vld [vmem:[%s16067_s11 + $0x12d0] sm:$0xff] }
 0x245   : > { %9677 = vmatpush.bf16.msrb.mxu0 %v15454_v17  ;;  %v15492_v17 = vld [vmem:[%s16067_s11 + $0x1248] sm:$0xff]  ;;  %v15545_v37 = vld [vmem:[%s16067_s11 + $0x13f0] sm:$0xff] }
 0x246   : > { %9690 = vmatpush.bf16.msrb.mxu1 %v15462_v18  ;;  %v15500_v18 = vld [vmem:[%s16067_s11 + $0x1288] sm:$0xff] }
 0x247   : > { %9703 = vmatpush.bf16.msrb.mxu2 %v15470_v19  ;;  %v15508_v19 = vld [vmem:[%s16067_s11 + $0x12c8] sm:$0xff] }
 0x248   : > { %9716 = vmatpush.bf16.msrb.mxu3 %v15478_v20 }
 0x249   : > { %9678 = vmatpush.bf16.msrb.mxu0 %v15453_v26  ;;  %v15522_v26 = vld [vmem:[%s16067_s11 + $0x1338] sm:$0xff] }
 0x24a   : > { %9691 = vmatpush.bf16.msrb.mxu1 %v15461_v27  ;;  %v15530_v27 = vld [vmem:[%s16067_s11 + $0x1378] sm:$0xff] }
 0x24b   : > { %9704 = vmatpush.bf16.msrb.mxu2 %v15469_v29  ;;  %v15546_v29 = vld [vmem:[%s16067_s11 + $0x13f8] sm:$0xff] }
 0x24c   : > { %9717 = vmatpush.bf16.msrb.mxu3 %v15477_v30  ;;  %v2449_v30 = vld [vmem:[#allocation1] sm:$0xff] }
 0x24d   : > { %9679 = vmatpush.bf16.msrb.mxu0 %v15452_v31  ;;  %v2451_v31 = vld [vmem:[#allocation1 + $0x12] sm:$0xff] }
 0x24e   : > { %9692 = vmatpush.bf16.msrb.mxu1 %v15460_v32  ;;  %v2450_v32 = vld [vmem:[#allocation1 + $0x9] sm:$0xff] }
 0x24f   : > { %9705 = vmatpush.bf16.msrb.mxu2 %v15468_v33  ;;  %v2452_v33 = vld [vmem:[#allocation1 + $0x1b] sm:$0xff] }
 0x250   : > { %9718 = vmatpush.bf16.msrb.mxu3 %v15476_v34  ;;  %v15521_v34 = vld [vmem:[%s16067_s11 + $0x1330] sm:$0xff] }
 0x251   : > { %9680 = vmatpush.bf16.msrb.mxu0 %v15451_v42  ;;  %v9474_v58 = vpop.f32.mrf.mxu0 }
 0x252   : > { %9693 = vmatpush.bf16.msrb.mxu1 %v15459_v43  ;;  %v9475_v59 = vadd.f32 %v9474_v58, %v16661_v25  ;;  %v9487_v62 = vpop.f32.mrf.mxu1  ;;  %v15507_v25 = vld [vmem:[%s16067_s11 + $0x12c0] sm:$0xff] }
 0x253   : > { %9706 = vmatpush.bf16.msrb.mxu2 %v15467_v44  ;;  %v15519_v44 = vld [vmem:[%s16067_s11 + $0x1320] sm:$0xff] }
 0x254   : > { %9719 = vmatpush.bf16.msrb.mxu3 %v15475_v45  ;;  %9681 = vmatmul.bf16.vlgmr.msrb.gmra.mxu0 %v2443_v35  ;;  %v9488_v1 = vadd.f32 %v9487_v62, %v9475_v59  ;;  %v15529_v35 = vld [vmem:[%s16067_s11 + $0x1370] sm:$0xff]  ;;  %v15527_v45 = vld [vmem:[%s16067_s11 + $0x1360] sm:$0xff] }
 0x255   : > { %9725 = vmatpush.bf16.msra.mxu0 %v15490_v46  ;;  %9694 = vmatmul.bf16.vlgmr.msrb.gmra.mxu1 %v2444_v38  ;;  %v15520_v38 = vld [vmem:[%s16067_s11 + $0x1328] sm:$0xff]  ;;  %v15517_v59 = vld [vmem:[%s16067_s11 + $0x1310] sm:$0xff] }
 0x256   : > { %9738 = vmatpush.bf16.msra.mxu1 %v15498_v47  ;;  %9707 = vmatmul.bf16.vlgmr.msrb.gmra.mxu2 %v2445_v36  ;;  %v15537_v36 = vld [vmem:[%s16067_s11 + $0x13b0] sm:$0xff]  ;;  %v15535_v47 = vld [vmem:[%s16067_s11 + $0x13a0] sm:$0xff] }
 0x257   : > { %9751 = vmatpush.bf16.msra.mxu2 %v15506_v48  ;;  %9720 = vmatmul.bf16.vlgmr.msrb.gmra.mxu3 %v2446_v39  ;;  %v15528_v39 = vld [vmem:[%s16067_s11 + $0x1368] sm:$0xff]  ;;  %v15543_v48 = vld [vmem:[%s16067_s11 + $0x13e0] sm:$0xff]  ;;  %v15533_v62 = vld [vmem:[%s16067_s11 + $0x1390] sm:$0xff] }
 0x258   : > { %9764 = vmatpush.bf16.msra.mxu3 %v15514_v49 }
 0x259   : > { %9726 = vmatpush.bf16.msra.mxu0 %v15489_v50  ;;  %v9500_v6 = vpop.f32.mrf.mxu2  ;;  %v9476_v9 = vpop.f32.mrf.mxu0  ;;  %v15518_v50 = vld [vmem:[%s16067_s11 + $0x1318] sm:$0xff] }
 0x25a   : > { %9739 = vmatpush.bf16.msra.mxu1 %v15497_v51  ;;  %v9501_v7 = vadd.f32 %v9500_v6, %v9488_v1  ;;  %v9513_v8 = vpop.f32.mrf.mxu3  ;;  %v9489_v13 = vpop.f32.mrf.mxu1  ;;  %v15526_v51 = vld [vmem:[%s16067_s11 + $0x1358] sm:$0xff]  ;;  %v15524_v1 = vld [vmem:[%s16067_s11 + $0x1348] sm:$0xff] }
 0x25b   : > { %9752 = vmatpush.bf16.msra.mxu2 %v15505_v52  ;;  %v15534_v52 = vld [vmem:[%s16067_s11 + $0x1398] sm:$0xff]  ;;  %v15531_v13 = vld [vmem:[%s16067_s11 + $0x1380] sm:$0xff] }
 0x25c   : > { %9765 = vmatpush.bf16.msra.mxu3 %v15513_v53  ;;  %v9514_v10 = vadd.f32 %v9513_v8, %v9501_v7  ;;  %v15542_v53 = vld [vmem:[%s16067_s11 + $0x13d8] sm:$0xff]  ;;  %v2454_v7 = vld [vmem:[#allocation1 + $0x2d] sm:$0xff] }
 0x25d   : > { %9727 = vmatpush.bf16.msra.mxu0 %v15488_v54  ;;  %v2456_v8 = vld [vmem:[#allocation1 + $0x3f] sm:$0xff] }
 0x25e   : > { %9740 = vmatpush.bf16.msra.mxu1 %v15496_v55 }
 0x25f   : > { %9753 = vmatpush.bf16.msra.mxu2 %v15504_v56 }
 0x260   : > { %9766 = vmatpush.bf16.msra.mxu3 %v15512_v57 }
 0x261   : > { %9728 = vmatpush.bf16.msra.mxu0 %v15487_v60  ;;  %v9502_v20 = vpop.f32.mrf.mxu2  ;;  %v15525_v60 = vld [vmem:[%s16067_s11 + $0x1350] sm:$0xff] }
 0x262   : > { %9741 = vmatpush.bf16.msra.mxu1 %v15495_v61  ;;  %v9515_v21 = vpop.f32.mrf.mxu3  ;;  %v15561_v20 = vld [vmem:[%s16067_s11 + $0x1470] sm:$0xff] }
 0x263   : > { %9754 = vmatpush.bf16.msra.mxu2 %v15503_v63  ;;  %v15541_v63 = vld [vmem:[%s16067_s11 + $0x13d0] sm:$0xff] }
 0x264   : > { %9767 = vmatpush.bf16.msra.mxu3 %v15511_v0  ;;  %v15516_v0 = vld [vmem:[%s16067_s11 + $0x1308] sm:$0xff]  ;;  %v15569_v21 = vld [vmem:[%s16067_s11 + $0x14b0] sm:$0xff] }
 0x265   : > { %9729 = vmatpush.bf16.msra.mxu0 %v15486_v2  ;;  %v15532_v2 = vld [vmem:[%s16067_s11 + $0x1388] sm:$0xff] }
 0x266   : > { %9742 = vmatpush.bf16.msra.mxu1 %v15494_v3  ;;  %v15540_v3 = vld [vmem:[%s16067_s11 + $0x13c8] sm:$0xff] }
 0x267   : > { %9755 = vmatpush.bf16.msra.mxu2 %v15502_v4  ;;  %v2453_v4 = vld [vmem:[#allocation1 + $0x24] sm:$0xff] }
 0x268   : > { %9768 = vmatpush.bf16.msra.mxu3 %v15510_v5  ;;  %v2455_v5 = vld [vmem:[#allocation1 + $0x36] sm:$0xff] }
 0x269   : > { %9730 = vmatpush.bf16.msra.mxu0 %v15485_v11  ;;  %v15515_v11 = vld [vmem:[%s16067_s11 + $0x1300] sm:$0xff] }
 0x26a   : > { %9743 = vmatpush.bf16.msra.mxu1 %v15493_v12  ;;  %v15523_v12 = vld [vmem:[%s16067_s11 + $0x1340] sm:$0xff] }
 0x26b   : > { %9756 = vmatpush.bf16.msra.mxu2 %v15501_v14  ;;  %v15539_v14 = vld [vmem:[%s16067_s11 + $0x13c0] sm:$0xff] }
 0x26c   : > { %9769 = vmatpush.bf16.msra.mxu3 %v15509_v15  ;;  %v15554_v15 = vld [vmem:[%s16067_s11 + $0x1438] sm:$0xff] }
 0x26d   : > { %9731 = vmatpush.bf16.msra.mxu0 %v15484_v16  ;;  %v15562_v16 = vld [vmem:[%s16067_s11 + $0x1478] sm:$0xff] }
 0x26e   : > { %9744 = vmatpush.bf16.msra.mxu1 %v15492_v17  ;;  %v15570_v17 = vld [vmem:[%s16067_s11 + $0x14b8] sm:$0xff] }
 0x26f   : > { %9757 = vmatpush.bf16.msra.mxu2 %v15500_v18  ;;  %v15578_v18 = vld [vmem:[%s16067_s11 + $0x14f8] sm:$0xff] }
 0x270   : > { %9770 = vmatpush.bf16.msra.mxu3 %v15508_v19  ;;  %v15553_v19 = vld [vmem:[%s16067_s11 + $0x1430] sm:$0xff] }
 0x271   : > { %9732 = vmatpush.bf16.msra.mxu0 %v15483_v22  ;;  %v9526_v42 = vpop.f32.mrf.mxu0  ;;  %v15577_v22 = vld [vmem:[%s16067_s11 + $0x14f0] sm:$0xff] }
 0x272   : > { %9745 = vmatpush.bf16.msra.mxu1 %v15491_v23  ;;  %v9527_v43 = vadd.f32 %v9526_v42, %v9514_v10  ;;  %v9539_v46 = vpop.f32.mrf.mxu1  ;;  %v303_v10 = vld [vmem:[%s16062_s30 + $0x50] sm:$0xff]  ;;  %v15552_v23 = vld [vmem:[%s16067_s11 + $0x1428] sm:$0xff] }
 0x273   : > { %9758 = vmatpush.bf16.msra.mxu2 %v15499_v24  ;;  %2458 = vst [vmem:[#allocation1] ss:$9 sm:$0xff] %v303_v10  ;;  %v15560_v24 = vld [vmem:[%s16067_s11 + $0x1468] sm:$0xff] }
 0x274   : > { %9771 = vmatpush.bf16.msra.mxu3 %v15507_v25  ;;  %9733 = vmatmul.bf16.vlgmr.msra.gmra.mxu0 %v2449_v30  ;;  %v9540_v49 = vadd.f32 %v9539_v46, %v9527_v43  ;;  %v15568_v25 = vld [vmem:[%s16067_s11 + $0x14a8] sm:$0xff]  ;;  %v15559_v30 = vld [vmem:[%s16067_s11 + $0x1460] sm:$0xff] }
 0x275   : > { %9777 = vmatpush.bf16.msrb.mxu0 %v15522_v26  ;;  %9746 = vmatmul.bf16.vlgmr.msra.gmra.mxu1 %v2450_v32  ;;  %v15576_v26 = vld [vmem:[%s16067_s11 + $0x14e8] sm:$0xff]  ;;  %v15567_v32 = vld [vmem:[%s16067_s11 + $0x14a0] sm:$0xff] }
 0x276   : > { %9790 = vmatpush.bf16.msrb.mxu1 %v15530_v27  ;;  %9759 = vmatmul.bf16.vlgmr.msra.gmra.mxu2 %v2451_v31  ;;  %v15608_v10 = vld [vmem:[%s16067_s11 + $0x15e8] sm:$0xff] }
 0x277   : > { %9803 = vmatpush.bf16.msrb.mxu2 %v15538_v28  ;;  %9772 = vmatmul.bf16.vlgmr.msra.gmra.mxu3 %v2452_v33  ;;  %v15575_v33 = vld [vmem:[%s16067_s11 + $0x14e0] sm:$0xff] }
 0x278   : > { %9816 = vmatpush.bf16.msrb.mxu3 %v15546_v29  ;;  %v15551_v29 = vld [vmem:[%s16067_s11 + $0x1420] sm:$0xff] }
 0x279   : > { %9778 = vmatpush.bf16.msrb.mxu0 %v15521_v34  ;;  %v9552_v54 = vpop.f32.mrf.mxu2  ;;  %v9528_v57 = vpop.f32.mrf.mxu0 }
 0x27a   : > { %9791 = vmatpush.bf16.msrb.mxu1 %v15529_v35  ;;  %v9553_v55 = vadd.f32 %v9552_v54, %v9540_v49  ;;  %v9565_v56 = vpop.f32.mrf.mxu3  ;;  %v9541_v61 = vpop.f32.mrf.mxu1  ;;  %v15550_v35 = vld [vmem:[%s16067_s11 + $0x1418] sm:$0xff]  ;;  %v15548_v49 = vld [vmem:[%s16067_s11 + $0x1408] sm:$0xff]  ;;  %v15563_v57 = vld [vmem:[%s16067_s11 + $0x1480] sm:$0xff] }
 0x27b   : > { %9804 = vmatpush.bf16.msrb.mxu2 %v15537_v36  ;;  %v15558_v36 = vld [vmem:[%s16067_s11 + $0x1458] sm:$0xff] }
 0x27c   : > { %9817 = vmatpush.bf16.msrb.mxu3 %v15545_v37  ;;  %v16729_v58 = vadd.f32 %v9565_v56, %v9553_v55  ;;  %v15566_v37 = vld [vmem:[%s16067_s11 + $0x1498] sm:$0xff]  ;;  %v15547_v55 = vld [vmem:[%s16067_s11 + $0x1400] sm:$0xff] }
 0x27d   : > { %9779 = vmatpush.bf16.msrb.mxu0 %v15520_v38  ;;  %v15574_v38 = vld [vmem:[%s16067_s11 + $0x14d8] sm:$0xff]  ;;  %v15555_v56 = vld [vmem:[%s16067_s11 + $0x1440] sm:$0xff] }
 0x27e   : > { %9792 = vmatpush.bf16.msrb.mxu1 %v15528_v39  ;;  %v15602_v61 = vld [vmem:[%s16067_s11 + $0x15b8] sm:$0xff] }
 0x27f   : > { %9805 = vmatpush.bf16.msrb.mxu2 %v15536_v40 }
 0x280   : > { %9818 = vmatpush.bf16.msrb.mxu3 %v15544_v41 }
 0x281   : > { %9780 = vmatpush.bf16.msrb.mxu0 %v15519_v44  ;;  %v9554_v6 = vpop.f32.mrf.mxu2  ;;  %v15549_v44 = vld [vmem:[%s16067_s11 + $0x1410] sm:$0xff] }
 0x282   : > { %9793 = vmatpush.bf16.msrb.mxu1 %v15527_v45  ;;  %v9567_v9 = vpop.f32.mrf.mxu3  ;;  %v15557_v45 = vld [vmem:[%s16067_s11 + $0x1450] sm:$0xff] }
 0x283   : > { %9806 = vmatpush.bf16.msrb.mxu2 %v15535_v47  ;;  %v15565_v47 = vld [vmem:[%s16067_s11 + $0x1490] sm:$0xff]  ;;  %v15600_v9 = vld [vmem:[%s16067_s11 + $0x15a8] sm:$0xff] }
 0x284   : > { %9819 = vmatpush.bf16.msrb.mxu3 %v15543_v48  ;;  %v15573_v48 = vld [vmem:[%s16067_s11 + $0x14d0] sm:$0xff] }
 0x285   : > { %9781 = vmatpush.bf16.msrb.mxu0 %v15518_v50  ;;  %v15556_v50 = vld [vmem:[%s16067_s11 + $0x1448] sm:$0xff]  ;;  %v15609_v6 = vld [vmem:[%s16067_s11 + $0x15f0] sm:$0xff] }
 0x286   : > { %9794 = vmatpush.bf16.msrb.mxu1 %v15526_v51  ;;  %v15564_v51 = vld [vmem:[%s16067_s11 + $0x1488] sm:$0xff] }
 0x287   : > { %9807 = vmatpush.bf16.msrb.mxu2 %v15534_v52  ;;  %v15572_v52 = vld [vmem:[%s16067_s11 + $0x14c8] sm:$0xff] }
 0x288   : > { %9820 = vmatpush.bf16.msrb.mxu3 %v15542_v53 }
 0x289   : > { %9782 = vmatpush.bf16.msrb.mxu0 %v15517_v59  ;;  %v15586_v59 = vld [vmem:[%s16067_s11 + $0x1538] sm:$0xff] }
 0x28a   : > { %9795 = vmatpush.bf16.msrb.mxu1 %v15525_v60  ;;  %v15594_v60 = vld [vmem:[%s16067_s11 + $0x1578] sm:$0xff] }
 0x28b   : > { %9808 = vmatpush.bf16.msrb.mxu2 %v15533_v62  ;;  %v15610_v62 = vld [vmem:[%s16067_s11 + $0x15f8] sm:$0xff] }
 0x28c   : > { %9821 = vmatpush.bf16.msrb.mxu3 %v15541_v63  ;;  %v2459_v63 = vld [vmem:[#allocation1] sm:$0xff] }
 0x28d   : > { %9783 = vmatpush.bf16.msrb.mxu0 %v15516_v0  ;;  %v2461_v0 = vld [vmem:[#allocation1 + $0x12] sm:$0xff] }
 0x28e   : > { %9796 = vmatpush.bf16.msrb.mxu1 %v15524_v1  ;;  %v2460_v1 = vld [vmem:[#allocation1 + $0x9] sm:$0xff] }
 0x28f   : > { %9809 = vmatpush.bf16.msrb.mxu2 %v15532_v2  ;;  %v2462_v2 = vld [vmem:[#allocation1 + $0x1b] sm:$0xff] }
 0x290   : > { %9822 = vmatpush.bf16.msrb.mxu3 %v15540_v3  ;;  %v15585_v3 = vld [vmem:[%s16067_s11 + $0x1530] sm:$0xff] }
 0x291   : > { %9784 = vmatpush.bf16.msrb.mxu0 %v15515_v11  ;;  %v9578_v27 = vpop.f32.mrf.mxu0 }
 0x292   : > { %9797 = vmatpush.bf16.msrb.mxu1 %v15523_v12  ;;  %v9579_v28 = vadd.f32 %v9578_v27, %v16729_v58  ;;  %v9591_v31 = vpop.f32.mrf.mxu1  ;;  %v15571_v58 = vld [vmem:[%s16067_s11 + $0x14c0] sm:$0xff] }
 0x293   : > { %9810 = vmatpush.bf16.msrb.mxu2 %v15531_v13  ;;  %v15583_v13 = vld [vmem:[%s16067_s11 + $0x1520] sm:$0xff] }
 0x294   : > { %9823 = vmatpush.bf16.msrb.mxu3 %v15539_v14  ;;  %9785 = vmatmul.bf16.vlgmr.msrb.gmra.mxu0 %v2453_v4  ;;  %v9592_v34 = vadd.f32 %v9591_v31, %v9579_v28  ;;  %v15593_v4 = vld [vmem:[%s16067_s11 + $0x1570] sm:$0xff]  ;;  %v15591_v14 = vld [vmem:[%s16067_s11 + $0x1560] sm:$0xff] }
 0x295   : > { %9829 = vmatpush.bf16.msra.mxu0 %v15554_v15  ;;  %9798 = vmatmul.bf16.vlgmr.msrb.gmra.mxu1 %v2454_v7  ;;  %v15584_v7 = vld [vmem:[%s16067_s11 + $0x1528] sm:$0xff]  ;;  %v15581_v28 = vld [vmem:[%s16067_s11 + $0x1510] sm:$0xff] }
 0x296   : > { %9842 = vmatpush.bf16.msra.mxu1 %v15562_v16  ;;  %9811 = vmatmul.bf16.vlgmr.msrb.gmra.mxu2 %v2455_v5  ;;  %v15601_v5 = vld [vmem:[%s16067_s11 + $0x15b0] sm:$0xff]  ;;  %v15599_v16 = vld [vmem:[%s16067_s11 + $0x15a0] sm:$0xff] }
 0x297   : > { %9855 = vmatpush.bf16.msra.mxu2 %v15570_v17  ;;  %9824 = vmatmul.bf16.vlgmr.msrb.gmra.mxu3 %v2456_v8  ;;  %v15592_v8 = vld [vmem:[%s16067_s11 + $0x1568] sm:$0xff]  ;;  %v15607_v17 = vld [vmem:[%s16067_s11 + $0x15e0] sm:$0xff]  ;;  %v15597_v31 = vld [vmem:[%s16067_s11 + $0x1590] sm:$0xff] }
 0x298   : > { %9868 = vmatpush.bf16.msra.mxu3 %v15578_v18 }
 0x299   : > { %9830 = vmatpush.bf16.msra.mxu0 %v15553_v19  ;;  %v9604_v39 = vpop.f32.mrf.mxu2  ;;  %v9580_v42 = vpop.f32.mrf.mxu0  ;;  %v15582_v19 = vld [vmem:[%s16067_s11 + $0x1518] sm:$0xff] }
 0x29a   : > { %9843 = vmatpush.bf16.msra.mxu1 %v15561_v20  ;;  %v9605_v40 = vadd.f32 %v9604_v39, %v9592_v34  ;;  %v9617_v41 = vpop.f32.mrf.mxu3  ;;  %v9593_v46 = vpop.f32.mrf.mxu1  ;;  %v15590_v20 = vld [vmem:[%s16067_s11 + $0x1558] sm:$0xff]  ;;  %v15588_v34 = vld [vmem:[%s16067_s11 + $0x1548] sm:$0xff] }
 0x29b   : > { %9856 = vmatpush.bf16.msra.mxu2 %v15569_v21  ;;  %v15598_v21 = vld [vmem:[%s16067_s11 + $0x1598] sm:$0xff]  ;;  %v15595_v46 = vld [vmem:[%s16067_s11 + $0x1580] sm:$0xff] }
 0x29c   : > { %9869 = vmatpush.bf16.msra.mxu3 %v15577_v22  ;;  %v9618_v43 = vadd.f32 %v9617_v41, %v9605_v40  ;;  %v15606_v22 = vld [vmem:[%s16067_s11 + $0x15d8] sm:$0xff]  ;;  %v2464_v40 = vld [vmem:[#allocation1 + $0x2d] sm:$0xff] }
 0x29d   : > { %9831 = vmatpush.bf16.msra.mxu0 %v15552_v23  ;;  %v2466_v41 = vld [vmem:[#allocation1 + $0x3f] sm:$0xff] }
 0x29e   : > { %9844 = vmatpush.bf16.msra.mxu1 %v15560_v24 }
 0x29f   : > { %9857 = vmatpush.bf16.msra.mxu2 %v15568_v25 }
 0x2a0   : > { %9870 = vmatpush.bf16.msra.mxu3 %v15576_v26 }
 0x2a1   : > { %9832 = vmatpush.bf16.msra.mxu0 %v15551_v29  ;;  %v9606_v53 = vpop.f32.mrf.mxu2  ;;  %v15589_v29 = vld [vmem:[%s16067_s11 + $0x1550] sm:$0xff] }
 0x2a2   : > { %9845 = vmatpush.bf16.msra.mxu1 %v15559_v30  ;;  %v9619_v54 = vpop.f32.mrf.mxu3  ;;  %v15625_v53 = vld [vmem:[%s16067_s11 + $0x1670] sm:$0xff] }
 0x2a3   : > { %9858 = vmatpush.bf16.msra.mxu2 %v15567_v32  ;;  %v15605_v32 = vld [vmem:[%s16067_s11 + $0x15d0] sm:$0xff] }
 0x2a4   : > { %9871 = vmatpush.bf16.msra.mxu3 %v15575_v33  ;;  %v15580_v33 = vld [vmem:[%s16067_s11 + $0x1508] sm:$0xff]  ;;  %v15633_v54 = vld [vmem:[%s16067_s11 + $0x16b0] sm:$0xff] }
 0x2a5   : > { %9833 = vmatpush.bf16.msra.mxu0 %v15550_v35  ;;  %v15596_v35 = vld [vmem:[%s16067_s11 + $0x1588] sm:$0xff] }
 0x2a6   : > { %9846 = vmatpush.bf16.msra.mxu1 %v15558_v36  ;;  %v15604_v36 = vld [vmem:[%s16067_s11 + $0x15c8] sm:$0xff] }
 0x2a7   : > { %9859 = vmatpush.bf16.msra.mxu2 %v15566_v37  ;;  %v2463_v37 = vld [vmem:[#allocation1 + $0x24] sm:$0xff] }
 0x2a8   : > { %9872 = vmatpush.bf16.msra.mxu3 %v15574_v38  ;;  %v2465_v38 = vld [vmem:[#allocation1 + $0x36] sm:$0xff] }
 0x2a9   : > { %9834 = vmatpush.bf16.msra.mxu0 %v15549_v44  ;;  %v15579_v44 = vld [vmem:[%s16067_s11 + $0x1500] sm:$0xff] }
 0x2aa   : > { %9847 = vmatpush.bf16.msra.mxu1 %v15557_v45  ;;  %v15587_v45 = vld [vmem:[%s16067_s11 + $0x1540] sm:$0xff] }
 0x2ab   : > { %9860 = vmatpush.bf16.msra.mxu2 %v15565_v47  ;;  %v15603_v47 = vld [vmem:[%s16067_s11 + $0x15c0] sm:$0xff] }
 0x2ac   : > { %9873 = vmatpush.bf16.msra.mxu3 %v15573_v48  ;;  %v15618_v48 = vld [vmem:[%s16067_s11 + $0x1638] sm:$0xff] }
 0x2ad   : > { %9835 = vmatpush.bf16.msra.mxu0 %v15548_v49  ;;  %v15626_v49 = vld [vmem:[%s16067_s11 + $0x1678] sm:$0xff] }
 0x2ae   : > { %9848 = vmatpush.bf16.msra.mxu1 %v15556_v50  ;;  %v15634_v50 = vld [vmem:[%s16067_s11 + $0x16b8] sm:$0xff] }
 0x2af   : > { %9861 = vmatpush.bf16.msra.mxu2 %v15564_v51  ;;  %v15642_v51 = vld [vmem:[%s16067_s11 + $0x16f8] sm:$0xff] }
 0x2b0   : > { %9874 = vmatpush.bf16.msra.mxu3 %v15572_v52  ;;  %v15617_v52 = vld [vmem:[%s16067_s11 + $0x1630] sm:$0xff] }
 0x2b1   : > { %9836 = vmatpush.bf16.msra.mxu0 %v15547_v55  ;;  %v9630_v11 = vpop.f32.mrf.mxu0  ;;  %v15641_v55 = vld [vmem:[%s16067_s11 + $0x16f0] sm:$0xff] }
 0x2b2   : > { %9849 = vmatpush.bf16.msra.mxu1 %v15555_v56  ;;  %v9631_v12 = vadd.f32 %v9630_v11, %v9618_v43  ;;  %v9643_v15 = vpop.f32.mrf.mxu1  ;;  %v304_v43 = vld [vmem:[%s16062_s30 + $0x58] sm:$0xff]  ;;  %v15616_v56 = vld [vmem:[%s16067_s11 + $0x1628] sm:$0xff] }
 0x2b3   : > { %9862 = vmatpush.bf16.msra.mxu2 %v15563_v57  ;;  %2468 = vst [vmem:[#allocation1] ss:$9 sm:$0xff] %v304_v43  ;;  %v15624_v57 = vld [vmem:[%s16067_s11 + $0x1668] sm:$0xff] }
 0x2b4   : > { %9875 = vmatpush.bf16.msra.mxu3 %v15571_v58  ;;  %9837 = vmatmul.bf16.vlgmr.msra.gmra.mxu0 %v2459_v63  ;;  %v9644_v18 = vadd.f32 %v9643_v15, %v9631_v12  ;;  %v15632_v58 = vld [vmem:[%s16067_s11 + $0x16a8] sm:$0xff]  ;;  %v15623_v63 = vld [vmem:[%s16067_s11 + $0x1660] sm:$0xff] }
 0x2b5   : > { %9881 = vmatpush.bf16.msrb.mxu0 %v15586_v59  ;;  %9850 = vmatmul.bf16.vlgmr.msra.gmra.mxu1 %v2460_v1  ;;  %v15640_v59 = vld [vmem:[%s16067_s11 + $0x16e8] sm:$0xff]  ;;  %v15631_v1 = vld [vmem:[%s16067_s11 + $0x16a0] sm:$0xff] }
 0x2b6   : > { %9894 = vmatpush.bf16.msrb.mxu1 %v15594_v60  ;;  %9863 = vmatmul.bf16.vlgmr.msra.gmra.mxu2 %v2461_v0  ;;  %v15672_v43 = vld [vmem:[%s16067_s11 + $0x17e8] sm:$0xff] }
 0x2b7   : > { %9907 = vmatpush.bf16.msrb.mxu2 %v15602_v61  ;;  %9876 = vmatmul.bf16.vlgmr.msra.gmra.mxu3 %v2462_v2  ;;  %v15639_v2 = vld [vmem:[%s16067_s11 + $0x16e0] sm:$0xff] }
 0x2b8   : > { %9920 = vmatpush.bf16.msrb.mxu3 %v15610_v62  ;;  %v15615_v62 = vld [vmem:[%s16067_s11 + $0x1620] sm:$0xff] }
 0x2b9   : > { %9882 = vmatpush.bf16.msrb.mxu0 %v15585_v3  ;;  %v9656_v23 = vpop.f32.mrf.mxu2  ;;  %v9632_v26 = vpop.f32.mrf.mxu0 }
 0x2ba   : > { %9895 = vmatpush.bf16.msrb.mxu1 %v15593_v4  ;;  %v9657_v24 = vadd.f32 %v9656_v23, %v9644_v18  ;;  %v9669_v25 = vpop.f32.mrf.mxu3  ;;  %v9645_v30 = vpop.f32.mrf.mxu1  ;;  %v15614_v4 = vld [vmem:[%s16067_s11 + $0x1618] sm:$0xff]  ;;  %v15612_v18 = vld [vmem:[%s16067_s11 + $0x1608] sm:$0xff]  ;;  %v15627_v26 = vld [vmem:[%s16067_s11 + $0x1680] sm:$0xff] }
 0x2bb   : > { %9908 = vmatpush.bf16.msrb.mxu2 %v15601_v5  ;;  %v15622_v5 = vld [vmem:[%s16067_s11 + $0x1658] sm:$0xff] }
 0x2bc   : > { %9921 = vmatpush.bf16.msrb.mxu3 %v15609_v6  ;;  %v16797_v27 = vadd.f32 %v9669_v25, %v9657_v24  ;;  %v15630_v6 = vld [vmem:[%s16067_s11 + $0x1698] sm:$0xff]  ;;  %v15611_v24 = vld [vmem:[%s16067_s11 + $0x1600] sm:$0xff] }
 0x2bd   : > { %9883 = vmatpush.bf16.msrb.mxu0 %v15584_v7  ;;  %v15638_v7 = vld [vmem:[%s16067_s11 + $0x16d8] sm:$0xff]  ;;  %v15619_v25 = vld [vmem:[%s16067_s11 + $0x1640] sm:$0xff] }
 0x2be   : > { %9896 = vmatpush.bf16.msrb.mxu1 %v15592_v8  ;;  %v15666_v30 = vld [vmem:[%s16067_s11 + $0x17b8] sm:$0xff] }
 0x2bf   : > { %9909 = vmatpush.bf16.msrb.mxu2 %v15600_v9 }
 0x2c0   : > { %9922 = vmatpush.bf16.msrb.mxu3 %v15608_v10 }
 0x2c1   : > { %9884 = vmatpush.bf16.msrb.mxu0 %v15583_v13  ;;  %v9658_v39 = vpop.f32.mrf.mxu2  ;;  %v15613_v13 = vld [vmem:[%s16067_s11 + $0x1610] sm:$0xff] }
 0x2c2   : > { %9897 = vmatpush.bf16.msrb.mxu1 %v15591_v14  ;;  %v9671_v42 = vpop.f32.mrf.mxu3  ;;  %v15621_v14 = vld [vmem:[%s16067_s11 + $0x1650] sm:$0xff] }
 0x2c3   : > { %9910 = vmatpush.bf16.msrb.mxu2 %v15599_v16  ;;  %v15629_v16 = vld [vmem:[%s16067_s11 + $0x1690] sm:$0xff]  ;;  %v15664_v42 = vld [vmem:[%s16067_s11 + $0x17a8] sm:$0xff] }
 0x2c4   : > { %9923 = vmatpush.bf16.msrb.mxu3 %v15607_v17  ;;  %v15637_v17 = vld [vmem:[%s16067_s11 + $0x16d0] sm:$0xff] }
 0x2c5   : > { %9885 = vmatpush.bf16.msrb.mxu0 %v15582_v19  ;;  %v15620_v19 = vld [vmem:[%s16067_s11 + $0x1648] sm:$0xff]  ;;  %v15673_v39 = vld [vmem:[%s16067_s11 + $0x17f0] sm:$0xff] }
 0x2c6   : > { %9898 = vmatpush.bf16.msrb.mxu1 %v15590_v20  ;;  %v15628_v20 = vld [vmem:[%s16067_s11 + $0x1688] sm:$0xff] }
 0x2c7   : > { %9911 = vmatpush.bf16.msrb.mxu2 %v15598_v21  ;;  %v15636_v21 = vld [vmem:[%s16067_s11 + $0x16c8] sm:$0xff] }
 0x2c8   : > { %9924 = vmatpush.bf16.msrb.mxu3 %v15606_v22 }
 0x2c9   : > { %9886 = vmatpush.bf16.msrb.mxu0 %v15581_v28  ;;  %v15650_v28 = vld [vmem:[%s16067_s11 + $0x1738] sm:$0xff] }
 0x2ca   : > { %9899 = vmatpush.bf16.msrb.mxu1 %v15589_v29  ;;  %v15658_v29 = vld [vmem:[%s16067_s11 + $0x1778] sm:$0xff] }
 0x2cb   : > { %9912 = vmatpush.bf16.msrb.mxu2 %v15597_v31  ;;  %v15674_v31 = vld [vmem:[%s16067_s11 + $0x17f8] sm:$0xff] }
 0x2cc   : > { %9925 = vmatpush.bf16.msrb.mxu3 %v15605_v32  ;;  %v2469_v32 = vld [vmem:[#allocation1] sm:$0xff] }
 0x2cd   : > { %9887 = vmatpush.bf16.msrb.mxu0 %v15580_v33  ;;  %v2471_v33 = vld [vmem:[#allocation1 + $0x12] sm:$0xff] }
 0x2ce   : > { %9900 = vmatpush.bf16.msrb.mxu1 %v15588_v34  ;;  %v2470_v34 = vld [vmem:[#allocation1 + $0x9] sm:$0xff] }
 0x2cf   : > { %9913 = vmatpush.bf16.msrb.mxu2 %v15596_v35  ;;  %v2472_v35 = vld [vmem:[#allocation1 + $0x1b] sm:$0xff] }
 0x2d0   : > { %9926 = vmatpush.bf16.msrb.mxu3 %v15604_v36  ;;  %v15649_v36 = vld [vmem:[%s16067_s11 + $0x1730] sm:$0xff] }
 0x2d1   : > { %9888 = vmatpush.bf16.msrb.mxu0 %v15579_v44  ;;  %v9682_v60 = vpop.f32.mrf.mxu0 }
 0x2d2   : > { %9901 = vmatpush.bf16.msrb.mxu1 %v15587_v45  ;;  %v9683_v61 = vadd.f32 %v9682_v60, %v16797_v27  ;;  %v9695_v0 = vpop.f32.mrf.mxu1  ;;  %v15635_v27 = vld [vmem:[%s16067_s11 + $0x16c0] sm:$0xff] }
 0x2d3   : > { %9914 = vmatpush.bf16.msrb.mxu2 %v15595_v46  ;;  %v15647_v46 = vld [vmem:[%s16067_s11 + $0x1720] sm:$0xff] }
 0x2d4   : > { %9927 = vmatpush.bf16.msrb.mxu3 %v15603_v47  ;;  %9889 = vmatmul.bf16.vlgmr.msrb.gmra.mxu0 %v2463_v37  ;;  %v9696_v3 = vadd.f32 %v9695_v0, %v9683_v61  ;;  %v15657_v37 = vld [vmem:[%s16067_s11 + $0x1770] sm:$0xff]  ;;  %v15655_v47 = vld [vmem:[%s16067_s11 + $0x1760] sm:$0xff] }
 0x2d5   : > { %9933 = vmatpush.bf16.msra.mxu0 %v15618_v48  ;;  %9902 = vmatmul.bf16.vlgmr.msrb.gmra.mxu1 %v2464_v40  ;;  %v15648_v40 = vld [vmem:[%s16067_s11 + $0x1728] sm:$0xff]  ;;  %v15645_v61 = vld [vmem:[%s16067_s11 + $0x1710] sm:$0xff] }
 0x2d6   : > { %9946 = vmatpush.bf16.msra.mxu1 %v15626_v49  ;;  %9915 = vmatmul.bf16.vlgmr.msrb.gmra.mxu2 %v2465_v38  ;;  %v15665_v38 = vld [vmem:[%s16067_s11 + $0x17b0] sm:$0xff]  ;;  %v15663_v49 = vld [vmem:[%s16067_s11 + $0x17a0] sm:$0xff] }
 0x2d7   : > { %9959 = vmatpush.bf16.msra.mxu2 %v15634_v50  ;;  %9928 = vmatmul.bf16.vlgmr.msrb.gmra.mxu3 %v2466_v41  ;;  %v15656_v41 = vld [vmem:[%s16067_s11 + $0x1768] sm:$0xff]  ;;  %v15671_v50 = vld [vmem:[%s16067_s11 + $0x17e0] sm:$0xff]  ;;  %v15661_v0 = vld [vmem:[%s16067_s11 + $0x1790] sm:$0xff] }
 0x2d8   : > { %9972 = vmatpush.bf16.msra.mxu3 %v15642_v51 }
 0x2d9   : > { %9934 = vmatpush.bf16.msra.mxu0 %v15617_v52  ;;  %v9708_v8 = vpop.f32.mrf.mxu2  ;;  %v9684_v11 = vpop.f32.mrf.mxu0  ;;  %v15646_v52 = vld [vmem:[%s16067_s11 + $0x1718] sm:$0xff] }
 0x2da   : > { %9947 = vmatpush.bf16.msra.mxu1 %v15625_v53  ;;  %v9709_v9 = vadd.f32 %v9708_v8, %v9696_v3  ;;  %v9721_v10 = vpop.f32.mrf.mxu3  ;;  %v9697_v15 = vpop.f32.mrf.mxu1  ;;  %v15654_v53 = vld [vmem:[%s16067_s11 + $0x1758] sm:$0xff]  ;;  %v15652_v3 = vld [vmem:[%s16067_s11 + $0x1748] sm:$0xff] }
 0x2db   : > { %9960 = vmatpush.bf16.msra.mxu2 %v15633_v54  ;;  %v15662_v54 = vld [vmem:[%s16067_s11 + $0x1798] sm:$0xff]  ;;  %v15659_v15 = vld [vmem:[%s16067_s11 + $0x1780] sm:$0xff] }
 0x2dc   : > { %9973 = vmatpush.bf16.msra.mxu3 %v15641_v55  ;;  %v9722_v12 = vadd.f32 %v9721_v10, %v9709_v9  ;;  %v15670_v55 = vld [vmem:[%s16067_s11 + $0x17d8] sm:$0xff]  ;;  %v2474_v9 = vld [vmem:[#allocation1 + $0x2d] sm:$0xff] }
 0x2dd   : > { %9935 = vmatpush.bf16.msra.mxu0 %v15616_v56  ;;  %v2476_v10 = vld [vmem:[#allocation1 + $0x3f] sm:$0xff] }
 0x2de   : > { %9948 = vmatpush.bf16.msra.mxu1 %v15624_v57 }
 0x2df   : > { %9961 = vmatpush.bf16.msra.mxu2 %v15632_v58 }
 0x2e0   : > { %9974 = vmatpush.bf16.msra.mxu3 %v15640_v59 }
 0x2e1   : > { %9936 = vmatpush.bf16.msra.mxu0 %v15615_v62  ;;  %v9710_v22 = vpop.f32.mrf.mxu2  ;;  %v15653_v62 = vld [vmem:[%s16067_s11 + $0x1750] sm:$0xff] }
 0x2e2   : > { %9949 = vmatpush.bf16.msra.mxu1 %v15623_v63  ;;  %v9723_v23 = vpop.f32.mrf.mxu3  ;;  %v15689_v22 = vld [vmem:[%s16067_s11 + $0x1870] sm:$0xff] }
 0x2e3   : > { %9962 = vmatpush.bf16.msra.mxu2 %v15631_v1  ;;  %v15669_v1 = vld [vmem:[%s16067_s11 + $0x17d0] sm:$0xff] }
 0x2e4   : > { %9975 = vmatpush.bf16.msra.mxu3 %v15639_v2  ;;  %v15644_v2 = vld [vmem:[%s16067_s11 + $0x1708] sm:$0xff]  ;;  %v15697_v23 = vld [vmem:[%s16067_s11 + $0x18b0] sm:$0xff] }
 0x2e5   : > { %9937 = vmatpush.bf16.msra.mxu0 %v15614_v4  ;;  %v15660_v4 = vld [vmem:[%s16067_s11 + $0x1788] sm:$0xff] }
 0x2e6   : > { %9950 = vmatpush.bf16.msra.mxu1 %v15622_v5  ;;  %v15668_v5 = vld [vmem:[%s16067_s11 + $0x17c8] sm:$0xff] }
 0x2e7   : > { %9963 = vmatpush.bf16.msra.mxu2 %v15630_v6  ;;  %v2473_v6 = vld [vmem:[#allocation1 + $0x24] sm:$0xff] }
 0x2e8   : > { %9976 = vmatpush.bf16.msra.mxu3 %v15638_v7  ;;  %v2475_v7 = vld [vmem:[#allocation1 + $0x36] sm:$0xff] }
 0x2e9   : > { %9938 = vmatpush.bf16.msra.mxu0 %v15613_v13  ;;  %v15643_v13 = vld [vmem:[%s16067_s11 + $0x1700] sm:$0xff] }
 0x2ea   : > { %9951 = vmatpush.bf16.msra.mxu1 %v15621_v14  ;;  %v15651_v14 = vld [vmem:[%s16067_s11 + $0x1740] sm:$0xff] }
 0x2eb   : > { %9964 = vmatpush.bf16.msra.mxu2 %v15629_v16  ;;  %v15667_v16 = vld [vmem:[%s16067_s11 + $0x17c0] sm:$0xff] }
 0x2ec   : > { %9977 = vmatpush.bf16.msra.mxu3 %v15637_v17  ;;  %v15682_v17 = vld [vmem:[%s16067_s11 + $0x1838] sm:$0xff] }
 0x2ed   : > { %9939 = vmatpush.bf16.msra.mxu0 %v15612_v18  ;;  %v15690_v18 = vld [vmem:[%s16067_s11 + $0x1878] sm:$0xff] }
 0x2ee   : > { %9952 = vmatpush.bf16.msra.mxu1 %v15620_v19  ;;  %v15698_v19 = vld [vmem:[%s16067_s11 + $0x18b8] sm:$0xff] }
 0x2ef   : > { %9965 = vmatpush.bf16.msra.mxu2 %v15628_v20  ;;  %v15706_v20 = vld [vmem:[%s16067_s11 + $0x18f8] sm:$0xff] }
 0x2f0   : > { %9978 = vmatpush.bf16.msra.mxu3 %v15636_v21  ;;  %v15681_v21 = vld [vmem:[%s16067_s11 + $0x1830] sm:$0xff] }
 0x2f1   : > { %9940 = vmatpush.bf16.msra.mxu0 %v15611_v24  ;;  %v9734_v44 = vpop.f32.mrf.mxu0  ;;  %v15705_v24 = vld [vmem:[%s16067_s11 + $0x18f0] sm:$0xff] }
 0x2f2   : > { %9953 = vmatpush.bf16.msra.mxu1 %v15619_v25  ;;  %v9735_v45 = vadd.f32 %v9734_v44, %v9722_v12  ;;  %v9747_v48 = vpop.f32.mrf.mxu1  ;;  %v305_v12 = vld [vmem:[%s16062_s30 + $0x60] sm:$0xff]  ;;  %v15680_v25 = vld [vmem:[%s16067_s11 + $0x1828] sm:$0xff] }
 0x2f3   : > { %9966 = vmatpush.bf16.msra.mxu2 %v15627_v26  ;;  %2478 = vst [vmem:[#allocation1] ss:$9 sm:$0xff] %v305_v12  ;;  %v15688_v26 = vld [vmem:[%s16067_s11 + $0x1868] sm:$0xff] }
 0x2f4   : > { %9979 = vmatpush.bf16.msra.mxu3 %v15635_v27  ;;  %9941 = vmatmul.bf16.vlgmr.msra.gmra.mxu0 %v2469_v32  ;;  %v9748_v51 = vadd.f32 %v9747_v48, %v9735_v45  ;;  %v15696_v27 = vld [vmem:[%s16067_s11 + $0x18a8] sm:$0xff]  ;;  %v15687_v32 = vld [vmem:[%s16067_s11 + $0x1860] sm:$0xff] }
 0x2f5   : > { %9985 = vmatpush.bf16.msrb.mxu0 %v15650_v28  ;;  %9954 = vmatmul.bf16.vlgmr.msra.gmra.mxu1 %v2470_v34  ;;  %v15704_v28 = vld [vmem:[%s16067_s11 + $0x18e8] sm:$0xff]  ;;  %v15695_v34 = vld [vmem:[%s16067_s11 + $0x18a0] sm:$0xff] }
 0x2f6   : > { %9998 = vmatpush.bf16.msrb.mxu1 %v15658_v29  ;;  %9967 = vmatmul.bf16.vlgmr.msra.gmra.mxu2 %v2471_v33  ;;  %v15736_v12 = vld [vmem:[%s16067_s11 + $0x19e8] sm:$0xff] }
 0x2f7   : > { %10011 = vmatpush.bf16.msrb.mxu2 %v15666_v30  ;;  %9980 = vmatmul.bf16.vlgmr.msra.gmra.mxu3 %v2472_v35  ;;  %v15703_v35 = vld [vmem:[%s16067_s11 + $0x18e0] sm:$0xff] }
 0x2f8   : > { %10024 = vmatpush.bf16.msrb.mxu3 %v15674_v31  ;;  %v15679_v31 = vld [vmem:[%s16067_s11 + $0x1820] sm:$0xff] }
 0x2f9   : > { %9986 = vmatpush.bf16.msrb.mxu0 %v15649_v36  ;;  %v9760_v56 = vpop.f32.mrf.mxu2  ;;  %v9736_v59 = vpop.f32.mrf.mxu0 }
 0x2fa   : > { %9999 = vmatpush.bf16.msrb.mxu1 %v15657_v37  ;;  %v9761_v57 = vadd.f32 %v9760_v56, %v9748_v51  ;;  %v9773_v58 = vpop.f32.mrf.mxu3  ;;  %v9749_v63 = vpop.f32.mrf.mxu1  ;;  %v15678_v37 = vld [vmem:[%s16067_s11 + $0x1818] sm:$0xff]  ;;  %v15676_v51 = vld [vmem:[%s16067_s11 + $0x1808] sm:$0xff]  ;;  %v15691_v59 = vld [vmem:[%s16067_s11 + $0x1880] sm:$0xff] }
 0x2fb   : > { %10012 = vmatpush.bf16.msrb.mxu2 %v15665_v38  ;;  %v15686_v38 = vld [vmem:[%s16067_s11 + $0x1858] sm:$0xff] }
 0x2fc   : > { %10025 = vmatpush.bf16.msrb.mxu3 %v15673_v39  ;;  %v16865_v60 = vadd.f32 %v9773_v58, %v9761_v57  ;;  %v15694_v39 = vld [vmem:[%s16067_s11 + $0x1898] sm:$0xff]  ;;  %v15675_v57 = vld [vmem:[%s16067_s11 + $0x1800] sm:$0xff] }
 0x2fd   : > { %9987 = vmatpush.bf16.msrb.mxu0 %v15648_v40  ;;  %v15702_v40 = vld [vmem:[%s16067_s11 + $0x18d8] sm:$0xff]  ;;  %v15683_v58 = vld [vmem:[%s16067_s11 + $0x1840] sm:$0xff] }
 0x2fe   : > { %10000 = vmatpush.bf16.msrb.mxu1 %v15656_v41  ;;  %v15730_v63 = vld [vmem:[%s16067_s11 + $0x19b8] sm:$0xff] }
 0x2ff   : > { %10013 = vmatpush.bf16.msrb.mxu2 %v15664_v42 }
 0x300   : > { %10026 = vmatpush.bf16.msrb.mxu3 %v15672_v43 }
 0x301   : > { %9988 = vmatpush.bf16.msrb.mxu0 %v15647_v46  ;;  %v9762_v8 = vpop.f32.mrf.mxu2  ;;  %v15677_v46 = vld [vmem:[%s16067_s11 + $0x1810] sm:$0xff] }
 0x302   : > { %10001 = vmatpush.bf16.msrb.mxu1 %v15655_v47  ;;  %v9775_v11 = vpop.f32.mrf.mxu3  ;;  %v15685_v47 = vld [vmem:[%s16067_s11 + $0x1850] sm:$0xff] }
 0x303   : > { %10014 = vmatpush.bf16.msrb.mxu2 %v15663_v49  ;;  %v15693_v49 = vld [vmem:[%s16067_s11 + $0x1890] sm:$0xff]  ;;  %v15728_v11 = vld [vmem:[%s16067_s11 + $0x19a8] sm:$0xff] }
 0x304   : > { %10027 = vmatpush.bf16.msrb.mxu3 %v15671_v50  ;;  %v15701_v50 = vld [vmem:[%s16067_s11 + $0x18d0] sm:$0xff] }
 0x305   : > { %9989 = vmatpush.bf16.msrb.mxu0 %v15646_v52  ;;  %v15684_v52 = vld [vmem:[%s16067_s11 + $0x1848] sm:$0xff]  ;;  %v15737_v8 = vld [vmem:[%s16067_s11 + $0x19f0] sm:$0xff] }
 0x306   : > { %10002 = vmatpush.bf16.msrb.mxu1 %v15654_v53  ;;  %v15692_v53 = vld [vmem:[%s16067_s11 + $0x1888] sm:$0xff] }
 0x307   : > { %10015 = vmatpush.bf16.msrb.mxu2 %v15662_v54  ;;  %v15700_v54 = vld [vmem:[%s16067_s11 + $0x18c8] sm:$0xff] }
 0x308   : > { %10028 = vmatpush.bf16.msrb.mxu3 %v15670_v55 }
 0x309   : > { %9990 = vmatpush.bf16.msrb.mxu0 %v15645_v61  ;;  %v15714_v61 = vld [vmem:[%s16067_s11 + $0x1938] sm:$0xff] }
 0x30a   : > { %10003 = vmatpush.bf16.msrb.mxu1 %v15653_v62  ;;  %v15722_v62 = vld [vmem:[%s16067_s11 + $0x1978] sm:$0xff] }
 0x30b   : > { %10016 = vmatpush.bf16.msrb.mxu2 %v15661_v0  ;;  %v15738_v0 = vld [vmem:[%s16067_s11 + $0x19f8] sm:$0xff] }
 0x30c   : > { %10029 = vmatpush.bf16.msrb.mxu3 %v15669_v1  ;;  %v2479_v1 = vld [vmem:[#allocation1] sm:$0xff] }
 0x30d   : > { %9991 = vmatpush.bf16.msrb.mxu0 %v15644_v2  ;;  %v2481_v2 = vld [vmem:[#allocation1 + $0x12] sm:$0xff] }
 0x30e   : > { %10004 = vmatpush.bf16.msrb.mxu1 %v15652_v3  ;;  %v2480_v3 = vld [vmem:[#allocation1 + $0x9] sm:$0xff] }
 0x30f   : > { %10017 = vmatpush.bf16.msrb.mxu2 %v15660_v4  ;;  %v2482_v4 = vld [vmem:[#allocation1 + $0x1b] sm:$0xff] }
 0x310   : > { %10030 = vmatpush.bf16.msrb.mxu3 %v15668_v5  ;;  %v15713_v5 = vld [vmem:[%s16067_s11 + $0x1930] sm:$0xff] }
 0x311   : > { %9992 = vmatpush.bf16.msrb.mxu0 %v15643_v13  ;;  %v9786_v29 = vpop.f32.mrf.mxu0 }
 0x312   : > { %10005 = vmatpush.bf16.msrb.mxu1 %v15651_v14  ;;  %v9787_v30 = vadd.f32 %v9786_v29, %v16865_v60  ;;  %v9799_v33 = vpop.f32.mrf.mxu1  ;;  %v15699_v60 = vld [vmem:[%s16067_s11 + $0x18c0] sm:$0xff] }
 0x313   : > { %10018 = vmatpush.bf16.msrb.mxu2 %v15659_v15  ;;  %v15711_v15 = vld [vmem:[%s16067_s11 + $0x1920] sm:$0xff] }
 0x314   : > { %10031 = vmatpush.bf16.msrb.mxu3 %v15667_v16  ;;  %9993 = vmatmul.bf16.vlgmr.msrb.gmra.mxu0 %v2473_v6  ;;  %v9800_v36 = vadd.f32 %v9799_v33, %v9787_v30  ;;  %v15721_v6 = vld [vmem:[%s16067_s11 + $0x1970] sm:$0xff]  ;;  %v15719_v16 = vld [vmem:[%s16067_s11 + $0x1960] sm:$0xff] }
 0x315   : > { %10037 = vmatpush.bf16.msra.mxu0 %v15682_v17  ;;  %10006 = vmatmul.bf16.vlgmr.msrb.gmra.mxu1 %v2474_v9  ;;  %v15712_v9 = vld [vmem:[%s16067_s11 + $0x1928] sm:$0xff]  ;;  %v15709_v30 = vld [vmem:[%s16067_s11 + $0x1910] sm:$0xff] }
 0x316   : > { %10050 = vmatpush.bf16.msra.mxu1 %v15690_v18  ;;  %10019 = vmatmul.bf16.vlgmr.msrb.gmra.mxu2 %v2475_v7  ;;  %v15729_v7 = vld [vmem:[%s16067_s11 + $0x19b0] sm:$0xff]  ;;  %v15727_v18 = vld [vmem:[%s16067_s11 + $0x19a0] sm:$0xff] }
 0x317   : > { %10063 = vmatpush.bf16.msra.mxu2 %v15698_v19  ;;  %10032 = vmatmul.bf16.vlgmr.msrb.gmra.mxu3 %v2476_v10  ;;  %v15720_v10 = vld [vmem:[%s16067_s11 + $0x1968] sm:$0xff]  ;;  %v15735_v19 = vld [vmem:[%s16067_s11 + $0x19e0] sm:$0xff]  ;;  %v15725_v33 = vld [vmem:[%s16067_s11 + $0x1990] sm:$0xff] }
 0x318   : > { %10076 = vmatpush.bf16.msra.mxu3 %v15706_v20 }
 0x319   : > { %10038 = vmatpush.bf16.msra.mxu0 %v15681_v21  ;;  %v9812_v41 = vpop.f32.mrf.mxu2  ;;  %v9788_v44 = vpop.f32.mrf.mxu0  ;;  %v15710_v21 = vld [vmem:[%s16067_s11 + $0x1918] sm:$0xff] }
 0x31a   : > { %10051 = vmatpush.bf16.msra.mxu1 %v15689_v22  ;;  %v9813_v42 = vadd.f32 %v9812_v41, %v9800_v36  ;;  %v9825_v43 = vpop.f32.mrf.mxu3  ;;  %v9801_v48 = vpop.f32.mrf.mxu1  ;;  %v15718_v22 = vld [vmem:[%s16067_s11 + $0x1958] sm:$0xff]  ;;  %v15716_v36 = vld [vmem:[%s16067_s11 + $0x1948] sm:$0xff] }
 0x31b   : > { %10064 = vmatpush.bf16.msra.mxu2 %v15697_v23  ;;  %v15726_v23 = vld [vmem:[%s16067_s11 + $0x1998] sm:$0xff]  ;;  %v15723_v48 = vld [vmem:[%s16067_s11 + $0x1980] sm:$0xff] }
 0x31c   : > { %10077 = vmatpush.bf16.msra.mxu3 %v15705_v24  ;;  %v9826_v45 = vadd.f32 %v9825_v43, %v9813_v42  ;;  %v15734_v24 = vld [vmem:[%s16067_s11 + $0x19d8] sm:$0xff]  ;;  %v2484_v42 = vld [vmem:[#allocation1 + $0x2d] sm:$0xff] }
 0x31d   : > { %10039 = vmatpush.bf16.msra.mxu0 %v15680_v25  ;;  %v2486_v43 = vld [vmem:[#allocation1 + $0x3f] sm:$0xff] }
 0x31e   : > { %10052 = vmatpush.bf16.msra.mxu1 %v15688_v26 }
 0x31f   : > { %10065 = vmatpush.bf16.msra.mxu2 %v15696_v27 }
 0x320   : > { %10078 = vmatpush.bf16.msra.mxu3 %v15704_v28 }
 0x321   : > { %10040 = vmatpush.bf16.msra.mxu0 %v15679_v31  ;;  %v9814_v55 = vpop.f32.mrf.mxu2  ;;  %v15717_v31 = vld [vmem:[%s16067_s11 + $0x1950] sm:$0xff] }
 0x322   : > { %10053 = vmatpush.bf16.msra.mxu1 %v15687_v32  ;;  %v9827_v56 = vpop.f32.mrf.mxu3  ;;  %v15753_v55 = vld [vmem:[%s16067_s11 + $0x1a70] sm:$0xff] }
 0x323   : > { %10066 = vmatpush.bf16.msra.mxu2 %v15695_v34  ;;  %v15733_v34 = vld [vmem:[%s16067_s11 + $0x19d0] sm:$0xff] }
 0x324   : > { %10079 = vmatpush.bf16.msra.mxu3 %v15703_v35  ;;  %v15708_v35 = vld [vmem:[%s16067_s11 + $0x1908] sm:$0xff]  ;;  %v15761_v56 = vld [vmem:[%s16067_s11 + $0x1ab0] sm:$0xff] }
 0x325   : > { %10041 = vmatpush.bf16.msra.mxu0 %v15678_v37  ;;  %v15724_v37 = vld [vmem:[%s16067_s11 + $0x1988] sm:$0xff] }
 0x326   : > { %10054 = vmatpush.bf16.msra.mxu1 %v15686_v38  ;;  %v15732_v38 = vld [vmem:[%s16067_s11 + $0x19c8] sm:$0xff] }
 0x327   : > { %10067 = vmatpush.bf16.msra.mxu2 %v15694_v39  ;;  %v2483_v39 = vld [vmem:[#allocation1 + $0x24] sm:$0xff] }
 0x328   : > { %10080 = vmatpush.bf16.msra.mxu3 %v15702_v40  ;;  %v2485_v40 = vld [vmem:[#allocation1 + $0x36] sm:$0xff] }
 0x329   : > { %10042 = vmatpush.bf16.msra.mxu0 %v15677_v46  ;;  %v15707_v46 = vld [vmem:[%s16067_s11 + $0x1900] sm:$0xff] }
 0x32a   : > { %10055 = vmatpush.bf16.msra.mxu1 %v15685_v47  ;;  %v15715_v47 = vld [vmem:[%s16067_s11 + $0x1940] sm:$0xff] }
 0x32b   : > { %10068 = vmatpush.bf16.msra.mxu2 %v15693_v49  ;;  %v15731_v49 = vld [vmem:[%s16067_s11 + $0x19c0] sm:$0xff] }
 0x32c   : > { %10081 = vmatpush.bf16.msra.mxu3 %v15701_v50  ;;  %v15746_v50 = vld [vmem:[%s16067_s11 + $0x1a38] sm:$0xff] }
 0x32d   : > { %10043 = vmatpush.bf16.msra.mxu0 %v15676_v51  ;;  %v15754_v51 = vld [vmem:[%s16067_s11 + $0x1a78] sm:$0xff] }
 0x32e   : > { %10056 = vmatpush.bf16.msra.mxu1 %v15684_v52  ;;  %v15762_v52 = vld [vmem:[%s16067_s11 + $0x1ab8] sm:$0xff] }
 0x32f   : > { %10069 = vmatpush.bf16.msra.mxu2 %v15692_v53  ;;  %v15770_v53 = vld [vmem:[%s16067_s11 + $0x1af8] sm:$0xff] }
 0x330   : > { %10082 = vmatpush.bf16.msra.mxu3 %v15700_v54  ;;  %v15745_v54 = vld [vmem:[%s16067_s11 + $0x1a30] sm:$0xff] }
 0x331   : > { %10044 = vmatpush.bf16.msra.mxu0 %v15675_v57  ;;  %v9838_v13 = vpop.f32.mrf.mxu0  ;;  %v15769_v57 = vld [vmem:[%s16067_s11 + $0x1af0] sm:$0xff] }
 0x332   : > { %10057 = vmatpush.bf16.msra.mxu1 %v15683_v58  ;;  %v9839_v14 = vadd.f32 %v9838_v13, %v9826_v45  ;;  %v9851_v17 = vpop.f32.mrf.mxu1  ;;  %v306_v45 = vld [vmem:[%s16062_s30 + $0x68] sm:$0xff] }
 0x333   : > { %10070 = vmatpush.bf16.msra.mxu2 %v15691_v59  ;;  %2488 = vst [vmem:[#allocation1] ss:$9 sm:$0xff] %v306_v45  ;;  %v15744_v58 = vld [vmem:[%s16067_s11 + $0x1a28] sm:$0xff] }
 0x334   : > { %10083 = vmatpush.bf16.msra.mxu3 %v15699_v60  ;;  %10045 = vmatmul.bf16.vlgmr.msra.gmra.mxu0 %v2479_v1  ;;  %v9852_v20 = vadd.f32 %v9851_v17, %v9839_v14  ;;  %v15752_v59 = vld [vmem:[%s16067_s11 + $0x1a68] sm:$0xff]  ;;  %v15751_v1 = vld [vmem:[%s16067_s11 + $0x1a60] sm:$0xff] }
 0x335   : > { %10089 = vmatpush.bf16.msrb.mxu0 %v15714_v61  ;;  %10058 = vmatmul.bf16.vlgmr.msra.gmra.mxu1 %v2480_v3  ;;  %v15760_v60 = vld [vmem:[%s16067_s11 + $0x1aa8] sm:$0xff]  ;;  %v15759_v3 = vld [vmem:[%s16067_s11 + $0x1aa0] sm:$0xff] }
 0x336   : > { %10102 = vmatpush.bf16.msrb.mxu1 %v15722_v62  ;;  %10071 = vmatmul.bf16.vlgmr.msra.gmra.mxu2 %v2481_v2  ;;  %v15768_v61 = vld [vmem:[%s16067_s11 + $0x1ae8] sm:$0xff] }
 0x337   : > { %10115 = vmatpush.bf16.msrb.mxu2 %v15730_v63  ;;  %10084 = vmatmul.bf16.vlgmr.msra.gmra.mxu3 %v2482_v4  ;;  %v15767_v4 = vld [vmem:[%s16067_s11 + $0x1ae0] sm:$0xff]  ;;  %v15800_v45 = vld [vmem:[%s16067_s11 + $0x1be8] sm:$0xff] }
 0x338   : > { %10128 = vmatpush.bf16.msrb.mxu3 %v15738_v0  ;;  %v15743_v0 = vld [vmem:[%s16067_s11 + $0x1a20] sm:$0xff] }
 0x339   : > { %10090 = vmatpush.bf16.msrb.mxu0 %v15713_v5  ;;  %v9864_v25 = vpop.f32.mrf.mxu2  ;;  %v9840_v28 = vpop.f32.mrf.mxu0 }
 0x33a   : > { %10103 = vmatpush.bf16.msrb.mxu1 %v15721_v6  ;;  %v9865_v26 = vadd.f32 %v9864_v25, %v9852_v20  ;;  %v9877_v27 = vpop.f32.mrf.mxu3  ;;  %v9853_v32 = vpop.f32.mrf.mxu1  ;;  %v15742_v6 = vld [vmem:[%s16067_s11 + $0x1a18] sm:$0xff]  ;;  %v15740_v20 = vld [vmem:[%s16067_s11 + $0x1a08] sm:$0xff]  ;;  %v15755_v28 = vld [vmem:[%s16067_s11 + $0x1a80] sm:$0xff] }
 0x33b   : > { %10116 = vmatpush.bf16.msrb.mxu2 %v15729_v7  ;;  %v15750_v7 = vld [vmem:[%s16067_s11 + $0x1a58] sm:$0xff] }
 0x33c   : > { %10129 = vmatpush.bf16.msrb.mxu3 %v15737_v8  ;;  %v16933_v29 = vadd.f32 %v9877_v27, %v9865_v26  ;;  %v15758_v8 = vld [vmem:[%s16067_s11 + $0x1a98] sm:$0xff]  ;;  %v15739_v26 = vld [vmem:[%s16067_s11 + $0x1a00] sm:$0xff] }
 0x33d   : > { %10091 = vmatpush.bf16.msrb.mxu0 %v15712_v9  ;;  %v15766_v9 = vld [vmem:[%s16067_s11 + $0x1ad8] sm:$0xff]  ;;  %v15747_v27 = vld [vmem:[%s16067_s11 + $0x1a40] sm:$0xff] }
 0x33e   : > { %10104 = vmatpush.bf16.msrb.mxu1 %v15720_v10  ;;  %v15794_v32 = vld [vmem:[%s16067_s11 + $0x1bb8] sm:$0xff] }
 0x33f   : > { %10117 = vmatpush.bf16.msrb.mxu2 %v15728_v11 }
 0x340   : > { %10130 = vmatpush.bf16.msrb.mxu3 %v15736_v12 }
 0x341   : > { %10092 = vmatpush.bf16.msrb.mxu0 %v15711_v15  ;;  %v9866_v41 = vpop.f32.mrf.mxu2  ;;  %v15741_v15 = vld [vmem:[%s16067_s11 + $0x1a10] sm:$0xff] }
 0x342   : > { %10105 = vmatpush.bf16.msrb.mxu1 %v15719_v16  ;;  %v9879_v44 = vpop.f32.mrf.mxu3  ;;  %v15749_v16 = vld [vmem:[%s16067_s11 + $0x1a50] sm:$0xff] }
 0x343   : > { %10118 = vmatpush.bf16.msrb.mxu2 %v15727_v18  ;;  %v15757_v18 = vld [vmem:[%s16067_s11 + $0x1a90] sm:$0xff]  ;;  %v15792_v44 = vld [vmem:[%s16067_s11 + $0x1ba8] sm:$0xff] }
 0x344   : > { %10131 = vmatpush.bf16.msrb.mxu3 %v15735_v19  ;;  %v15765_v19 = vld [vmem:[%s16067_s11 + $0x1ad0] sm:$0xff] }
 0x345   : > { %10093 = vmatpush.bf16.msrb.mxu0 %v15710_v21  ;;  %v15748_v21 = vld [vmem:[%s16067_s11 + $0x1a48] sm:$0xff]  ;;  %v15801_v41 = vld [vmem:[%s16067_s11 + $0x1bf0] sm:$0xff] }
 0x346   : > { %10106 = vmatpush.bf16.msrb.mxu1 %v15718_v22  ;;  %v15756_v22 = vld [vmem:[%s16067_s11 + $0x1a88] sm:$0xff] }
 0x347   : > { %10119 = vmatpush.bf16.msrb.mxu2 %v15726_v23  ;;  %v15764_v23 = vld [vmem:[%s16067_s11 + $0x1ac8] sm:$0xff] }
 0x348   : > { %10132 = vmatpush.bf16.msrb.mxu3 %v15734_v24 }
 0x349   : > { %10094 = vmatpush.bf16.msrb.mxu0 %v15709_v30  ;;  %v15778_v30 = vld [vmem:[%s16067_s11 + $0x1b38] sm:$0xff] }
 0x34a   : > { %10107 = vmatpush.bf16.msrb.mxu1 %v15717_v31  ;;  %v15786_v31 = vld [vmem:[%s16067_s11 + $0x1b78] sm:$0xff] }
 0x34b   : > { %10120 = vmatpush.bf16.msrb.mxu2 %v15725_v33  ;;  %v15802_v33 = vld [vmem:[%s16067_s11 + $0x1bf8] sm:$0xff] }
 0x34c   : > { %10133 = vmatpush.bf16.msrb.mxu3 %v15733_v34  ;;  %v2489_v34 = vld [vmem:[#allocation1] sm:$0xff] }
 0x34d   : > { %10095 = vmatpush.bf16.msrb.mxu0 %v15708_v35  ;;  %v2491_v35 = vld [vmem:[#allocation1 + $0x12] sm:$0xff] }
 0x34e   : > { %10108 = vmatpush.bf16.msrb.mxu1 %v15716_v36  ;;  %v2490_v36 = vld [vmem:[#allocation1 + $0x9] sm:$0xff] }
 0x34f   : > { %10121 = vmatpush.bf16.msrb.mxu2 %v15724_v37  ;;  %v2492_v37 = vld [vmem:[#allocation1 + $0x1b] sm:$0xff] }
 0x350   : > { %10134 = vmatpush.bf16.msrb.mxu3 %v15732_v38  ;;  %v15777_v38 = vld [vmem:[%s16067_s11 + $0x1b30] sm:$0xff] }
 0x351   : > { %10096 = vmatpush.bf16.msrb.mxu0 %v15707_v46  ;;  %v9890_v62 = vpop.f32.mrf.mxu0 }
 0x352   : > { %10109 = vmatpush.bf16.msrb.mxu1 %v15715_v47  ;;  %v9891_v63 = vadd.f32 %v9890_v62, %v16933_v29  ;;  %v9903_v2 = vpop.f32.mrf.mxu1  ;;  %v15763_v29 = vld [vmem:[%s16067_s11 + $0x1ac0] sm:$0xff] }
 0x353   : > { %10122 = vmatpush.bf16.msrb.mxu2 %v15723_v48  ;;  %v15775_v48 = vld [vmem:[%s16067_s11 + $0x1b20] sm:$0xff] }
 0x354   : > { %10135 = vmatpush.bf16.msrb.mxu3 %v15731_v49  ;;  %10097 = vmatmul.bf16.vlgmr.msrb.gmra.mxu0 %v2483_v39  ;;  %v9904_v5 = vadd.f32 %v9903_v2, %v9891_v63  ;;  %v15785_v39 = vld [vmem:[%s16067_s11 + $0x1b70] sm:$0xff]  ;;  %v15783_v49 = vld [vmem:[%s16067_s11 + $0x1b60] sm:$0xff] }
 0x355   : > { %10141 = vmatpush.bf16.msra.mxu0 %v15746_v50  ;;  %10110 = vmatmul.bf16.vlgmr.msrb.gmra.mxu1 %v2484_v42  ;;  %v15776_v42 = vld [vmem:[%s16067_s11 + $0x1b28] sm:$0xff]  ;;  %v15773_v63 = vld [vmem:[%s16067_s11 + $0x1b10] sm:$0xff] }
 0x356   : > { %10154 = vmatpush.bf16.msra.mxu1 %v15754_v51  ;;  %10123 = vmatmul.bf16.vlgmr.msrb.gmra.mxu2 %v2485_v40  ;;  %v15793_v40 = vld [vmem:[%s16067_s11 + $0x1bb0] sm:$0xff]  ;;  %v15791_v51 = vld [vmem:[%s16067_s11 + $0x1ba0] sm:$0xff] }
 0x357   : > { %10167 = vmatpush.bf16.msra.mxu2 %v15762_v52  ;;  %10136 = vmatmul.bf16.vlgmr.msrb.gmra.mxu3 %v2486_v43  ;;  %v15784_v43 = vld [vmem:[%s16067_s11 + $0x1b68] sm:$0xff]  ;;  %v15799_v52 = vld [vmem:[%s16067_s11 + $0x1be0] sm:$0xff]  ;;  %v15789_v2 = vld [vmem:[%s16067_s11 + $0x1b90] sm:$0xff] }
 0x358   : > { %10180 = vmatpush.bf16.msra.mxu3 %v15770_v53 }
 0x359   : > { %10142 = vmatpush.bf16.msra.mxu0 %v15745_v54  ;;  %v9916_v10 = vpop.f32.mrf.mxu2  ;;  %v9892_v13 = vpop.f32.mrf.mxu0  ;;  %v15774_v54 = vld [vmem:[%s16067_s11 + $0x1b18] sm:$0xff] }
 0x35a   : > { %10155 = vmatpush.bf16.msra.mxu1 %v15753_v55  ;;  %v9917_v11 = vadd.f32 %v9916_v10, %v9904_v5  ;;  %v9929_v12 = vpop.f32.mrf.mxu3  ;;  %v9905_v17 = vpop.f32.mrf.mxu1  ;;  %v15782_v55 = vld [vmem:[%s16067_s11 + $0x1b58] sm:$0xff]  ;;  %v15780_v5 = vld [vmem:[%s16067_s11 + $0x1b48] sm:$0xff] }
 0x35b   : > { %10168 = vmatpush.bf16.msra.mxu2 %v15761_v56  ;;  %v15790_v56 = vld [vmem:[%s16067_s11 + $0x1b98] sm:$0xff]  ;;  %v15787_v17 = vld [vmem:[%s16067_s11 + $0x1b80] sm:$0xff] }
 0x35c   : > { %10181 = vmatpush.bf16.msra.mxu3 %v15769_v57  ;;  %v9930_v14 = vadd.f32 %v9929_v12, %v9917_v11  ;;  %v15798_v57 = vld [vmem:[%s16067_s11 + $0x1bd8] sm:$0xff]  ;;  %v2494_v11 = vld [vmem:[#allocation1 + $0x2d] sm:$0xff] }
 0x35d   : > { %10143 = vmatpush.bf16.msra.mxu0 %v15744_v58  ;;  %v2496_v12 = vld [vmem:[#allocation1 + $0x3f] sm:$0xff] }
 0x35e   : > { %10156 = vmatpush.bf16.msra.mxu1 %v15752_v59 }
 0x35f   : > { %10169 = vmatpush.bf16.msra.mxu2 %v15760_v60 }
 0x360   : > { %10182 = vmatpush.bf16.msra.mxu3 %v15768_v61 }
 0x361   : > { %10144 = vmatpush.bf16.msra.mxu0 %v15743_v0  ;;  %v9918_v24 = vpop.f32.mrf.mxu2  ;;  %v15781_v0 = vld [vmem:[%s16067_s11 + $0x1b50] sm:$0xff] }
 0x362   : > { %10157 = vmatpush.bf16.msra.mxu1 %v15751_v1  ;;  %v9931_v25 = vpop.f32.mrf.mxu3  ;;  %v15817_v24 = vld [vmem:[%s16067_s11 + $0x1c70] sm:$0xff] }
 0x363   : > { %10170 = vmatpush.bf16.msra.mxu2 %v15759_v3  ;;  %v15797_v3 = vld [vmem:[%s16067_s11 + $0x1bd0] sm:$0xff] }
 0x364   : > { %10183 = vmatpush.bf16.msra.mxu3 %v15767_v4  ;;  %v15772_v4 = vld [vmem:[%s16067_s11 + $0x1b08] sm:$0xff]  ;;  %v15825_v25 = vld [vmem:[%s16067_s11 + $0x1cb0] sm:$0xff] }
 0x365   : > { %10145 = vmatpush.bf16.msra.mxu0 %v15742_v6  ;;  %v15788_v6 = vld [vmem:[%s16067_s11 + $0x1b88] sm:$0xff] }
 0x366   : > { %10158 = vmatpush.bf16.msra.mxu1 %v15750_v7  ;;  %v15796_v7 = vld [vmem:[%s16067_s11 + $0x1bc8] sm:$0xff] }
 0x367   : > { %10171 = vmatpush.bf16.msra.mxu2 %v15758_v8  ;;  %v2493_v8 = vld [vmem:[#allocation1 + $0x24] sm:$0xff] }
 0x368   : > { %10184 = vmatpush.bf16.msra.mxu3 %v15766_v9  ;;  %v2495_v9 = vld [vmem:[#allocation1 + $0x36] sm:$0xff] }
 0x369   : > { %10146 = vmatpush.bf16.msra.mxu0 %v15741_v15  ;;  %v15771_v15 = vld [vmem:[%s16067_s11 + $0x1b00] sm:$0xff] }
 0x36a   : > { %10159 = vmatpush.bf16.msra.mxu1 %v15749_v16  ;;  %v15779_v16 = vld [vmem:[%s16067_s11 + $0x1b40] sm:$0xff] }
 0x36b   : > { %10172 = vmatpush.bf16.msra.mxu2 %v15757_v18  ;;  %v15795_v18 = vld [vmem:[%s16067_s11 + $0x1bc0] sm:$0xff] }
 0x36c   : > { %10185 = vmatpush.bf16.msra.mxu3 %v15765_v19  ;;  %v15810_v19 = vld [vmem:[%s16067_s11 + $0x1c38] sm:$0xff] }
 0x36d   : > { %10147 = vmatpush.bf16.msra.mxu0 %v15740_v20  ;;  %v15818_v20 = vld [vmem:[%s16067_s11 + $0x1c78] sm:$0xff] }
 0x36e   : > { %10160 = vmatpush.bf16.msra.mxu1 %v15748_v21  ;;  %v15826_v21 = vld [vmem:[%s16067_s11 + $0x1cb8] sm:$0xff] }
 0x36f   : > { %10173 = vmatpush.bf16.msra.mxu2 %v15756_v22  ;;  %v15834_v22 = vld [vmem:[%s16067_s11 + $0x1cf8] sm:$0xff] }
 0x370   : > { %10186 = vmatpush.bf16.msra.mxu3 %v15764_v23  ;;  %v15809_v23 = vld [vmem:[%s16067_s11 + $0x1c30] sm:$0xff] }
 0x371   : > { %10148 = vmatpush.bf16.msra.mxu0 %v15739_v26  ;;  %v9942_v46 = vpop.f32.mrf.mxu0  ;;  %v15833_v26 = vld [vmem:[%s16067_s11 + $0x1cf0] sm:$0xff] }
 0x372   : > { %10161 = vmatpush.bf16.msra.mxu1 %v15747_v27  ;;  %v9943_v47 = vadd.f32 %v9942_v46, %v9930_v14  ;;  %v9955_v50 = vpop.f32.mrf.mxu1  ;;  %v307_v14 = vld [vmem:[%s16062_s30 + $0x70] sm:$0xff]  ;;  %v15808_v27 = vld [vmem:[%s16067_s11 + $0x1c28] sm:$0xff] }
 0x373   : > { %10174 = vmatpush.bf16.msra.mxu2 %v15755_v28  ;;  %2498 = vst [vmem:[#allocation1] ss:$9 sm:$0xff] %v307_v14  ;;  %v15816_v28 = vld [vmem:[%s16067_s11 + $0x1c68] sm:$0xff] }
 0x374   : > { %10187 = vmatpush.bf16.msra.mxu3 %v15763_v29  ;;  %10149 = vmatmul.bf16.vlgmr.msra.gmra.mxu0 %v2489_v34  ;;  %v9956_v53 = vadd.f32 %v9955_v50, %v9943_v47  ;;  %v15824_v29 = vld [vmem:[%s16067_s11 + $0x1ca8] sm:$0xff]  ;;  %v15815_v34 = vld [vmem:[%s16067_s11 + $0x1c60] sm:$0xff] }
 0x375   : > { %10193 = vmatpush.bf16.msrb.mxu0 %v15778_v30  ;;  %10162 = vmatmul.bf16.vlgmr.msra.gmra.mxu1 %v2490_v36  ;;  %v15832_v30 = vld [vmem:[%s16067_s11 + $0x1ce8] sm:$0xff]  ;;  %v15823_v36 = vld [vmem:[%s16067_s11 + $0x1ca0] sm:$0xff] }
 0x376   : > { %10206 = vmatpush.bf16.msrb.mxu1 %v15786_v31  ;;  %10175 = vmatmul.bf16.vlgmr.msra.gmra.mxu2 %v2491_v35  ;;  %v15864_v14 = vld [vmem:[%s16067_s11 + $0x1de8] sm:$0xff] }
 0x377   : > { %10219 = vmatpush.bf16.msrb.mxu2 %v15794_v32  ;;  %10188 = vmatmul.bf16.vlgmr.msra.gmra.mxu3 %v2492_v37  ;;  %v15831_v37 = vld [vmem:[%s16067_s11 + $0x1ce0] sm:$0xff] }
 0x378   : > { %10232 = vmatpush.bf16.msrb.mxu3 %v15802_v33  ;;  %v15807_v33 = vld [vmem:[%s16067_s11 + $0x1c20] sm:$0xff] }
 0x379   : > { %10194 = vmatpush.bf16.msrb.mxu0 %v15777_v38  ;;  %v9968_v58 = vpop.f32.mrf.mxu2  ;;  %v9944_v61 = vpop.f32.mrf.mxu0 }
 0x37a   : > { %10207 = vmatpush.bf16.msrb.mxu1 %v15785_v39  ;;  %v9969_v59 = vadd.f32 %v9968_v58, %v9956_v53  ;;  %v9981_v60 = vpop.f32.mrf.mxu3  ;;  %v9957_v1 = vpop.f32.mrf.mxu1  ;;  %v15806_v39 = vld [vmem:[%s16067_s11 + $0x1c18] sm:$0xff]  ;;  %v15804_v53 = vld [vmem:[%s16067_s11 + $0x1c08] sm:$0xff]  ;;  %v15819_v61 = vld [vmem:[%s16067_s11 + $0x1c80] sm:$0xff] }
 0x37b   : > { %10220 = vmatpush.bf16.msrb.mxu2 %v15793_v40  ;;  %v15814_v40 = vld [vmem:[%s16067_s11 + $0x1c58] sm:$0xff] }
 0x37c   : > { %10233 = vmatpush.bf16.msrb.mxu3 %v15801_v41  ;;  %v17001_v62 = vadd.f32 %v9981_v60, %v9969_v59  ;;  %v15822_v41 = vld [vmem:[%s16067_s11 + $0x1c98] sm:$0xff]  ;;  %v15803_v59 = vld [vmem:[%s16067_s11 + $0x1c00] sm:$0xff] }
 0x37d   : > { %10195 = vmatpush.bf16.msrb.mxu0 %v15776_v42  ;;  %v15830_v42 = vld [vmem:[%s16067_s11 + $0x1cd8] sm:$0xff]  ;;  %v15811_v60 = vld [vmem:[%s16067_s11 + $0x1c40] sm:$0xff] }
 0x37e   : > { %10208 = vmatpush.bf16.msrb.mxu1 %v15784_v43  ;;  %v15858_v1 = vld [vmem:[%s16067_s11 + $0x1db8] sm:$0xff] }
 0x37f   : > { %10221 = vmatpush.bf16.msrb.mxu2 %v15792_v44 }
 0x380   : > { %10234 = vmatpush.bf16.msrb.mxu3 %v15800_v45 }
 0x381   : > { %10196 = vmatpush.bf16.msrb.mxu0 %v15775_v48  ;;  %v9970_v10 = vpop.f32.mrf.mxu2  ;;  %v15805_v48 = vld [vmem:[%s16067_s11 + $0x1c10] sm:$0xff] }
 0x382   : > { %10209 = vmatpush.bf16.msrb.mxu1 %v15783_v49  ;;  %v9983_v13 = vpop.f32.mrf.mxu3  ;;  %v15813_v49 = vld [vmem:[%s16067_s11 + $0x1c50] sm:$0xff] }
 0x383   : > { %10222 = vmatpush.bf16.msrb.mxu2 %v15791_v51  ;;  %v15821_v51 = vld [vmem:[%s16067_s11 + $0x1c90] sm:$0xff]  ;;  %v15856_v13 = vld [vmem:[%s16067_s11 + $0x1da8] sm:$0xff] }
 0x384   : > { %10235 = vmatpush.bf16.msrb.mxu3 %v15799_v52  ;;  %v15829_v52 = vld [vmem:[%s16067_s11 + $0x1cd0] sm:$0xff] }
 0x385   : > { %10197 = vmatpush.bf16.msrb.mxu0 %v15774_v54  ;;  %v15812_v54 = vld [vmem:[%s16067_s11 + $0x1c48] sm:$0xff]  ;;  %v15865_v10 = vld [vmem:[%s16067_s11 + $0x1df0] sm:$0xff] }
 0x386   : > { %10210 = vmatpush.bf16.msrb.mxu1 %v15782_v55  ;;  %v15820_v55 = vld [vmem:[%s16067_s11 + $0x1c88] sm:$0xff] }
 0x387   : > { %10223 = vmatpush.bf16.msrb.mxu2 %v15790_v56  ;;  %v15828_v56 = vld [vmem:[%s16067_s11 + $0x1cc8] sm:$0xff] }
 0x388   : > { %10236 = vmatpush.bf16.msrb.mxu3 %v15798_v57 }
 0x389   : > { %10198 = vmatpush.bf16.msrb.mxu0 %v15773_v63  ;;  %v15842_v63 = vld [vmem:[%s16067_s11 + $0x1d38] sm:$0xff] }
 0x38a   : > { %10211 = vmatpush.bf16.msrb.mxu1 %v15781_v0  ;;  %v15850_v0 = vld [vmem:[%s16067_s11 + $0x1d78] sm:$0xff] }
 0x38b   : > { %10224 = vmatpush.bf16.msrb.mxu2 %v15789_v2  ;;  %v15866_v2 = vld [vmem:[%s16067_s11 + $0x1df8] sm:$0xff] }
 0x38c   : > { %10237 = vmatpush.bf16.msrb.mxu3 %v15797_v3  ;;  %v2499_v3 = vld [vmem:[#allocation1] sm:$0xff] }
 0x38d   : > { %10199 = vmatpush.bf16.msrb.mxu0 %v15772_v4  ;;  %v2501_v4 = vld [vmem:[#allocation1 + $0x12] sm:$0xff] }
 0x38e   : > { %10212 = vmatpush.bf16.msrb.mxu1 %v15780_v5  ;;  %v2500_v5 = vld [vmem:[#allocation1 + $0x9] sm:$0xff] }
 0x38f   : > { %10225 = vmatpush.bf16.msrb.mxu2 %v15788_v6  ;;  %v2502_v6 = vld [vmem:[#allocation1 + $0x1b] sm:$0xff] }
 0x390   : > { %10238 = vmatpush.bf16.msrb.mxu3 %v15796_v7  ;;  %v15841_v7 = vld [vmem:[%s16067_s11 + $0x1d30] sm:$0xff] }
 0x391   : > { %10200 = vmatpush.bf16.msrb.mxu0 %v15771_v15  ;;  %v9994_v31 = vpop.f32.mrf.mxu0 }
 0x392   : > { %10213 = vmatpush.bf16.msrb.mxu1 %v15779_v16  ;;  %v9995_v32 = vadd.f32 %v9994_v31, %v17001_v62  ;;  %v10007_v35 = vpop.f32.mrf.mxu1  ;;  %v15827_v62 = vld [vmem:[%s16067_s11 + $0x1cc0] sm:$0xff] }
 0x393   : > { %10226 = vmatpush.bf16.msrb.mxu2 %v15787_v17  ;;  %v15839_v17 = vld [vmem:[%s16067_s11 + $0x1d20] sm:$0xff] }
 0x394   : > { %10239 = vmatpush.bf16.msrb.mxu3 %v15795_v18  ;;  %10201 = vmatmul.bf16.vlgmr.msrb.gmra.mxu0 %v2493_v8  ;;  %v10008_v38 = vadd.f32 %v10007_v35, %v9995_v32  ;;  %v15849_v8 = vld [vmem:[%s16067_s11 + $0x1d70] sm:$0xff]  ;;  %v15847_v18 = vld [vmem:[%s16067_s11 + $0x1d60] sm:$0xff] }
 0x395   : > { %10245 = vmatpush.bf16.msra.mxu0 %v15810_v19  ;;  %10214 = vmatmul.bf16.vlgmr.msrb.gmra.mxu1 %v2494_v11  ;;  %v15840_v11 = vld [vmem:[%s16067_s11 + $0x1d28] sm:$0xff]  ;;  %v15837_v32 = vld [vmem:[%s16067_s11 + $0x1d10] sm:$0xff] }
 0x396   : > { %10258 = vmatpush.bf16.msra.mxu1 %v15818_v20  ;;  %10227 = vmatmul.bf16.vlgmr.msrb.gmra.mxu2 %v2495_v9  ;;  %v15857_v9 = vld [vmem:[%s16067_s11 + $0x1db0] sm:$0xff]  ;;  %v15855_v20 = vld [vmem:[%s16067_s11 + $0x1da0] sm:$0xff] }
 0x397   : > { %10271 = vmatpush.bf16.msra.mxu2 %v15826_v21  ;;  %10240 = vmatmul.bf16.vlgmr.msrb.gmra.mxu3 %v2496_v12  ;;  %v15848_v12 = vld [vmem:[%s16067_s11 + $0x1d68] sm:$0xff]  ;;  %v15863_v21 = vld [vmem:[%s16067_s11 + $0x1de0] sm:$0xff]  ;;  %v15853_v35 = vld [vmem:[%s16067_s11 + $0x1d90] sm:$0xff] }
 0x398   : > { %10284 = vmatpush.bf16.msra.mxu3 %v15834_v22 }
 0x399   : > { %10246 = vmatpush.bf16.msra.mxu0 %v15809_v23  ;;  %v10020_v43 = vpop.f32.mrf.mxu2  ;;  %v9996_v46 = vpop.f32.mrf.mxu0  ;;  %v15838_v23 = vld [vmem:[%s16067_s11 + $0x1d18] sm:$0xff] }
 0x39a   : > { %10259 = vmatpush.bf16.msra.mxu1 %v15817_v24  ;;  %v10021_v44 = vadd.f32 %v10020_v43, %v10008_v38  ;;  %v10033_v45 = vpop.f32.mrf.mxu3  ;;  %v10009_v50 = vpop.f32.mrf.mxu1  ;;  %v15846_v24 = vld [vmem:[%s16067_s11 + $0x1d58] sm:$0xff]  ;;  %v15844_v38 = vld [vmem:[%s16067_s11 + $0x1d48] sm:$0xff] }
 0x39b   : > { %10272 = vmatpush.bf16.msra.mxu2 %v15825_v25  ;;  %v15854_v25 = vld [vmem:[%s16067_s11 + $0x1d98] sm:$0xff]  ;;  %v15851_v50 = vld [vmem:[%s16067_s11 + $0x1d80] sm:$0xff] }
 0x39c   : > { %10285 = vmatpush.bf16.msra.mxu3 %v15833_v26  ;;  %v10034_v47 = vadd.f32 %v10033_v45, %v10021_v44  ;;  %v15862_v26 = vld [vmem:[%s16067_s11 + $0x1dd8] sm:$0xff]  ;;  %v2504_v44 = vld [vmem:[#allocation1 + $0x2d] sm:$0xff] }
 0x39d   : > { %10247 = vmatpush.bf16.msra.mxu0 %v15808_v27  ;;  %v2506_v45 = vld [vmem:[#allocation1 + $0x3f] sm:$0xff] }
 0x39e   : > { %10260 = vmatpush.bf16.msra.mxu1 %v15816_v28 }
 0x39f   : > { %10273 = vmatpush.bf16.msra.mxu2 %v15824_v29 }
 0x3a0   : > { %10286 = vmatpush.bf16.msra.mxu3 %v15832_v30 }
 0x3a1   : > { %10248 = vmatpush.bf16.msra.mxu0 %v15807_v33  ;;  %v10022_v57 = vpop.f32.mrf.mxu2  ;;  %v15845_v33 = vld [vmem:[%s16067_s11 + $0x1d50] sm:$0xff] }
 0x3a2   : > { %10261 = vmatpush.bf16.msra.mxu1 %v15815_v34  ;;  %v10035_v58 = vpop.f32.mrf.mxu3  ;;  %v15881_v57 = vld [vmem:[%s16067_s11 + $0x1e70] sm:$0xff] }
 0x3a3   : > { %10274 = vmatpush.bf16.msra.mxu2 %v15823_v36  ;;  %v15861_v36 = vld [vmem:[%s16067_s11 + $0x1dd0] sm:$0xff] }
 0x3a4   : > { %10287 = vmatpush.bf16.msra.mxu3 %v15831_v37  ;;  %v15836_v37 = vld [vmem:[%s16067_s11 + $0x1d08] sm:$0xff]  ;;  %v15889_v58 = vld [vmem:[%s16067_s11 + $0x1eb0] sm:$0xff] }
 0x3a5   : > { %10249 = vmatpush.bf16.msra.mxu0 %v15806_v39  ;;  %v15852_v39 = vld [vmem:[%s16067_s11 + $0x1d88] sm:$0xff] }
 0x3a6   : > { %10262 = vmatpush.bf16.msra.mxu1 %v15814_v40  ;;  %v15860_v40 = vld [vmem:[%s16067_s11 + $0x1dc8] sm:$0xff] }
 0x3a7   : > { %10275 = vmatpush.bf16.msra.mxu2 %v15822_v41  ;;  %v2503_v41 = vld [vmem:[#allocation1 + $0x24] sm:$0xff] }
 0x3a8   : > { %10288 = vmatpush.bf16.msra.mxu3 %v15830_v42  ;;  %v2505_v42 = vld [vmem:[#allocation1 + $0x36] sm:$0xff] }
 0x3a9   : > { %10250 = vmatpush.bf16.msra.mxu0 %v15805_v48  ;;  %v15835_v48 = vld [vmem:[%s16067_s11 + $0x1d00] sm:$0xff] }
 0x3aa   : > { %10263 = vmatpush.bf16.msra.mxu1 %v15813_v49  ;;  %v15843_v49 = vld [vmem:[%s16067_s11 + $0x1d40] sm:$0xff] }
 0x3ab   : > { %10276 = vmatpush.bf16.msra.mxu2 %v15821_v51  ;;  %v15859_v51 = vld [vmem:[%s16067_s11 + $0x1dc0] sm:$0xff] }
 0x3ac   : > { %10289 = vmatpush.bf16.msra.mxu3 %v15829_v52  ;;  %v15874_v52 = vld [vmem:[%s16067_s11 + $0x1e38] sm:$0xff] }
 0x3ad   : > { %10251 = vmatpush.bf16.msra.mxu0 %v15804_v53  ;;  %v15882_v53 = vld [vmem:[%s16067_s11 + $0x1e78] sm:$0xff] }
 0x3ae   : > { %10264 = vmatpush.bf16.msra.mxu1 %v15812_v54  ;;  %v15890_v54 = vld [vmem:[%s16067_s11 + $0x1eb8] sm:$0xff] }
 0x3af   : > { %10277 = vmatpush.bf16.msra.mxu2 %v15820_v55  ;;  %v15898_v55 = vld [vmem:[%s16067_s11 + $0x1ef8] sm:$0xff] }
 0x3b0   : > { %10290 = vmatpush.bf16.msra.mxu3 %v15828_v56  ;;  %v15873_v56 = vld [vmem:[%s16067_s11 + $0x1e30] sm:$0xff] }
 0x3b1   : > { %10252 = vmatpush.bf16.msra.mxu0 %v15803_v59  ;;  %v10046_v15 = vpop.f32.mrf.mxu0  ;;  %v15897_v59 = vld [vmem:[%s16067_s11 + $0x1ef0] sm:$0xff] }
 0x3b2   : > { %10265 = vmatpush.bf16.msra.mxu1 %v15811_v60  ;;  %v10047_v16 = vadd.f32 %v10046_v15, %v10034_v47  ;;  %v10059_v19 = vpop.f32.mrf.mxu1  ;;  %v308_v47 = vld [vmem:[%s16062_s30 + $0x78] sm:$0xff]  ;;  %v15872_v60 = vld [vmem:[%s16067_s11 + $0x1e28] sm:$0xff] }
 0x3b3   : > { %10278 = vmatpush.bf16.msra.mxu2 %v15819_v61  ;;  %2508 = vst [vmem:[#allocation1] ss:$9 sm:$0xff] %v308_v47  ;;  %v15880_v61 = vld [vmem:[%s16067_s11 + $0x1e68] sm:$0xff] }
 0x3b4   : > { %10291 = vmatpush.bf16.msra.mxu3 %v15827_v62  ;;  %10253 = vmatmul.bf16.vlgmr.msra.gmra.mxu0 %v2499_v3  ;;  %v10060_v22 = vadd.f32 %v10059_v19, %v10047_v16  ;;  %v15888_v62 = vld [vmem:[%s16067_s11 + $0x1ea8] sm:$0xff]  ;;  %v15879_v3 = vld [vmem:[%s16067_s11 + $0x1e60] sm:$0xff] }
 0x3b5   : > { %10297 = vmatpush.bf16.msrb.mxu0 %v15842_v63  ;;  %10266 = vmatmul.bf16.vlgmr.msra.gmra.mxu1 %v2500_v5  ;;  %v15896_v63 = vld [vmem:[%s16067_s11 + $0x1ee8] sm:$0xff]  ;;  %v15887_v5 = vld [vmem:[%s16067_s11 + $0x1ea0] sm:$0xff] }
 0x3b6   : > { %10310 = vmatpush.bf16.msrb.mxu1 %v15850_v0  ;;  %10279 = vmatmul.bf16.vlgmr.msra.gmra.mxu2 %v2501_v4  ;;  %v15928_v47 = vld [vmem:[%s16067_s11 + $0x1fe8] sm:$0xff] }
 0x3b7   : > { %10323 = vmatpush.bf16.msrb.mxu2 %v15858_v1  ;;  %10292 = vmatmul.bf16.vlgmr.msra.gmra.mxu3 %v2502_v6  ;;  %v15895_v6 = vld [vmem:[%s16067_s11 + $0x1ee0] sm:$0xff] }
 0x3b8   : > { %10336 = vmatpush.bf16.msrb.mxu3 %v15866_v2  ;;  %v15871_v2 = vld [vmem:[%s16067_s11 + $0x1e20] sm:$0xff] }
 0x3b9   : > { %10298 = vmatpush.bf16.msrb.mxu0 %v15841_v7  ;;  %v10072_v27 = vpop.f32.mrf.mxu2  ;;  %v10048_v30 = vpop.f32.mrf.mxu0 }
 0x3ba   : > { %10311 = vmatpush.bf16.msrb.mxu1 %v15849_v8  ;;  %v10073_v28 = vadd.f32 %v10072_v27, %v10060_v22  ;;  %v10085_v29 = vpop.f32.mrf.mxu3  ;;  %v10061_v34 = vpop.f32.mrf.mxu1  ;;  %v15870_v8 = vld [vmem:[%s16067_s11 + $0x1e18] sm:$0xff]  ;;  %v15868_v22 = vld [vmem:[%s16067_s11 + $0x1e08] sm:$0xff]  ;;  %v15883_v30 = vld [vmem:[%s16067_s11 + $0x1e80] sm:$0xff] }
 0x3bb   : > { %10324 = vmatpush.bf16.msrb.mxu2 %v15857_v9  ;;  %v15878_v9 = vld [vmem:[%s16067_s11 + $0x1e58] sm:$0xff] }
 0x3bc   : > { %10337 = vmatpush.bf16.msrb.mxu3 %v15865_v10  ;;  %v17069_v31 = vadd.f32 %v10085_v29, %v10073_v28  ;;  %v15886_v10 = vld [vmem:[%s16067_s11 + $0x1e98] sm:$0xff]  ;;  %v15867_v28 = vld [vmem:[%s16067_s11 + $0x1e00] sm:$0xff] }
 0x3bd   : > { %10299 = vmatpush.bf16.msrb.mxu0 %v15840_v11  ;;  %v15894_v11 = vld [vmem:[%s16067_s11 + $0x1ed8] sm:$0xff]  ;;  %v15875_v29 = vld [vmem:[%s16067_s11 + $0x1e40] sm:$0xff] }
 0x3be   : > { %10312 = vmatpush.bf16.msrb.mxu1 %v15848_v12  ;;  %v15922_v34 = vld [vmem:[%s16067_s11 + $0x1fb8] sm:$0xff] }
 0x3bf   : > { %10325 = vmatpush.bf16.msrb.mxu2 %v15856_v13 }
 0x3c0   : > { %10338 = vmatpush.bf16.msrb.mxu3 %v15864_v14 }
 0x3c1   : > { %10300 = vmatpush.bf16.msrb.mxu0 %v15839_v17  ;;  %v10074_v43 = vpop.f32.mrf.mxu2  ;;  %v15869_v17 = vld [vmem:[%s16067_s11 + $0x1e10] sm:$0xff] }
 0x3c2   : > { %10313 = vmatpush.bf16.msrb.mxu1 %v15847_v18  ;;  %v10087_v46 = vpop.f32.mrf.mxu3  ;;  %v15877_v18 = vld [vmem:[%s16067_s11 + $0x1e50] sm:$0xff] }
 0x3c3   : > { %10326 = vmatpush.bf16.msrb.mxu2 %v15855_v20  ;;  %v15885_v20 = vld [vmem:[%s16067_s11 + $0x1e90] sm:$0xff]  ;;  %v15920_v46 = vld [vmem:[%s16067_s11 + $0x1fa8] sm:$0xff] }
 0x3c4   : > { %10339 = vmatpush.bf16.msrb.mxu3 %v15863_v21  ;;  %v15893_v21 = vld [vmem:[%s16067_s11 + $0x1ed0] sm:$0xff] }
 0x3c5   : > { %10301 = vmatpush.bf16.msrb.mxu0 %v15838_v23  ;;  %v15876_v23 = vld [vmem:[%s16067_s11 + $0x1e48] sm:$0xff]  ;;  %v15929_v43 = vld [vmem:[%s16067_s11 + $0x1ff0] sm:$0xff] }
 0x3c6   : > { %10314 = vmatpush.bf16.msrb.mxu1 %v15846_v24  ;;  %v15884_v24 = vld [vmem:[%s16067_s11 + $0x1e88] sm:$0xff] }
 0x3c7   : > { %10327 = vmatpush.bf16.msrb.mxu2 %v15854_v25  ;;  %v15892_v25 = vld [vmem:[%s16067_s11 + $0x1ec8] sm:$0xff] }
 0x3c8   : > { %10340 = vmatpush.bf16.msrb.mxu3 %v15862_v26 }
 0x3c9   : > { %10302 = vmatpush.bf16.msrb.mxu0 %v15837_v32  ;;  %v15906_v32 = vld [vmem:[%s16067_s11 + $0x1f38] sm:$0xff] }
 0x3ca   : > { %10315 = vmatpush.bf16.msrb.mxu1 %v15845_v33  ;;  %v15914_v33 = vld [vmem:[%s16067_s11 + $0x1f78] sm:$0xff] }
 0x3cb   : > { %10328 = vmatpush.bf16.msrb.mxu2 %v15853_v35  ;;  %v15930_v35 = vld [vmem:[%s16067_s11 + $0x1ff8] sm:$0xff] }
 0x3cc   : > { %10341 = vmatpush.bf16.msrb.mxu3 %v15861_v36  ;;  %v2509_v36 = vld [vmem:[#allocation1] sm:$0xff] }
 0x3cd   : > { %10303 = vmatpush.bf16.msrb.mxu0 %v15836_v37  ;;  %v2511_v37 = vld [vmem:[#allocation1 + $0x12] sm:$0xff] }
 0x3ce   : > { %10316 = vmatpush.bf16.msrb.mxu1 %v15844_v38  ;;  %v2510_v38 = vld [vmem:[#allocation1 + $0x9] sm:$0xff] }
 0x3cf   : > { %10329 = vmatpush.bf16.msrb.mxu2 %v15852_v39  ;;  %v2512_v39 = vld [vmem:[#allocation1 + $0x1b] sm:$0xff] }
 0x3d0   : > { %10342 = vmatpush.bf16.msrb.mxu3 %v15860_v40  ;;  %v15905_v40 = vld [vmem:[%s16067_s11 + $0x1f30] sm:$0xff] }
 0x3d1   : > { %10304 = vmatpush.bf16.msrb.mxu0 %v15835_v48  ;;  %v10098_v0 = vpop.f32.mrf.mxu0 }
 0x3d2   : > { %10317 = vmatpush.bf16.msrb.mxu1 %v15843_v49  ;;  %v10099_v1 = vadd.f32 %v10098_v0, %v17069_v31  ;;  %v10111_v4 = vpop.f32.mrf.mxu1  ;;  %v15891_v31 = vld [vmem:[%s16067_s11 + $0x1ec0] sm:$0xff] }
 0x3d3   : > { %10330 = vmatpush.bf16.msrb.mxu2 %v15851_v50  ;;  %v15903_v50 = vld [vmem:[%s16067_s11 + $0x1f20] sm:$0xff] }
 0x3d4   : > { %10343 = vmatpush.bf16.msrb.mxu3 %v15859_v51  ;;  %10305 = vmatmul.bf16.vlgmr.msrb.gmra.mxu0 %v2503_v41  ;;  %v10112_v7 = vadd.f32 %v10111_v4, %v10099_v1  ;;  %v15913_v41 = vld [vmem:[%s16067_s11 + $0x1f70] sm:$0xff]  ;;  %v15911_v51 = vld [vmem:[%s16067_s11 + $0x1f60] sm:$0xff] }
 0x3d5   : > { %10349 = vmatpush.bf16.msra.mxu0 %v15874_v52  ;;  %10318 = vmatmul.bf16.vlgmr.msrb.gmra.mxu1 %v2504_v44  ;;  %v15904_v44 = vld [vmem:[%s16067_s11 + $0x1f28] sm:$0xff]  ;;  %v15901_v1 = vld [vmem:[%s16067_s11 + $0x1f10] sm:$0xff] }
 0x3d6   : > { %10362 = vmatpush.bf16.msra.mxu1 %v15882_v53  ;;  %10331 = vmatmul.bf16.vlgmr.msrb.gmra.mxu2 %v2505_v42  ;;  %v15921_v42 = vld [vmem:[%s16067_s11 + $0x1fb0] sm:$0xff]  ;;  %v15919_v53 = vld [vmem:[%s16067_s11 + $0x1fa0] sm:$0xff] }
 0x3d7   : > { %10375 = vmatpush.bf16.msra.mxu2 %v15890_v54  ;;  %10344 = vmatmul.bf16.vlgmr.msrb.gmra.mxu3 %v2506_v45  ;;  %v15912_v45 = vld [vmem:[%s16067_s11 + $0x1f68] sm:$0xff]  ;;  %v15927_v54 = vld [vmem:[%s16067_s11 + $0x1fe0] sm:$0xff]  ;;  %v15917_v4 = vld [vmem:[%s16067_s11 + $0x1f90] sm:$0xff] }
 0x3d8   : > { %10388 = vmatpush.bf16.msra.mxu3 %v15898_v55 }
 0x3d9   : > { %10350 = vmatpush.bf16.msra.mxu0 %v15873_v56  ;;  %v10124_v12 = vpop.f32.mrf.mxu2  ;;  %v10100_v15 = vpop.f32.mrf.mxu0  ;;  %v15902_v56 = vld [vmem:[%s16067_s11 + $0x1f18] sm:$0xff] }
 0x3da   : > { %10363 = vmatpush.bf16.msra.mxu1 %v15881_v57  ;;  %v10125_v13 = vadd.f32 %v10124_v12, %v10112_v7  ;;  %v10137_v14 = vpop.f32.mrf.mxu3  ;;  %v10113_v19 = vpop.f32.mrf.mxu1  ;;  %v15910_v57 = vld [vmem:[%s16067_s11 + $0x1f58] sm:$0xff]  ;;  %v15908_v7 = vld [vmem:[%s16067_s11 + $0x1f48] sm:$0xff]  ;;  %v15899_v12 = vld [vmem:[%s16067_s11 + $0x1f00] sm:$0xff] }
 0x3db   : > { %10376 = vmatpush.bf16.msra.mxu2 %v15889_v58  ;;  %v15918_v58 = vld [vmem:[%s16067_s11 + $0x1f98] sm:$0xff]  ;;  %v15923_v15 = vld [vmem:[%s16067_s11 + $0x1fc0] sm:$0xff] }
 0x3dc   : > { %10389 = vmatpush.bf16.msra.mxu3 %v15897_v59  ;;  %v10138_v16 = vadd.f32 %v10137_v14, %v10125_v13  ;;  %v15926_v59 = vld [vmem:[%s16067_s11 + $0x1fd8] sm:$0xff]  ;;  %v15907_v13 = vld [vmem:[%s16067_s11 + $0x1f40] sm:$0xff] }
 0x3dd   : > { %10351 = vmatpush.bf16.msra.mxu0 %v15872_v60  ;;  %v15915_v14 = vld [vmem:[%s16067_s11 + $0x1f80] sm:$0xff] }
 0x3de   : > { %10364 = vmatpush.bf16.msra.mxu1 %v15880_v61  ;;  %v2516_v19 = vld [vmem:[#allocation1 + $0x3f] sm:$0xff] }
 0x3df   : > { %10377 = vmatpush.bf16.msra.mxu2 %v15888_v62 }
 0x3e0   : > { %10390 = vmatpush.bf16.msra.mxu3 %v15896_v63 }
 0x3e1   : > { %10352 = vmatpush.bf16.msra.mxu0 %v15871_v2  ;;  %v10126_v26 = vpop.f32.mrf.mxu2  ;;  %v15909_v2 = vld [vmem:[%s16067_s11 + $0x1f50] sm:$0xff] }
 0x3e2   : > { %10365 = vmatpush.bf16.msra.mxu1 %v15879_v3  ;;  %v10139_v27 = vpop.f32.mrf.mxu3 }
 0x3e3   : > { %10378 = vmatpush.bf16.msra.mxu2 %v15887_v5  ;;  %v15925_v5 = vld [vmem:[%s16067_s11 + $0x1fd0] sm:$0xff] }
 0x3e4   : > { %10391 = vmatpush.bf16.msra.mxu3 %v15895_v6  ;;  %v15900_v6 = vld [vmem:[%s16067_s11 + $0x1f08] sm:$0xff] }
 0x3e5   : > { %10353 = vmatpush.bf16.msra.mxu0 %v15870_v8  ;;  %v15916_v8 = vld [vmem:[%s16067_s11 + $0x1f88] sm:$0xff] }
 0x3e6   : > { %10366 = vmatpush.bf16.msra.mxu1 %v15878_v9  ;;  %v15924_v9 = vld [vmem:[%s16067_s11 + $0x1fc8] sm:$0xff] }
 0x3e7   : > { %10379 = vmatpush.bf16.msra.mxu2 %v15886_v10 }
 0x3e8   : > { %10392 = vmatpush.bf16.msra.mxu3 %v15894_v11 }
 0x3e9   : > { %10354 = vmatpush.bf16.msra.mxu0 %v15869_v17  ;;  %v2514_v17 = vld [vmem:[#allocation1 + $0x2d] sm:$0xff] }
 0x3ea   : > { %10367 = vmatpush.bf16.msra.mxu1 %v15877_v18  ;;  %v2515_v18 = vld [vmem:[#allocation1 + $0x36] sm:$0xff] }
 0x3eb   : > { %10380 = vmatpush.bf16.msra.mxu2 %v15885_v20 }
 0x3ec   : > { %10393 = vmatpush.bf16.msra.mxu3 %v15893_v21 }
 0x3ed   : > { %10355 = vmatpush.bf16.msra.mxu0 %v15868_v22 }
 0x3ee   : > { %10368 = vmatpush.bf16.msra.mxu1 %v15876_v23 }
 0x3ef   : > { %10381 = vmatpush.bf16.msra.mxu2 %v15884_v24 }
 0x3f0   : > { %10394 = vmatpush.bf16.msra.mxu3 %v15892_v25 }
 0x3f1   : > { %10356 = vmatpush.bf16.msra.mxu0 %v15867_v28  ;;  %v10150_v48 = vpop.f32.mrf.mxu0 }
 0x3f2   : > { %10369 = vmatpush.bf16.msra.mxu1 %v15875_v29  ;;  %v10151_v49 = vadd.f32 %v10150_v48, %v10138_v16  ;;  %v10163_v52 = vpop.f32.mrf.mxu1  ;;  %v2513_v16 = vld [vmem:[#allocation1 + $0x24] sm:$0xff] }
 0x3f3   : > { %10382 = vmatpush.bf16.msra.mxu2 %v15883_v30 }
 0x3f4   : > { %10395 = vmatpush.bf16.msra.mxu3 %v15891_v31  ;;  %10357 = vmatmul.bf16.vlgmr.msra.gmra.mxu0 %v2509_v36  ;;  %v10164_v55 = vadd.f32 %v10163_v52, %v10151_v49 }
 0x3f5   : > { %10401 = vmatpush.bf16.msrb.mxu0 %v15906_v32  ;;  %10370 = vmatmul.bf16.vlgmr.msra.gmra.mxu1 %v2510_v38 }
 0x3f6   : > { %10414 = vmatpush.bf16.msrb.mxu1 %v15914_v33  ;;  %10383 = vmatmul.bf16.vlgmr.msra.gmra.mxu2 %v2511_v37 }
 0x3f7   : > { %10427 = vmatpush.bf16.msrb.mxu2 %v15922_v34  ;;  %10396 = vmatmul.bf16.vlgmr.msra.gmra.mxu3 %v2512_v39 }
 0x3f8   : > { %10440 = vmatpush.bf16.msrb.mxu3 %v15930_v35 }
 0x3f9   : > { %10402 = vmatpush.bf16.msrb.mxu0 %v15905_v40  ;;  %v10176_v60 = vpop.f32.mrf.mxu2  ;;  %v10152_v63 = vpop.f32.mrf.mxu0 }
 0x3fa   : > { %10415 = vmatpush.bf16.msrb.mxu1 %v15913_v41  ;;  %v10177_v61 = vadd.f32 %v10176_v60, %v10164_v55  ;;  %v10189_v62 = vpop.f32.mrf.mxu3  ;;  %v10165_v3 = vpop.f32.mrf.mxu1 }
 0x3fb   : > { %10428 = vmatpush.bf16.msrb.mxu2 %v15921_v42 }
 0x3fc   : > { %10441 = vmatpush.bf16.msrb.mxu3 %v15929_v43  ;;  %v10190_v0 = vadd.f32 %v10189_v62, %v10177_v61 }
 0x3fd   : > { %10403 = vmatpush.bf16.msrb.mxu0 %v15904_v44 }
 0x3fe   : > { %10416 = vmatpush.bf16.msrb.mxu1 %v15912_v45 }
 0x3ff   : > { %10429 = vmatpush.bf16.msrb.mxu2 %v15920_v46 }
 0x400   : > { %10442 = vmatpush.bf16.msrb.mxu3 %v15928_v47 }
 0x401   : > { %10404 = vmatpush.bf16.msrb.mxu0 %v15903_v50  ;;  %v10178_v10 = vpop.f32.mrf.mxu2 }
 0x402   : > { %10417 = vmatpush.bf16.msrb.mxu1 %v15911_v51  ;;  %v10191_v11 = vpop.f32.mrf.mxu3 }
 0x403   : > { %10430 = vmatpush.bf16.msrb.mxu2 %v15919_v53 }
 0x404   : > { %10443 = vmatpush.bf16.msrb.mxu3 %v15927_v54 }
 0x405   : > { %10405 = vmatpush.bf16.msrb.mxu0 %v15902_v56 }
 0x406   : > { %10418 = vmatpush.bf16.msrb.mxu1 %v15910_v57 }
 0x407   : > { %10431 = vmatpush.bf16.msrb.mxu2 %v15918_v58 }
 0x408   : > { %10444 = vmatpush.bf16.msrb.mxu3 %v15926_v59 }
 0x409   : > { %10406 = vmatpush.bf16.msrb.mxu0 %v15901_v1 }
 0x40a   : > { %10419 = vmatpush.bf16.msrb.mxu1 %v15909_v2 }
 0x40b   : > { %10432 = vmatpush.bf16.msrb.mxu2 %v15917_v4 }
 0x40c   : > { %10445 = vmatpush.bf16.msrb.mxu3 %v15925_v5 }
 0x40d   : > { %10407 = vmatpush.bf16.msrb.mxu0 %v15900_v6 }
 0x40e   : > { %10420 = vmatpush.bf16.msrb.mxu1 %v15908_v7 }
 0x40f   : > { %10433 = vmatpush.bf16.msrb.mxu2 %v15916_v8 }
 0x410   : > { %10446 = vmatpush.bf16.msrb.mxu3 %v15924_v9 }
 0x411   : > { %10408 = vmatpush.bf16.msrb.mxu0 %v15899_v12  ;;  %v10202_v20 = vpop.f32.mrf.mxu0 }
 0x412   : > { %10421 = vmatpush.bf16.msrb.mxu1 %v15907_v13  ;;  %v10203_v21 = vadd.f32 %v10202_v20, %v10190_v0  ;;  %v10215_v22 = vpop.f32.mrf.mxu1  ;;  %v292_v13 = vld [vmem:[#allocation2] sm:$0x3] }
 0x413   : > { %10434 = vmatpush.bf16.msrb.mxu2 %v15915_v14 }
 0x414   : > { %10447 = vmatpush.bf16.msrb.mxu3 %v15923_v15  ;;  %10409 = vmatmul.bf16.vlgmr.msrb.gmra.mxu0 %v2513_v16  ;;  %v10216_v23 = vadd.f32 %v10215_v22, %v10203_v21 }
 0x415   : > { %10422 = vmatmul.bf16.vlgmr.msrb.gmra.mxu1 %v2514_v17 }
 0x416   : > { %10435 = vmatmul.bf16.vlgmr.msrb.gmra.mxu2 %v2515_v18 }
 0x417   : > { %10448 = vmatmul.bf16.vlgmr.msrb.gmra.mxu3 %v2516_v19 }
 0x419   : > { %v10228_v24 = vpop.f32.mrf.mxu2  ;;  %v10204_v27 = vpop.f32.mrf.mxu0 }
 0x41a   : > { %v10229_v25 = vadd.f32 %v10228_v24, %v10216_v23  ;;  %v10241_v26 = vpop.f32.mrf.mxu3  ;;  %v10217_v29 = vpop.f32.mrf.mxu1 }
 0x41c   : > { %v10242_v28 = vadd.f32 %v10241_v26, %v10229_v25 }
 0x421   : > { %v10230_v30 = vpop.f32.mrf.mxu2 }
 0x422   : > { %v10243_v31 = vpop.f32.mrf.mxu3 }
 0x431   : > { %v10254_v32 = vpop.f32.mrf.mxu0 }
 0x432   : > { %v10255_v33 = vadd.f32 %v10254_v32, %v10242_v28  ;;  %v10267_v34 = vpop.f32.mrf.mxu1 }
 0x434   : > { %v10268_v35 = vadd.f32 %v10267_v34, %v10255_v33 }
 0x439   : > { %v10280_v36 = vpop.f32.mrf.mxu2  ;;  %v10256_v39 = vpop.f32.mrf.mxu0 }
 0x43a   : > { %v10281_v37 = vadd.f32 %v10280_v36, %v10268_v35  ;;  %v10293_v38 = vpop.f32.mrf.mxu3  ;;  %v10269_v41 = vpop.f32.mrf.mxu1 }
 0x43c   : > { %v10294_v40 = vadd.f32 %v10293_v38, %v10281_v37 }
 0x441   : > { %v10282_v42 = vpop.f32.mrf.mxu2 }
 0x442   : > { %v10295_v43 = vpop.f32.mrf.mxu3 }
 0x451   : > { %v10306_v44 = vpop.f32.mrf.mxu0 }
 0x452   : > { %v10319_v45 = vpop.f32.mrf.mxu1  ;;  %v10307_v55 = vadd.f32 %v10306_v44, %v10294_v40 }
 0x454   : > { %v10320_v59 = vadd.f32 %v10319_v45, %v10307_v55 }
 0x459   : > { %v10332_v46 = vpop.f32.mrf.mxu2  ;;  %v10308_v48 = vpop.f32.mrf.mxu0 }
 0x45a   : > { %v10345_v47 = vpop.f32.mrf.mxu3  ;;  %v10321_v49 = vpop.f32.mrf.mxu1  ;;  %v10333_v60 = vadd.f32 %v10332_v46, %v10320_v59 }
 0x45c   : > { %v10346_v63 = vadd.f32 %v10345_v47, %v10333_v60 }
 0x461   : > { %v10334_v50 = vpop.f32.mrf.mxu2 }
 0x462   : > { %v10347_v51 = vpop.f32.mrf.mxu3 }
 0x471   : > { %v10358_v52 = vpop.f32.mrf.mxu0 }
 0x472   : > { %v10371_v53 = vpop.f32.mrf.mxu1  ;;  %v10359_v0 = vadd.f32 %v10358_v52, %v10346_v63 }
 0x474   : > { %v10372_v1 = vadd.f32 %v10371_v53, %v10359_v0 }
 0x479   : > { %v10384_v54 = vpop.f32.mrf.mxu2  ;;  %v10360_v57 = vpop.f32.mrf.mxu0 }
 0x47a   : > { %v10397_v56 = vpop.f32.mrf.mxu3  ;;  %v10373_v58 = vpop.f32.mrf.mxu1  ;;  %v10385_v2 = vadd.f32 %v10384_v54, %v10372_v1 }
 0x47c   : > { %v10398_v3 = vadd.f32 %v10397_v56, %v10385_v2 }
 0x481   : > { %v10386_v61 = vpop.f32.mrf.mxu2 }
 0x482   : > { %v10399_v62 = vpop.f32.mrf.mxu3 }
 0x491   : > { %v10410_v4 = vpop.f32.mrf.mxu0 }
 0x492   : > { %v10423_v5 = vpop.f32.mrf.mxu1  ;;  %v10411_v6 = vadd.f32 %v10410_v4, %v10398_v3 }
 0x494   : > { %v10424_v7 = vadd.f32 %v10423_v5, %v10411_v6 }
 0x499   : > { %v10436_v8 = vpop.f32.mrf.mxu2  ;;  %v10412_v11 = vpop.f32.mrf.mxu0 }
 0x49a   : > { %v10449_v9 = vpop.f32.mrf.mxu3  ;;  %v10437_v10 = vadd.f32 %v10436_v8, %v10424_v7  ;;  %v10425_v12 = vpop.f32.mrf.mxu1 }
 0x49c   : > { %v10450_v14 = vadd.f32 %v10449_v9, %v10437_v10 }
 0x49e   : > { %v10453_v15 = vadd.f32 %v10450_v14, %v292_v13  ;;  %10459 = sbr.rel (%p14836_p6) target bundleno = 1487 (0x5cf), region = 56 }
 0x4a0   : > { %10455 = vst.msk [vmem:[#allocation2] sm:$0x3] %vm10454_vm1, %v10453_v15 }
 0x4a1   : > { %v10438_v16 = vpop.f32.mrf.mxu2 }
 0x4a2   : > { %v10451_v17 = vpop.f32.mrf.mxu3 }
 0x4a3   : > { %v15938_v18 = vld [vmem:[%s17256_s3 + $0x38] sm:$0xff]  ;;  %v15937_v20 = vld [vmem:[%s17256_s3 + $0x30] sm:$0xff]  ;;  %vm10649_vm2 = vcmask 1043456   ;;  %v10461_v22 = vld [vmem:[%s17255_s2] sm:$0x3]  ;;  %vm10645_vm3 = vcmask 818176  }
 0x4a4   : > { %v15946_v19 = vld [vmem:[%s17256_s3 + $0x78] sm:$0xff]  ;;  %10596 = vmatpush.bf16.msra.mxu0 %v15938_v18  ;;  %v15945_v21 = vld [vmem:[%s17256_s3 + $0x70] sm:$0xff]  ;;  %v10640_v23 = vld [vmem:[%s17258_s5 + $0x60] sm:$0xf]  ;;  %10495 = vst [vmem:[#allocation1] ss:$9 sm:$0xff] %v10461_v22 }
 0x4a5   : > { %10609 = vmatpush.bf16.msra.mxu1 %v15946_v19  ;;  %v15936_v24 = vld [vmem:[%s17256_s3 + $0x28] sm:$0xff]  ;;  %v10639_v26 = vld [vmem:[%s17258_s5 + $0x58] sm:$0xff]  ;;  %14901 = vmatpush.msk.msra.mxu2 %vm10649_vm2, %v10640_v23  ;;  %v10638_v27 = vld [vmem:[%s17258_s5 + $0x50] sm:$0xff]  ;;  %vm10673_vm4 = vcmask 58368  }
 0x4a6   : > { %v15944_v25 = vld [vmem:[%s17256_s3 + $0x68] sm:$0xff]  ;;  %v15935_v28 = vld [vmem:[%s17256_s3 + $0x20] sm:$0xff]  ;;  %v15934_v32 = vld [vmem:[%s17256_s3 + $0x18] sm:$0xff] }
 0x4a7   : > { %10657 = vmatpush.msra.mxu2 %v10639_v26  ;;  %v15943_v29 = vld [vmem:[%s17256_s3 + $0x60] sm:$0xff]  ;;  %v10637_v30 = vld [vmem:[%s17258_s5 + $0x48] sm:$0xff]  ;;  %v15942_v33 = vld [vmem:[%s17256_s3 + $0x58] sm:$0xff] }
 0x4a8   : > { %10597 = vmatpush.bf16.msra.mxu0 %v15937_v20  ;;  %v10636_v31 = vld [vmem:[%s17258_s5 + $0x40] sm:$0xff]  ;;  %v10635_v34 = vld [vmem:[%s17258_s5 + $0x38] sm:$0xff]  ;;  %v10634_v35 = vld [vmem:[%s17258_s5 + $0x30] sm:$0xff] }
 0x4a9   : > { %10610 = vmatpush.bf16.msra.mxu1 %v15945_v21  ;;  %10658 = vmatpush.msra.mxu2 %v10638_v27  ;;  %v15933_v36 = vld [vmem:[%s17256_s3 + $0x10] sm:$0xff]  ;;  %v10633_v38 = vld [vmem:[%s17258_s5 + $0x28] sm:$0xff]  ;;  %v10632_v39 = vld [vmem:[%s17258_s5 + $0x20] sm:$0xff] }
 0x4aa   : > { %v15941_v37 = vld [vmem:[%s17256_s3 + $0x50] sm:$0xff]  ;;  %v15932_v40 = vld [vmem:[%s17256_s3 + $0x8] sm:$0xff]  ;;  %v15931_v42 = vld [vmem:[%s17256_s3] sm:$0xff] }
 0x4ab   : > { %10659 = vmatpush.msra.mxu2 %v10637_v30  ;;  %v15940_v41 = vld [vmem:[%s17256_s3 + $0x48] sm:$0xff]  ;;  %v15939_v43 = vld [vmem:[%s17256_s3 + $0x40] sm:$0xff]  ;;  %v10631_v46 = vld [vmem:[%s17258_s5 + $0x18] sm:$0xff] }
 0x4ac   : > { %10598 = vmatpush.bf16.msra.mxu0 %v15936_v24  ;;  %v10496_v44 = vld [vmem:[#allocation1] sm:$0xff]  ;;  %v10497_v45 = vld [vmem:[#allocation1 + $0x9] sm:$0xff] }
 0x4ad   : > { %10611 = vmatpush.bf16.msra.mxu1 %v15944_v25  ;;  %10660 = vmatpush.msra.mxu2 %v10636_v31  ;;  %v10630_v47 = vld [vmem:[%s17258_s5 + $0x10] sm:$0xff]  ;;  %v10629_v48 = vld [vmem:[%s17258_s5 + $0x8] sm:$0xff]  ;;  %v10628_v49 = vld [vmem:[%s17258_s5] sm:$0xff] }
 0x4ae   : > { %v10460_v51 = vld [vmem:[#allocation2] sm:$0x3]  ;;  %v15963_v54 = vld [vmem:[%s17257_s4] ss:$0 sm:$0xff] }
 0x4af   : > { %10661 = vmatpush.msra.mxu2 %v10635_v34  ;;  %v15964_v59 = vld [vmem:[%s17259_s6] ss:$0 sm:$0xff] }
 0x4b0   : > { %10599 = vmatpush.bf16.msra.mxu0 %v15935_v28 }
 0x4b1   : > { %10612 = vmatpush.bf16.msra.mxu1 %v15943_v29  ;;  %10662 = vmatpush.msra.mxu2 %v10634_v35 }
 0x4b3   : > { %10663 = vmatpush.msra.mxu2 %v10633_v38 }
 0x4b4   : > { %10600 = vmatpush.bf16.msra.mxu0 %v15934_v32 }
 0x4b5   : > { %10613 = vmatpush.bf16.msra.mxu1 %v15942_v33  ;;  %10664 = vmatpush.msra.mxu2 %v10632_v39 }
 0x4b7   : > { %10665 = vmatpush.msra.mxu2 %v10631_v46 }
 0x4b8   : > { %10601 = vmatpush.bf16.msra.mxu0 %v15933_v36 }
 0x4b9   : > { %10614 = vmatpush.bf16.msra.mxu1 %v15941_v37  ;;  %10666 = vmatpush.msra.mxu2 %v10630_v47 }
 0x4bb   : > { %10667 = vmatpush.msra.mxu2 %v10629_v48 }
 0x4bc   : > { %10602 = vmatpush.bf16.msra.mxu0 %v15932_v40 }
 0x4bd   : > { %10615 = vmatpush.bf16.msra.mxu1 %v15940_v41  ;;  %10668 = vmatpush.msra.mxu2 %v10628_v49 }
 0x4c0   : > { %10603 = vmatpush.bf16.msra.mxu0 %v15931_v42 }
 0x4c1   : > { %10616 = vmatpush.bf16.msra.mxu1 %v15939_v43 }
 0x4c3   : > { %10604 = vmatmul.bf16.vlgmr.msra.gmra.mxu0 %v10496_v44 }
 0x4c4   : > { %10617 = vmatmul.bf16.vlgmr.msra.gmra.mxu1 %v10497_v45 }
 0x540   : > { %v10605_v50 = vpop.f32.mrf.mxu0 }
 0x541   : > { %v10618_v52 = vpop.f32.mrf.mxu1 }
 0x542   : > { %v10619_v53 = vadd.f32 %v10618_v52, %v10605_v50 }
 0x544   : > { %v10622_v55 = vadd.f32 %v10619_v53, %v10460_v51 }
 0x546   : > { %v10627_v56 = vadd.f32 %v15963_v54, %v10622_v55 }
 0x548   : > { %14902 = vmatmul.msk.f32.vlgmr.msra.gmra.mxu2 %vm10645_vm3, %v10627_v56  ;;  %v10607_v57 = vpop.f32.mrf.mxu0 }
 0x549   : > { %v10620_v58 = vpop.f32.mrf.mxu1 }
 0x5cb   : > { %v10670_v60 = vpop.f32.mrf.mxu2 }
 0x5cc   : > { %v10671_v61 = vadd.f32 %v15964_v59, %v10670_v60 }
 0x5ce   : > { %10674 = vst.msk [vmem:[#allocation3] sm:$0x3] %vm10673_vm4, %v10671_v61 }
 0x5cf PF: > { %p15951_p7 = scmp.eq.s32.totalorder %s16053_s25, 1  ;;  %s16006_s13 = smov [#allocation3]  }
 0x5d0   : > { %s10681_s14 = sshll.u32 %s16006_s13, 4  ;;  %s10683_s17 = sshll.u32 %s17260_s7, 4  ;;  %s10682_s14 = int_to_ptr.vmem [resolvable:$true] %s10681_s14  ;;  %s10684_s17 = int_to_ptr.hbm [resolvable:$true] %s10683_s17 }
 0x5d1   : > { %15948 = dma.vmem_to_hbm [thread:$0]  (%p15951_p7), %s10682_s14, 32, %s10684_s17, [#allocation4]  }
 0x5d2   : > { %15998 = dma.done.wait (%p15951_p7), [#allocation4], 32  }
 0x5d3   : > { %16000 = vsyncadd (%p15951_p7), [#allocation4], 4294967264 }
 0x5d4 PF: > { %s18_s24 = sadd.s32 1, %s16003_s24  }
 0x5d5   : > { %p15_p8 = scmp.ge.s32.totalorder %s18_s24, 4  }
 0x5d7   :  { %17 = sbr.rel (!%p15_p8) target bundleno = 1 (0x1), region = 86 }
 0x5dc   :  { %10697 = vsyncpa [#allocation4], 1 }
 0x5dd   :  { %10699 = vsyncpa [#allocation4 + $0x1], 1 }

</bundles_post_ra>
